<compile_context>
chip_gen: v5e
topology: v5e:2x2
jax: 0.10.0
libtpu: 0.0.40
codegen_flags: <defaults>
</compile_context>

<pallas_src>
import functools

import jax
import jax.numpy as jnp
from jax.experimental import pallas as pl
from jax.experimental.pallas import tpu as pltpu


def _round_up(x, m):
    return ((x + m - 1) // m) * m


def _pick_tm(m):
    """M tile: 16-aligned (bf16 sublane packing); >=2 M steps for medium M
    (keeps both v7x TensorCores busy); 512-row tiles for large M."""
    if m <= 64:
        return _round_up(m, 16)
    if m <= 1024:
        return _round_up(-(-m // 2), 16)
    return 512


# ----------------------------------------------------------------------------
# Pallas kernels
# ----------------------------------------------------------------------------
def _matmul_bias_kernel(x_ref, w_ref, b_ref, o_ref, *, act):
    # x_ref: (TM, K)  bf16 im2col rows (batch*spatial flattened)
    # w_ref: (K, TN)  bf16 flattened conv weight tile (lane-padded)
    # b_ref: (1, TN)  f32 bias tile
    # o_ref: (TM, TN) bf16 (conv1-3) or f32 (conv4)
    y = jnp.dot(x_ref[...], w_ref[...], preferred_element_type=jnp.float32)
    y = y + b_ref[...]
    if act == "sigmoid":
        y = jax.nn.sigmoid(y)
    o_ref[...] = y.astype(o_ref.dtype)


def _maxpool2_relu_kernel(x_ref, o_ref, *, OH, C):
    # x_ref: (1, 2*OH, OW, 2*C) bf16 -- W pool pairs pre-folded into lanes
    # o_ref: (1, OH, OW, C)     bf16
    x = x_ref[0].astype(jnp.float32)               # f32 math (v5e-safe)
    OW = x.shape[1]
    xr = x.reshape(OH, 2, OW, 2 * C)               # split leading dim only
    hmax = jnp.maximum(xr[:, 0], xr[:, 1])         # H pool
    wmax = jnp.maximum(hmax[..., :C], hmax[..., C:])   # W pool: lane halves
    o_ref[0] = jnp.maximum(wmax, 0.0).astype(o_ref.dtype)  # ReLU, dense store


# ----------------------------------------------------------------------------
# Pallas wrappers
# ----------------------------------------------------------------------------
def _matmul_bias(cols, w2d, b2d, act, tm, out_dtype):
    M, K = cols.shape
    Cop = w2d.shape[1]
    tn = min(Cop, 128)
    kern = functools.partial(_matmul_bias_kernel, act=act)
    return pl.pallas_call(
        kern,
        out_shape=jax.ShapeDtypeStruct((M, Cop), out_dtype),
        grid=(M // tm, Cop // tn),
        in_specs=[
            pl.BlockSpec((tm, K), lambda i, j: (i, 0)),
            pl.BlockSpec((K, tn), lambda i, j: (0, j)),
            pl.BlockSpec((1, tn), lambda i, j: (0, j)),
        ],
        out_specs=pl.BlockSpec((tm, tn), lambda i, j: (i, j)),
        compiler_params=pltpu.CompilerParams(
            dimension_semantics=("parallel", "parallel")),
    )(cols, w2d, b2d)


def maxpool2_relu(x):
    """2x2 max-pool (stride 2, floor) + ReLU on NHWC bf16 with C % 128 == 0."""
    N, H, W, C = x.shape
    assert C % 128 == 0, "pool kernel requires a lane-dense channel dim"
    OH, OW = H // 2, W // 2
    # Drop odd trailing row/col (floor), fold W pairs into channels.
    x = x[:, :2 * OH, :2 * OW, :].reshape(N, 2 * OH, OW, 2 * C)
    kern = functools.partial(_maxpool2_relu_kernel, OH=OH, C=C)
    return pl.pallas_call(
        kern,
        out_shape=jax.ShapeDtypeStruct((N, OH, OW, C), x.dtype),
        grid=(N,),
        in_specs=[pl.BlockSpec((1, 2 * OH, OW, 2 * C), lambda n: (n, 0, 0, 0))],
        out_specs=pl.BlockSpec((1, OH, OW, C), lambda n: (n, 0, 0, 0)),
        compiler_params=pltpu.CompilerParams(
            dimension_semantics=("parallel",)),
    )(x)


def conv2d_valid(x_nhwc, w_oihw, b, act=None, out_dtype=jnp.bfloat16):
    """VALID conv, stride 1.

    x: (N, H, W, Cpad) bf16; any channels beyond the weight's real Cin are
       zero padding and are sliced off before im2col (so K only covers real
       channels).  w: PyTorch (Cout, Cin, KH, KW).  Returns
       (N, OH, OW, Cout_pad) with Cout padded to a multiple of 128
       (padded output channels are zero).
    """
    N, H, W, Cpad = x_nhwc.shape
    Cout, Cin, KH, KW = w_oihw.shape
    OH, OW = H - KH + 1, W - KW + 1

    # Drop zero channel padding carried in from the previous layer.
    if Cpad > Cin:
        x_nhwc = x_nhwc[..., :Cin]

    # im2col (glue): feature ordering (kh, kw, c), batch folded into M.
    patches = [x_nhwc[:, kh:kh + OH, kw:kw + OW, :]
               for kh in range(KH) for kw in range(KW)]
    cols = jnp.stack(patches, axis=3).reshape(N * OH * OW, KH * KW * Cin)
    cols = cols.astype(jnp.bfloat16)

    # Weight: (Cout,Cin,KH,KW) -> (KH*KW*Cin, Cout), matching feature order.
    w2d = jnp.transpose(w_oihw, (2, 3, 1, 0)).reshape(KH * KW * Cin, Cout)

    # Zero-pad K to a multiple of 128.
    K = KH * KW * Cin
    Kp = _round_up(K, 128)
    if Kp > K:
        cols = jnp.pad(cols, ((0, 0), (0, Kp - K)))
        w2d = jnp.pad(w2d, ((0, Kp - K), (0, 0)))

    # Zero-pad Cout to a multiple of 128 (lane-dense output stores).
    Cop = _round_up(Cout, 128)
    b2d = b.reshape(1, Cout).astype(jnp.float32)
    if Cop > Cout:
        w2d = jnp.pad(w2d, ((0, 0), (0, Cop - Cout)))
        b2d = jnp.pad(b2d, ((0, 0), (0, Cop - Cout)))

    # M tiling: pad flattened batch*spatial rows to a tile multiple.
    M = cols.shape[0]
    tm = _pick_tm(M)
    Mp = _round_up(M, tm)
    if Mp > M:
        cols = jnp.pad(cols, ((0, Mp - M), (0, 0)))

    y = _matmul_bias(cols, w2d.astype(jnp.bfloat16), b2d, act, tm, out_dtype)
    return y[:M].reshape(N, OH, OW, Cop)


def cnn_forward(x_nchw, params):
    x = jnp.transpose(x_nchw, (0, 2, 3, 1)).astype(jnp.bfloat16)  # NCHW->NHWC
    x = conv2d_valid(x, params["w1"], params["b1"])    # (N,34,34,128) pad ch 0
    x = maxpool2_relu(x)                               # MaxPool2d(2) + ReLU
    # Dropout(0.5): identity (eval mode)
    x = conv2d_valid(x, params["w2"], params["b2"])
    x = maxpool2_relu(x)
    x = conv2d_valid(x, params["w3"], params["b3"])
    x = maxpool2_relu(x)
    x = conv2d_valid(x, params["w4"], params["b4"], act="sigmoid",
                     out_dtype=jnp.float32)
    x = x[..., :params["w4"].shape[0]]                 # drop any channel pad
    return jnp.transpose(x, (0, 3, 1, 2))              # NHWC -> NCHW


# ----------------------------------------------------------------------------
# Deterministic parameter init (PyTorch Conv2d-style uniform bounds)
# ----------------------------------------------------------------------------
def init_params(key):
    shapes = [(64, 3, 5, 5), (128, 64, 3, 3), (256, 128, 3, 3), (128, 256, 2, 2)]
    params = {}
    for i, s in enumerate(shapes, start=1):
        key, kw, kb = jax.random.split(key, 3)
        fan_in = s[1] * s[2] * s[3]
        bound = 1.0 / float(fan_in) ** 0.5
        params[f"w{i}"] = jax.random.uniform(kw, s, jnp.float32, -bound, bound)
        params[f"b{i}"] = jax.random.uniform(kb, (s[0],), jnp.float32, -bound, bound)
    return params


# ----------------------------------------------------------------------------
# Pure-JAX reference for correctness check
# ----------------------------------------------------------------------------
def ref_forward(x, params):
    def conv(x, w, b):
        y = jax.lax.conv_general_dilated(
            x, w, (1, 1), "VALID", dimension_numbers=("NCHW", "OIHW", "NCHW"))
        return y + b[None, :, None, None]

    def pool(x):
        return jax.lax.reduce_window(
            x, -jnp.inf, jax.lax.max, (1, 1, 2, 2), (1, 1, 2, 2), "VALID")

    x = jax.nn.relu(pool(conv(x, params["w1"], params["b1"])))
    x = jax.nn.relu(pool(conv(x, params["w2"], params["b2"])))
    x = jax.nn.relu(pool(conv(x, params["w3"], params["b3"])))
    x = jax.nn.sigmoid(conv(x, params["w4"], params["b4"]))
    return x


if __name__ == "__main__":
    key = jax.random.PRNGKey(0)
    pkey, xkey = jax.random.split(key)
    params = init_params(pkey)
    # Smallest spatial size that survives 3 pools + 4 valid convs: 38 -> 1x1 out.
    x = jax.random.normal(xkey, (2, 3, 38, 38), jnp.float32)

    out = jax.jit(cnn_forward)(x, params)
    out = jax.block_until_ready(out)

    assert out.shape == (2, 128, 1, 1), out.shape
    ref = ref_forward(x, params)
    # 2e-2 tolerance accounts for bf16 MXU feed / bf16 activations (f32 accum).
    assert jnp.allclose(out, ref, rtol=2e-2, atol=2e-2), \
        float(jnp.max(jnp.abs(out - ref)))
    print("KERNEL_OK")
</pallas_src>

<mosaic_0001>
module attributes {stable_mosaic.version = 11 : i64} {
  func.func @_matmul_bias_kernel(%arg0: i32, %arg1: i32, %arg2: memref<512x128xbf16, #tpu.memory_space<vmem>>, %arg3: memref<128x128xbf16, #tpu.memory_space<vmem>>, %arg4: memref<1x128xf32, #tpu.memory_space<vmem>>, %arg5: memref<512x128xbf16, #tpu.memory_space<vmem>>) attributes {dimension_semantics = [#tpu.dimension_semantics<parallel>, #tpu.dimension_semantics<parallel>], iteration_bounds = array<i64: 5, 1>, scalar_prefetch = 0 : i64, scratch_operands = 0 : i64, tpu.core_type = #tpu.core_type<tc>, window_params = [{transform_indices = @transform_0, window_bounds = array<i64: 512, 128>}, {transform_indices = @transform_1, window_bounds = array<i64: 128, 128>}, {transform_indices = @transform_2, window_bounds = array<i64: 1, 128>}, {transform_indices = @transform_3, window_bounds = array<i64: 512, 128>}]} {
    %c0 = arith.constant 0 : index
    %c0_0 = arith.constant 0 : index
    %0 = vector.load %arg2[%c0, %c0_0] : memref<512x128xbf16, #tpu.memory_space<vmem>>, vector<512x128xbf16>
    %c0_1 = arith.constant 0 : index
    %c0_2 = arith.constant 0 : index
    %1 = vector.load %arg3[%c0_1, %c0_2] : memref<128x128xbf16, #tpu.memory_space<vmem>>, vector<128x128xbf16>
    %cst = arith.constant dense<0.000000e+00> : vector<512x128xf32>
    %2 = tpu.matmul %0, %1, %cst {dimension_numbers = #tpu.dot_dimension_numbers<[1], [0], [0], [1], [0, 0, 1, 1], [], []>} : vector<512x128xbf16>, vector<128x128xbf16>, vector<512x128xf32> -> vector<512x128xf32>
    %c0_3 = arith.constant 0 : index
    %c0_4 = arith.constant 0 : index
    %3 = vector.load %arg4[%c0_3, %c0_4] : memref<1x128xf32, #tpu.memory_space<vmem>>, vector<1x128xf32>
    %4 = vector.broadcast %3 : vector<1x128xf32> to vector<512x128xf32>
    %5 = arith.addf %2, %4 : vector<512x128xf32>
    %6 = arith.truncf %5 : vector<512x128xf32> to vector<512x128xbf16>
    %c0_5 = arith.constant 0 : index
    %c0_6 = arith.constant 0 : index
    %7 = vector.load %arg5[%c0_5, %c0_6] : memref<512x128xbf16, #tpu.memory_space<vmem>>, vector<512x128xbf16>
    tpu.vector_store %arg5[%c0_5, %c0_6], %6 {strides = array<i32>} : memref<512x128xbf16, #tpu.memory_space<vmem>>, vector<512x128xbf16>,
    return
  }
  func.func @transform_0(%arg0: i32, %arg1: i32) -> (i32, i32) {
    %c0_i32 = arith.constant 0 : i32
    %c0_i32_0 = arith.constant 0 : i32
    return %arg0, %c0_i32 : i32, i32
  }
  func.func @transform_1(%arg0: i32, %arg1: i32) -> (i32, i32) {
    %c0_i32 = arith.constant 0 : i32
    %c0_i32_0 = arith.constant 0 : i32
    return %c0_i32, %arg1 : i32, i32
  }
  func.func @transform_2(%arg0: i32, %arg1: i32) -> (i32, i32) {
    %c0_i32 = arith.constant 0 : i32
    %c0_i32_0 = arith.constant 0 : i32
    return %c0_i32, %arg1 : i32, i32
  }
  func.func @transform_3(%arg0: i32, %arg1: i32) -> (i32, i32) {
    %c0_i32 = arith.constant 0 : i32
    return %arg0, %arg1 : i32, i32
  }
}

module attributes {stable_mosaic.version = 11 : i64} {
  func.func @_maxpool2_relu_kernel(%arg0: i32, %arg1: memref<1x34x17x256xbf16, #tpu.memory_space<vmem>>, %arg2: memref<1x17x17x128xbf16, #tpu.memory_space<vmem>>) attributes {dimension_semantics = [#tpu.dimension_semantics<parallel>], iteration_bounds = array<i64: 2>, scalar_prefetch = 0 : i64, scratch_operands = 0 : i64, tpu.core_type = #tpu.core_type<tc>, window_params = [{transform_indices = @transform_0, window_bounds = array<i64: 1, 34, 17, 256>}, {transform_indices = @transform_1, window_bounds = array<i64: 1, 17, 17, 128>}]} {
    %c0 = arith.constant 0 : index
    %c0_0 = arith.constant 0 : index
    %c0_1 = arith.constant 0 : index
    %c0_2 = arith.constant 0 : index
    %0 = vector.load %arg1[%c0, %c0_0, %c0_1, %c0_2] : memref<1x34x17x256xbf16, #tpu.memory_space<vmem>>, vector<1x34x17x256xbf16>
    %1 = vector.shape_cast %0 : vector<1x34x17x256xbf16> to vector<34x17x256xbf16>
    %2 = arith.extf %1 : vector<34x17x256xbf16> to vector<34x17x256xf32>
    %3 = vector.shape_cast %2 : vector<34x17x256xf32> to vector<17x2x17x256xf32>
    %4 = vector.extract_strided_slice %3 {offsets = [0, 0, 0, 0], sizes = [17, 1, 17, 256], strides = [1, 1, 1, 1]} : vector<17x2x17x256xf32> to vector<17x1x17x256xf32>
    %5 = vector.shape_cast %4 : vector<17x1x17x256xf32> to vector<17x17x256xf32>
    %6 = vector.extract_strided_slice %3 {offsets = [0, 1, 0, 0], sizes = [17, 1, 17, 256], strides = [1, 1, 1, 1]} : vector<17x2x17x256xf32> to vector<17x1x17x256xf32>
    %7 = vector.shape_cast %6 : vector<17x1x17x256xf32> to vector<17x17x256xf32>
    %8 = arith.maximumf %5, %7 : vector<17x17x256xf32>
    %9 = vector.extract_strided_slice %8 {offsets = [0, 0, 0], sizes = [17, 17, 128], strides = [1, 1, 1]} : vector<17x17x256xf32> to vector<17x17x128xf32>
    %10 = vector.extract_strided_slice %8 {offsets = [0, 0, 128], sizes = [17, 17, 128], strides = [1, 1, 1]} : vector<17x17x256xf32> to vector<17x17x128xf32>
    %11 = arith.maximumf %9, %10 : vector<17x17x128xf32>
    %cst = arith.constant 0.000000e+00 : f32
    %12 = vector.broadcast %cst : f32 to vector<17x17x128xf32>
    %13 = arith.maximumf %11, %12 : vector<17x17x128xf32>
    %14 = arith.truncf %13 : vector<17x17x128xf32> to vector<17x17x128xbf16>
    %c0_3 = arith.constant 0 : index
    %c0_4 = arith.constant 0 : index
    %c0_5 = arith.constant 0 : index
    %c0_6 = arith.constant 0 : index
    %15 = vector.load %arg2[%c0_3, %c0_4, %c0_5, %c0_6] : memref<1x17x17x128xbf16, #tpu.memory_space<vmem>>, vector<1x17x17x128xbf16>
    %16 = vector.shape_cast %15 : vector<1x17x17x128xbf16> to vector<17x17x128xbf16>
    %17 = vector.shape_cast %14 : vector<17x17x128xbf16> to vector<1x17x17x128xbf16>
    tpu.vector_store %arg2[%c0_3, %c0_4, %c0_5, %c0_6], %17 {strides = array<i32>} : memref<1x17x17x128xbf16, #tpu.memory_space<vmem>>, vector<1x17x17x128xbf16>,
    return
  }
  func.func @transform_0(%arg0: i32) -> (i32, i32, i32, i32) {
    %c0_i32 = arith.constant 0 : i32
    %c0_i32_0 = arith.constant 0 : i32
    %c0_i32_1 = arith.constant 0 : i32
    %c0_i32_2 = arith.constant 0 : i32
    return %arg0, %c0_i32, %c0_i32_0, %c0_i32_1 : i32, i32, i32, i32
  }
  func.func @transform_1(%arg0: i32) -> (i32, i32, i32, i32) {
    %c0_i32 = arith.constant 0 : i32
    %c0_i32_0 = arith.constant 0 : i32
    %c0_i32_1 = arith.constant 0 : i32
    %c0_i32_2 = arith.constant 0 : i32
    return %arg0, %c0_i32, %c0_i32_0, %c0_i32_1 : i32, i32, i32, i32
  }
}

module attributes {stable_mosaic.version = 11 : i64} {
  func.func @_matmul_bias_kernel(%arg0: i32, %arg1: i32, %arg2: memref<240x640xbf16, #tpu.memory_space<vmem>>, %arg3: memref<640x128xbf16, #tpu.memory_space<vmem>>, %arg4: memref<1x128xf32, #tpu.memory_space<vmem>>, %arg5: memref<240x128xbf16, #tpu.memory_space<vmem>>) attributes {dimension_semantics = [#tpu.dimension_semantics<parallel>, #tpu.dimension_semantics<parallel>], iteration_bounds = array<i64: 2, 1>, scalar_prefetch = 0 : i64, scratch_operands = 0 : i64, tpu.core_type = #tpu.core_type<tc>, window_params = [{transform_indices = @transform_0, window_bounds = array<i64: 240, 640>}, {transform_indices = @transform_1, window_bounds = array<i64: 640, 128>}, {transform_indices = @transform_2, window_bounds = array<i64: 1, 128>}, {transform_indices = @transform_3, window_bounds = array<i64: 240, 128>}]} {
    %c0 = arith.constant 0 : index
    %c0_0 = arith.constant 0 : index
    %0 = vector.load %arg2[%c0, %c0_0] : memref<240x640xbf16, #tpu.memory_space<vmem>>, vector<240x640xbf16>
    %c0_1 = arith.constant 0 : index
    %c0_2 = arith.constant 0 : index
    %1 = vector.load %arg3[%c0_1, %c0_2] : memref<640x128xbf16, #tpu.memory_space<vmem>>, vector<640x128xbf16>
    %cst = arith.constant dense<0.000000e+00> : vector<240x128xf32>
    %2 = tpu.matmul %0, %1, %cst {dimension_numbers = #tpu.dot_dimension_numbers<[1], [0], [0], [1], [0, 0, 1, 1], [], []>} : vector<240x640xbf16>, vector<640x128xbf16>, vector<240x128xf32> -> vector<240x128xf32>
    %c0_3 = arith.constant 0 : index
    %c0_4 = arith.constant 0 : index
    %3 = vector.load %arg4[%c0_3, %c0_4] : memref<1x128xf32, #tpu.memory_space<vmem>>, vector<1x128xf32>
    %4 = vector.broadcast %3 : vector<1x128xf32> to vector<240x128xf32>
    %5 = arith.addf %2, %4 : vector<240x128xf32>
    %6 = arith.truncf %5 : vector<240x128xf32> to vector<240x128xbf16>
    %c0_5 = arith.constant 0 : index
    %c0_6 = arith.constant 0 : index
    %7 = vector.load %arg5[%c0_5, %c0_6] : memref<240x128xbf16, #tpu.memory_space<vmem>>, vector<240x128xbf16>
    tpu.vector_store %arg5[%c0_5, %c0_6], %6 {strides = array<i32>} : memref<240x128xbf16, #tpu.memory_space<vmem>>, vector<240x128xbf16>,
    return
  }
  func.func @transform_0(%arg0: i32, %arg1: i32) -> (i32, i32) {
    %c0_i32 = arith.constant 0 : i32
    %c0_i32_0 = arith.constant 0 : i32
    return %arg0, %c0_i32 : i32, i32
  }
  func.func @transform_1(%arg0: i32, %arg1: i32) -> (i32, i32) {
    %c0_i32 = arith.constant 0 : i32
    %c0_i32_0 = arith.constant 0 : i32
    return %c0_i32, %arg1 : i32, i32
  }
  func.func @transform_2(%arg0: i32, %arg1: i32) -> (i32, i32) {
    %c0_i32 = arith.constant 0 : i32
    %c0_i32_0 = arith.constant 0 : i32
    return %c0_i32, %arg1 : i32, i32
  }
  func.func @transform_3(%arg0: i32, %arg1: i32) -> (i32, i32) {
    %c0_i32 = arith.constant 0 : i32
    return %arg0, %arg1 : i32, i32
  }
}

module attributes {stable_mosaic.version = 11 : i64} {
  func.func @_maxpool2_relu_kernel(%arg0: i32, %arg1: memref<1x14x7x256xbf16, #tpu.memory_space<vmem>>, %arg2: memref<1x7x7x128xbf16, #tpu.memory_space<vmem>>) attributes {dimension_semantics = [#tpu.dimension_semantics<parallel>], iteration_bounds = array<i64: 2>, scalar_prefetch = 0 : i64, scratch_operands = 0 : i64, tpu.core_type = #tpu.core_type<tc>, window_params = [{transform_indices = @transform_0, window_bounds = array<i64: 1, 14, 7, 256>}, {transform_indices = @transform_1, window_bounds = array<i64: 1, 7, 7, 128>}]} {
    %c0 = arith.constant 0 : index
    %c0_0 = arith.constant 0 : index
    %c0_1 = arith.constant 0 : index
    %c0_2 = arith.constant 0 : index
    %0 = vector.load %arg1[%c0, %c0_0, %c0_1, %c0_2] : memref<1x14x7x256xbf16, #tpu.memory_space<vmem>>, vector<1x14x7x256xbf16>
    %1 = vector.shape_cast %0 : vector<1x14x7x256xbf16> to vector<14x7x256xbf16>
    %2 = arith.extf %1 : vector<14x7x256xbf16> to vector<14x7x256xf32>
    %3 = vector.shape_cast %2 : vector<14x7x256xf32> to vector<7x2x7x256xf32>
    %4 = vector.extract_strided_slice %3 {offsets = [0, 0, 0, 0], sizes = [7, 1, 7, 256], strides = [1, 1, 1, 1]} : vector<7x2x7x256xf32> to vector<7x1x7x256xf32>
    %5 = vector.shape_cast %4 : vector<7x1x7x256xf32> to vector<7x7x256xf32>
    %6 = vector.extract_strided_slice %3 {offsets = [0, 1, 0, 0], sizes = [7, 1, 7, 256], strides = [1, 1, 1, 1]} : vector<7x2x7x256xf32> to vector<7x1x7x256xf32>
    %7 = vector.shape_cast %6 : vector<7x1x7x256xf32> to vector<7x7x256xf32>
    %8 = arith.maximumf %5, %7 : vector<7x7x256xf32>
    %9 = vector.extract_strided_slice %8 {offsets = [0, 0, 0], sizes = [7, 7, 128], strides = [1, 1, 1]} : vector<7x7x256xf32> to vector<7x7x128xf32>
    %10 = vector.extract_strided_slice %8 {offsets = [0, 0, 128], sizes = [7, 7, 128], strides = [1, 1, 1]} : vector<7x7x256xf32> to vector<7x7x128xf32>
    %11 = arith.maximumf %9, %10 : vector<7x7x128xf32>
    %cst = arith.constant 0.000000e+00 : f32
    %12 = vector.broadcast %cst : f32 to vector<7x7x128xf32>
    %13 = arith.maximumf %11, %12 : vector<7x7x128xf32>
    %14 = arith.truncf %13 : vector<7x7x128xf32> to vector<7x7x128xbf16>
    %c0_3 = arith.constant 0 : index
    %c0_4 = arith.constant 0 : index
    %c0_5 = arith.constant 0 : index
    %c0_6 = arith.constant 0 : index
    %15 = vector.load %arg2[%c0_3, %c0_4, %c0_5, %c0_6] : memref<1x7x7x128xbf16, #tpu.memory_space<vmem>>, vector<1x7x7x128xbf16>
    %16 = vector.shape_cast %15 : vector<1x7x7x128xbf16> to vector<7x7x128xbf16>
    %17 = vector.shape_cast %14 : vector<7x7x128xbf16> to vector<1x7x7x128xbf16>
    tpu.vector_store %arg2[%c0_3, %c0_4, %c0_5, %c0_6], %17 {strides = array<i32>} : memref<1x7x7x128xbf16, #tpu.memory_space<vmem>>, vector<1x7x7x128xbf16>,
    return
  }
  func.func @transform_0(%arg0: i32) -> (i32, i32, i32, i32) {
    %c0_i32 = arith.constant 0 : i32
    %c0_i32_0 = arith.constant 0 : i32
    %c0_i32_1 = arith.constant 0 : i32
    %c0_i32_2 = arith.constant 0 : i32
    return %arg0, %c0_i32, %c0_i32_0, %c0_i32_1 : i32, i32, i32, i32
  }
  func.func @transform_1(%arg0: i32) -> (i32, i32, i32, i32) {
    %c0_i32 = arith.constant 0 : i32
    %c0_i32_0 = arith.constant 0 : i32
    %c0_i32_1 = arith.constant 0 : i32
    %c0_i32_2 = arith.constant 0 : i32
    return %arg0, %c0_i32, %c0_i32_0, %c0_i32_1 : i32, i32, i32, i32
  }
}

module attributes {stable_mosaic.version = 11 : i64} {
  func.func @_matmul_bias_kernel(%arg0: i32, %arg1: i32, %arg2: memref<64x1152xbf16, #tpu.memory_space<vmem>>, %arg3: memref<1152x128xbf16, #tpu.memory_space<vmem>>, %arg4: memref<1x128xf32, #tpu.memory_space<vmem>>, %arg5: memref<64x128xbf16, #tpu.memory_space<vmem>>) attributes {dimension_semantics = [#tpu.dimension_semantics<parallel>, #tpu.dimension_semantics<parallel>], iteration_bounds = array<i64: 1, 2>, scalar_prefetch = 0 : i64, scratch_operands = 0 : i64, tpu.core_type = #tpu.core_type<tc>, window_params = [{transform_indices = @transform_0, window_bounds = array<i64: 64, 1152>}, {transform_indices = @transform_1, window_bounds = array<i64: 1152, 128>}, {transform_indices = @transform_2, window_bounds = array<i64: 1, 128>}, {transform_indices = @transform_3, window_bounds = array<i64: 64, 128>}]} {
    %c0 = arith.constant 0 : index
    %c0_0 = arith.constant 0 : index
    %0 = vector.load %arg2[%c0, %c0_0] : memref<64x1152xbf16, #tpu.memory_space<vmem>>, vector<64x1152xbf16>
    %c0_1 = arith.constant 0 : index
    %c0_2 = arith.constant 0 : index
    %1 = vector.load %arg3[%c0_1, %c0_2] : memref<1152x128xbf16, #tpu.memory_space<vmem>>, vector<1152x128xbf16>
    %cst = arith.constant dense<0.000000e+00> : vector<64x128xf32>
    %2 = tpu.matmul %0, %1, %cst {dimension_numbers = #tpu.dot_dimension_numbers<[1], [0], [0], [1], [0, 0, 1, 1], [], []>} : vector<64x1152xbf16>, vector<1152x128xbf16>, vector<64x128xf32> -> vector<64x128xf32>
    %c0_3 = arith.constant 0 : index
    %c0_4 = arith.constant 0 : index
    %3 = vector.load %arg4[%c0_3, %c0_4] : memref<1x128xf32, #tpu.memory_space<vmem>>, vector<1x128xf32>
    %4 = vector.broadcast %3 : vector<1x128xf32> to vector<64x128xf32>
    %5 = arith.addf %2, %4 : vector<64x128xf32>
    %6 = arith.truncf %5 : vector<64x128xf32> to vector<64x128xbf16>
    %c0_5 = arith.constant 0 : index
    %c0_6 = arith.constant 0 : index
    %7 = vector.load %arg5[%c0_5, %c0_6] : memref<64x128xbf16, #tpu.memory_space<vmem>>, vector<64x128xbf16>
    tpu.vector_store %arg5[%c0_5, %c0_6], %6 {strides = array<i32>} : memref<64x128xbf16, #tpu.memory_space<vmem>>, vector<64x128xbf16>,
    return
  }
  func.func @transform_0(%arg0: i32, %arg1: i32) -> (i32, i32) {
    %c0_i32 = arith.constant 0 : i32
    %c0_i32_0 = arith.constant 0 : i32
    return %arg0, %c0_i32 : i32, i32
  }
  func.func @transform_1(%arg0: i32, %arg1: i32) -> (i32, i32) {
    %c0_i32 = arith.constant 0 : i32
    %c0_i32_0 = arith.constant 0 : i32
    return %c0_i32, %arg1 : i32, i32
  }
  func.func @transform_2(%arg0: i32, %arg1: i32) -> (i32, i32) {
    %c0_i32 = arith.constant 0 : i32
    %c0_i32_0 = arith.constant 0 : i32
    return %c0_i32, %arg1 : i32, i32
  }
  func.func @transform_3(%arg0: i32, %arg1: i32) -> (i32, i32) {
    %c0_i32 = arith.constant 0 : i32
    return %arg0, %arg1 : i32, i32
  }
}

module attributes {stable_mosaic.version = 11 : i64} {
  func.func @_maxpool2_relu_kernel(%arg0: i32, %arg1: memref<1x4x2x512xbf16, #tpu.memory_space<vmem>>, %arg2: memref<1x2x2x256xbf16, #tpu.memory_space<vmem>>) attributes {dimension_semantics = [#tpu.dimension_semantics<parallel>], iteration_bounds = array<i64: 2>, scalar_prefetch = 0 : i64, scratch_operands = 0 : i64, tpu.core_type = #tpu.core_type<tc>, window_params = [{transform_indices = @transform_0, window_bounds = array<i64: 1, 4, 2, 512>}, {transform_indices = @transform_1, window_bounds = array<i64: 1, 2, 2, 256>}]} {
    %c0 = arith.constant 0 : index
    %c0_0 = arith.constant 0 : index
    %c0_1 = arith.constant 0 : index
    %c0_2 = arith.constant 0 : index
    %0 = vector.load %arg1[%c0, %c0_0, %c0_1, %c0_2] : memref<1x4x2x512xbf16, #tpu.memory_space<vmem>>, vector<1x4x2x512xbf16>
    %1 = vector.shape_cast %0 : vector<1x4x2x512xbf16> to vector<4x2x512xbf16>
    %2 = arith.extf %1 : vector<4x2x512xbf16> to vector<4x2x512xf32>
    %3 = vector.shape_cast %2 : vector<4x2x512xf32> to vector<2x2x2x512xf32>
    %4 = vector.extract_strided_slice %3 {offsets = [0, 0, 0, 0], sizes = [2, 1, 2, 512], strides = [1, 1, 1, 1]} : vector<2x2x2x512xf32> to vector<2x1x2x512xf32>
    %5 = vector.shape_cast %4 : vector<2x1x2x512xf32> to vector<2x2x512xf32>
    %6 = vector.extract_strided_slice %3 {offsets = [0, 1, 0, 0], sizes = [2, 1, 2, 512], strides = [1, 1, 1, 1]} : vector<2x2x2x512xf32> to vector<2x1x2x512xf32>
    %7 = vector.shape_cast %6 : vector<2x1x2x512xf32> to vector<2x2x512xf32>
    %8 = arith.maximumf %5, %7 : vector<2x2x512xf32>
    %9 = vector.extract_strided_slice %8 {offsets = [0, 0, 0], sizes = [2, 2, 256], strides = [1, 1, 1]} : vector<2x2x512xf32> to vector<2x2x256xf32>
    %10 = vector.extract_strided_slice %8 {offsets = [0, 0, 256], sizes = [2, 2, 256], strides = [1, 1, 1]} : vector<2x2x512xf32> to vector<2x2x256xf32>
    %11 = arith.maximumf %9, %10 : vector<2x2x256xf32>
    %cst = arith.constant 0.000000e+00 : f32
    %12 = vector.broadcast %cst : f32 to vector<2x2x256xf32>
    %13 = arith.maximumf %11, %12 : vector<2x2x256xf32>
    %14 = arith.truncf %13 : vector<2x2x256xf32> to vector<2x2x256xbf16>
    %c0_3 = arith.constant 0 : index
    %c0_4 = arith.constant 0 : index
    %c0_5 = arith.constant 0 : index
    %c0_6 = arith.constant 0 : index
    %15 = vector.load %arg2[%c0_3, %c0_4, %c0_5, %c0_6] : memref<1x2x2x256xbf16, #tpu.memory_space<vmem>>, vector<1x2x2x256xbf16>
    %16 = vector.shape_cast %15 : vector<1x2x2x256xbf16> to vector<2x2x256xbf16>
    %17 = vector.shape_cast %14 : vector<2x2x256xbf16> to vector<1x2x2x256xbf16>
    tpu.vector_store %arg2[%c0_3, %c0_4, %c0_5, %c0_6], %17 {strides = array<i32>} : memref<1x2x2x256xbf16, #tpu.memory_space<vmem>>, vector<1x2x2x256xbf16>,
    return
  }
  func.func @transform_0(%arg0: i32) -> (i32, i32, i32, i32) {
    %c0_i32 = arith.constant 0 : i32
    %c0_i32_0 = arith.constant 0 : i32
    %c0_i32_1 = arith.constant 0 : i32
    %c0_i32_2 = arith.constant 0 : i32
    return %arg0, %c0_i32, %c0_i32_0, %c0_i32_1 : i32, i32, i32, i32
  }
  func.func @transform_1(%arg0: i32) -> (i32, i32, i32, i32) {
    %c0_i32 = arith.constant 0 : i32
    %c0_i32_0 = arith.constant 0 : i32
    %c0_i32_1 = arith.constant 0 : i32
    %c0_i32_2 = arith.constant 0 : i32
    return %arg0, %c0_i32, %c0_i32_0, %c0_i32_1 : i32, i32, i32, i32
  }
}

module attributes {stable_mosaic.version = 11 : i64} {
  func.func @_matmul_bias_kernel(%arg0: i32, %arg1: i32, %arg2: memref<16x1024xbf16, #tpu.memory_space<vmem>>, %arg3: memref<1024x128xbf16, #tpu.memory_space<vmem>>, %arg4: memref<1x128xf32, #tpu.memory_space<vmem>>, %arg5: memref<16x128xf32, #tpu.memory_space<vmem>>) attributes {dimension_semantics = [#tpu.dimension_semantics<parallel>, #tpu.dimension_semantics<parallel>], iteration_bounds = array<i64: 1, 1>, scalar_prefetch = 0 : i64, scratch_operands = 0 : i64, tpu.core_type = #tpu.core_type<tc>, window_params = [{transform_indices = @transform_0, window_bounds = array<i64: 16, 1024>}, {transform_indices = @transform_1, window_bounds = array<i64: 1024, 128>}, {transform_indices = @transform_2, window_bounds = array<i64: 1, 128>}, {transform_indices = @transform_3, window_bounds = array<i64: 16, 128>}]} {
    %c0 = arith.constant 0 : index
    %c0_0 = arith.constant 0 : index
    %0 = vector.load %arg2[%c0, %c0_0] : memref<16x1024xbf16, #tpu.memory_space<vmem>>, vector<16x1024xbf16>
    %c0_1 = arith.constant 0 : index
    %c0_2 = arith.constant 0 : index
    %1 = vector.load %arg3[%c0_1, %c0_2] : memref<1024x128xbf16, #tpu.memory_space<vmem>>, vector<1024x128xbf16>
    %cst = arith.constant dense<0.000000e+00> : vector<16x128xf32>
    %2 = tpu.matmul %0, %1, %cst {dimension_numbers = #tpu.dot_dimension_numbers<[1], [0], [0], [1], [0, 0, 1, 1], [], []>} : vector<16x1024xbf16>, vector<1024x128xbf16>, vector<16x128xf32> -> vector<16x128xf32>
    %c0_3 = arith.constant 0 : index
    %c0_4 = arith.constant 0 : index
    %3 = vector.load %arg4[%c0_3, %c0_4] : memref<1x128xf32, #tpu.memory_space<vmem>>, vector<1x128xf32>
    %4 = vector.broadcast %3 : vector<1x128xf32> to vector<16x128xf32>
    %5 = arith.addf %2, %4 : vector<16x128xf32>
    %6 = arith.negf %5 : vector<16x128xf32>
    %7 = math.exp %6 : vector<16x128xf32>
    %cst_5 = arith.constant 1.000000e+00 : f32
    %8 = vector.broadcast %cst_5 : f32 to vector<16x128xf32>
    %9 = arith.addf %8, %7 : vector<16x128xf32>
    %10 = arith.divf %8, %9 : vector<16x128xf32>
    %c0_6 = arith.constant 0 : index
    %c0_7 = arith.constant 0 : index
    %11 = vector.load %arg5[%c0_6, %c0_7] : memref<16x128xf32, #tpu.memory_space<vmem>>, vector<16x128xf32>
    tpu.vector_store %arg5[%c0_6, %c0_7], %10 {strides = array<i32>} : memref<16x128xf32, #tpu.memory_space<vmem>>, vector<16x128xf32>,
    return
  }
  func.func @transform_0(%arg0: i32, %arg1: i32) -> (i32, i32) {
    %c0_i32 = arith.constant 0 : i32
    %c0_i32_0 = arith.constant 0 : i32
    return %arg0, %c0_i32 : i32, i32
  }
  func.func @transform_1(%arg0: i32, %arg1: i32) -> (i32, i32) {
    %c0_i32 = arith.constant 0 : i32
    %c0_i32_0 = arith.constant 0 : i32
    return %c0_i32, %arg1 : i32, i32
  }
  func.func @transform_2(%arg0: i32, %arg1: i32) -> (i32, i32) {
    %c0_i32 = arith.constant 0 : i32
    %c0_i32_0 = arith.constant 0 : i32
    return %c0_i32, %arg1 : i32, i32
  }
  func.func @transform_3(%arg0: i32, %arg1: i32) -> (i32, i32) {
    %c0_i32 = arith.constant 0 : i32
    return %arg0, %arg1 : i32, i32
  }
}

</mosaic_0001>

<bundles_post_ra>
// kernel: cnn_forward.7
= control target key start
LH: loop header
LB: loop body
LE: loop exit
PB: predicated region body
PF: predicated region fallthrough
CT: control target
= control target key end

     0   :  { %s1445_s12 = smov 0   ;;  %s1447_s13 = smov 0   ;;  %s1649_s0 = inlined_call_operand.vmem [shape: bf16[2560,128], index: 0, kind: input, shape index: {}]   ;;  %s1650_s1 = inlined_call_operand.vmem [shape: bf16[128,128], index: 1, kind: input, shape index: {}]   ;;  %s1651_s2 = inlined_call_operand.vmem [shape: f32[1,128], index: 2, kind: input, shape index: {}]   ;;  %s1652_s3 = inlined_call_operand.vmem [shape: bf16[2560,128], index: 3, kind: output, shape index: {}]  }
   0x1   :  { %s1449_s14 = smov 0  }
   0x2 LB: > { %s25_s15 = sadd.s32 1, %s1419_s13  ;;  %p954_p0 = scmp.ge.s32.totalorder %s1423_s14, 1  ;;  %s1423_s14 = sphi %s1449_s14, %s13_s14   ;;  %s1419_s13 = sphi %s1447_s13, %s1654_s13   ;;  %s1415_s12 = sphi %s1445_s12, %s1653_s12  }
   0x3   : > { %p27_p1 = scmp.ge.s32.totalorder %s25_s15, 5  ;;  %p169_p2 = scmp.lt.s32.totalorder %s1423_s14, 6 }
   0x5   : > { %s1656_s15 = smov (%p27_p1, %s25_s15), 0  ;;  %p170_p3 = pnand %p954_p0, %p169_p2 }
   0x6   : > { %s955_s24 = sshll.u32 (!%p170_p3), %s1415_s12, 6 }
   0x7   : > { %173 = sbr.rel (%p170_p3) target bundleno = 303 (0x12f), region = 32  ;;  %p204_p4 = scmp.lt.s32.totalorder (!%p170_p3), %s955_s24, 319 }
   0xc   : > { %v1160_v0 = vld [vmem:[%s1650_s1 + $0x38] sm:$0xff]  ;;  %v1159_v1 = vld [vmem:[%s1650_s1 + $0x30] sm:$0xff]  ;;  %v1158_v2 = vld [vmem:[%s1650_s1 + $0x28] sm:$0xff]  ;;  %s1658_s24 = smov (!%p204_p4, %s955_s24), 319 }
   0xd   : > { %549 = vmatpush.bf16.msra.mxu0 %v1160_v0  ;;  %1352 = vmatpush.bf16.msra.mxu1 %v1160_v0  ;;  %v1157_v3 = vld [vmem:[%s1650_s1 + $0x20] sm:$0xff]  ;;  %v1156_v4 = vld [vmem:[%s1650_s1 + $0x18] sm:$0xff]  ;;  %v1155_v5 = vld [vmem:[%s1650_s1 + $0x10] sm:$0xff]  ;;  %s956_s4 = sshll.u32 %s1658_s24, 2 }
   0xe   : > { %1353 = vmatpush.bf16.msra.mxu2 %v1160_v0  ;;  %1354 = vmatpush.bf16.msra.mxu3 %v1160_v0  ;;  %v1154_v6 = vld [vmem:[%s1650_s1 + $0x8] sm:$0xff]  ;;  %v1153_v7 = vld [vmem:[%s1650_s1] sm:$0xff]  ;;  %s1498_s9 = scalar_lea.vmem %s1649_s0, %s956_s4  ;;  %s1546_s17 = scalar_lea.vmem %s1652_s3, %s956_s4 }
   0xf   : > { %v1121_v8 = vld [vmem:[%s1498_s9] sm:$0xff]  ;;  %v1122_v12 = vld [vmem:[%s1498_s9 + $0x8] sm:$0xff]  ;;  %v1123_v16 = vld [vmem:[%s1498_s9 + $0x10] sm:$0xff] }
  0x10   : > { %v1129_v9 = vld [vmem:[%s1498_s9 + $0x40] sm:$0xff]  ;;  %v1130_v13 = vld [vmem:[%s1498_s9 + $0x48] sm:$0xff]  ;;  %v1131_v17 = vld [vmem:[%s1498_s9 + $0x50] sm:$0xff] }
  0x11   : > { %550 = vmatpush.bf16.msra.mxu0 %v1159_v1  ;;  %1355 = vmatpush.bf16.msra.mxu1 %v1159_v1  ;;  %v1137_v10 = vld [vmem:[%s1498_s9 + $0x80] sm:$0xff]  ;;  %v1138_v14 = vld [vmem:[%s1498_s9 + $0x88] sm:$0xff]  ;;  %v1139_v18 = vld [vmem:[%s1498_s9 + $0x90] sm:$0xff] }
  0x12   : > { %1356 = vmatpush.bf16.msra.mxu2 %v1159_v1  ;;  %1357 = vmatpush.bf16.msra.mxu3 %v1159_v1  ;;  %v1145_v11 = vld [vmem:[%s1498_s9 + $0xc0] sm:$0xff]  ;;  %v1146_v15 = vld [vmem:[%s1498_s9 + $0xc8] sm:$0xff]  ;;  %v1147_v19 = vld [vmem:[%s1498_s9 + $0xd0] sm:$0xff] }
  0x13   : > { %v1124_v20 = vld [vmem:[%s1498_s9 + $0x18] sm:$0xff]  ;;  %v1125_v24 = vld [vmem:[%s1498_s9 + $0x20] sm:$0xff]  ;;  %v1126_v28 = vld [vmem:[%s1498_s9 + $0x28] sm:$0xff] }
  0x14   : > { %v1132_v21 = vld [vmem:[%s1498_s9 + $0x58] sm:$0xff]  ;;  %v1133_v25 = vld [vmem:[%s1498_s9 + $0x60] sm:$0xff]  ;;  %v1134_v29 = vld [vmem:[%s1498_s9 + $0x68] sm:$0xff] }
  0x15   : > { %551 = vmatpush.bf16.msra.mxu0 %v1158_v2  ;;  %1358 = vmatpush.bf16.msra.mxu1 %v1158_v2  ;;  %v1140_v22 = vld [vmem:[%s1498_s9 + $0x98] sm:$0xff]  ;;  %v1141_v26 = vld [vmem:[%s1498_s9 + $0xa0] sm:$0xff]  ;;  %v1142_v30 = vld [vmem:[%s1498_s9 + $0xa8] sm:$0xff] }
  0x16   : > { %1359 = vmatpush.bf16.msra.mxu2 %v1158_v2  ;;  %1360 = vmatpush.bf16.msra.mxu3 %v1158_v2  ;;  %v1148_v23 = vld [vmem:[%s1498_s9 + $0xd8] sm:$0xff]  ;;  %v1149_v27 = vld [vmem:[%s1498_s9 + $0xe0] sm:$0xff]  ;;  %v1150_v31 = vld [vmem:[%s1498_s9 + $0xe8] sm:$0xff] }
  0x17   : > { %v1127_v32 = vld [vmem:[%s1498_s9 + $0x30] sm:$0xff]  ;;  %v1128_v36 = vld [vmem:[%s1498_s9 + $0x38] sm:$0xff]  ;;  %v1535_v42 = vld [vmem:[%s1651_s2] ss:$0 sm:$0xff] }
  0x18   : > { %v1135_v33 = vld [vmem:[%s1498_s9 + $0x70] sm:$0xff]  ;;  %v1136_v37 = vld [vmem:[%s1498_s9 + $0x78] sm:$0xff] }
  0x19   : > { %552 = vmatpush.bf16.msra.mxu0 %v1157_v3  ;;  %1361 = vmatpush.bf16.msra.mxu1 %v1157_v3  ;;  %v1143_v34 = vld [vmem:[%s1498_s9 + $0xb0] sm:$0xff]  ;;  %v1144_v38 = vld [vmem:[%s1498_s9 + $0xb8] sm:$0xff] }
  0x1a   : > { %1362 = vmatpush.bf16.msra.mxu2 %v1157_v3  ;;  %1363 = vmatpush.bf16.msra.mxu3 %v1157_v3  ;;  %v1151_v35 = vld [vmem:[%s1498_s9 + $0xf0] sm:$0xff]  ;;  %v1152_v39 = vld [vmem:[%s1498_s9 + $0xf8] sm:$0xff] }
  0x1d   : > { %553 = vmatpush.bf16.msra.mxu0 %v1156_v4  ;;  %1364 = vmatpush.bf16.msra.mxu1 %v1156_v4 }
  0x1e   : > { %1365 = vmatpush.bf16.msra.mxu2 %v1156_v4  ;;  %1366 = vmatpush.bf16.msra.mxu3 %v1156_v4 }
  0x21   : > { %554 = vmatpush.bf16.msra.mxu0 %v1155_v5  ;;  %1367 = vmatpush.bf16.msra.mxu1 %v1155_v5 }
  0x22   : > { %1368 = vmatpush.bf16.msra.mxu2 %v1155_v5  ;;  %1369 = vmatpush.bf16.msra.mxu3 %v1155_v5 }
  0x25   : > { %555 = vmatpush.bf16.msra.mxu0 %v1154_v6  ;;  %1370 = vmatpush.bf16.msra.mxu1 %v1154_v6 }
  0x26   : > { %1371 = vmatpush.bf16.msra.mxu2 %v1154_v6  ;;  %1372 = vmatpush.bf16.msra.mxu3 %v1154_v6 }
  0x29   : > { %556 = vmatpush.bf16.msra.mxu0 %v1153_v7  ;;  %1373 = vmatpush.bf16.msra.mxu1 %v1153_v7 }
  0x2a   : > { %1374 = vmatpush.bf16.msra.mxu2 %v1153_v7  ;;  %1375 = vmatpush.bf16.msra.mxu3 %v1153_v7 }
  0x2c   : > { %557 = vmatmul.bf16.vlgmr.msra.gmra.mxu0 %v1121_v8  ;;  %597 = vmatmul.bf16.vlgmr.msra.gmra.mxu1 %v1129_v9 }
  0x2d   : > { %637 = vmatmul.bf16.vlgmr.msra.gmra.mxu2 %v1137_v10  ;;  %677 = vmatmul.bf16.vlgmr.msra.gmra.mxu3 %v1145_v11 }
  0x3c   : > { %562 = vmatmul.bf16.gmra.mxu0 %v1122_v12  ;;  %602 = vmatmul.bf16.gmra.mxu1 %v1130_v13 }
  0x3d   : > { %642 = vmatmul.bf16.gmra.mxu2 %v1138_v14  ;;  %682 = vmatmul.bf16.gmra.mxu3 %v1146_v15 }
  0x4c   : > { %567 = vmatmul.bf16.gmra.mxu0 %v1123_v16  ;;  %607 = vmatmul.bf16.gmra.mxu1 %v1131_v17 }
  0x4d   : > { %647 = vmatmul.bf16.gmra.mxu2 %v1139_v18  ;;  %687 = vmatmul.bf16.gmra.mxu3 %v1147_v19 }
  0x5c   : > { %572 = vmatmul.bf16.gmra.mxu0 %v1124_v20  ;;  %612 = vmatmul.bf16.gmra.mxu1 %v1132_v21 }
  0x5d   : > { %652 = vmatmul.bf16.gmra.mxu2 %v1140_v22  ;;  %692 = vmatmul.bf16.gmra.mxu3 %v1148_v23 }
  0x6c   : > { %577 = vmatmul.bf16.gmra.mxu0 %v1125_v24  ;;  %617 = vmatmul.bf16.gmra.mxu1 %v1133_v25 }
  0x6d   : > { %657 = vmatmul.bf16.gmra.mxu2 %v1141_v26  ;;  %697 = vmatmul.bf16.gmra.mxu3 %v1149_v27 }
  0x7c   : > { %582 = vmatmul.bf16.gmra.mxu0 %v1126_v28  ;;  %622 = vmatmul.bf16.gmra.mxu1 %v1134_v29 }
  0x7d   : > { %662 = vmatmul.bf16.gmra.mxu2 %v1142_v30  ;;  %702 = vmatmul.bf16.gmra.mxu3 %v1150_v31 }
  0x8c   : > { %587 = vmatmul.bf16.gmra.mxu0 %v1127_v32  ;;  %627 = vmatmul.bf16.gmra.mxu1 %v1135_v33 }
  0x8d   : > { %667 = vmatmul.bf16.gmra.mxu2 %v1143_v34  ;;  %707 = vmatmul.bf16.gmra.mxu3 %v1151_v35 }
  0x9c   : > { %592 = vmatmul.bf16.gmra.mxu0 %v1128_v36  ;;  %632 = vmatmul.bf16.gmra.mxu1 %v1136_v37 }
  0x9d   : > { %672 = vmatmul.bf16.gmra.mxu2 %v1144_v38  ;;  %712 = vmatmul.bf16.gmra.mxu3 %v1152_v39 }
  0xa9   : > { %v558_v40 = vpop.f32.mrf.mxu0  ;;  %v598_v41 = vpop.f32.mrf.mxu1 }
  0xaa   : > { %v559_v47 = vadd.f32 %v1535_v42, %v558_v40  ;;  %v599_v48 = vadd.f32 %v1535_v42, %v598_v41 }
  0xb0   : > { %v638_v43 = vpop.f32.mrf.mxu2  ;;  %v678_v44 = vpop.f32.mrf.mxu3 }
  0xb1   : > { %v560_v45 = vpop.f32.mrf.mxu0  ;;  %v600_v46 = vpop.f32.mrf.mxu1  ;;  %v639_v55 = vadd.f32 %v1535_v42, %v638_v43  ;;  %v679_v56 = vadd.f32 %v1535_v42, %v678_v44 }
  0xb2   : > { %v561_v49 = vadd.f32 %v1535_v42, %v560_v45  ;;  %v601_v50 = vadd.f32 %v1535_v42, %v600_v46 }
  0xb4   : > { %v1164_v51 = vpack.c.bf16 %v561_v49, %v559_v47  ;;  %v1204_v52 = vpack.c.bf16 %v601_v50, %v599_v48 }
  0xb6   : > { %1165 = vst [vmem:[%s1546_s17] sm:$0xff] %v1164_v51  }
  0xb7   : > { %1328 = vst [vmem:[%s1546_s17 + $0x40] sm:$0xff] %v1204_v52  }
  0xb8   : > { %v640_v53 = vpop.f32.mrf.mxu2  ;;  %v680_v54 = vpop.f32.mrf.mxu3 }
  0xb9   : > { %v641_v57 = vadd.f32 %v1535_v42, %v640_v53  ;;  %v681_v58 = vadd.f32 %v1535_v42, %v680_v54  ;;  %v563_v59 = vpop.f32.mrf.mxu0  ;;  %v603_v60 = vpop.f32.mrf.mxu1 }
  0xba   : > { %v564_v3 = vadd.f32 %v1535_v42, %v563_v59  ;;  %v604_v4 = vadd.f32 %v1535_v42, %v603_v60 }
  0xbb   : > { %v1244_v61 = vpack.c.bf16 %v641_v57, %v639_v55  ;;  %v1284_v62 = vpack.c.bf16 %v681_v58, %v679_v56 }
  0xbd   : > { %1336 = vst [vmem:[%s1546_s17 + $0x80] sm:$0xff] %v1244_v61  }
  0xbe   : > { %1344 = vst [vmem:[%s1546_s17 + $0xc0] sm:$0xff] %v1284_v62  }
  0xc0   : > { %v643_v63 = vpop.f32.mrf.mxu2  ;;  %v683_v0 = vpop.f32.mrf.mxu3 }
  0xc1   : > { %v565_v1 = vpop.f32.mrf.mxu0  ;;  %v605_v2 = vpop.f32.mrf.mxu1  ;;  %v644_v11 = vadd.f32 %v1535_v42, %v643_v63  ;;  %v684_v12 = vadd.f32 %v1535_v42, %v683_v0 }
  0xc2   : > { %v566_v5 = vadd.f32 %v1535_v42, %v565_v1  ;;  %v606_v6 = vadd.f32 %v1535_v42, %v605_v2 }
  0xc4   : > { %v1169_v7 = vpack.c.bf16 %v566_v5, %v564_v3  ;;  %v1209_v8 = vpack.c.bf16 %v606_v6, %v604_v4 }
  0xc6   : > { %1321 = vst [vmem:[%s1546_s17 + $0x8] sm:$0xff] %v1169_v7  }
  0xc7   : > { %1329 = vst [vmem:[%s1546_s17 + $0x48] sm:$0xff] %v1209_v8  }
  0xc8   : > { %v645_v9 = vpop.f32.mrf.mxu2  ;;  %v685_v10 = vpop.f32.mrf.mxu3 }
  0xc9   : > { %v646_v13 = vadd.f32 %v1535_v42, %v645_v9  ;;  %v686_v14 = vadd.f32 %v1535_v42, %v685_v10  ;;  %v568_v15 = vpop.f32.mrf.mxu0  ;;  %v608_v16 = vpop.f32.mrf.mxu1 }
  0xca   : > { %v569_v23 = vadd.f32 %v1535_v42, %v568_v15  ;;  %v609_v24 = vadd.f32 %v1535_v42, %v608_v16 }
  0xcb   : > { %v1249_v17 = vpack.c.bf16 %v646_v13, %v644_v11  ;;  %v1289_v18 = vpack.c.bf16 %v686_v14, %v684_v12 }
  0xcd   : > { %1337 = vst [vmem:[%s1546_s17 + $0x88] sm:$0xff] %v1249_v17  }
  0xce   : > { %1345 = vst [vmem:[%s1546_s17 + $0xc8] sm:$0xff] %v1289_v18  }
  0xd0   : > { %v648_v19 = vpop.f32.mrf.mxu2  ;;  %v688_v20 = vpop.f32.mrf.mxu3 }
  0xd1   : > { %v570_v21 = vpop.f32.mrf.mxu0  ;;  %v610_v22 = vpop.f32.mrf.mxu1  ;;  %v649_v31 = vadd.f32 %v1535_v42, %v648_v19  ;;  %v689_v32 = vadd.f32 %v1535_v42, %v688_v20 }
  0xd2   : > { %v571_v25 = vadd.f32 %v1535_v42, %v570_v21  ;;  %v611_v26 = vadd.f32 %v1535_v42, %v610_v22 }
  0xd4   : > { %v1174_v27 = vpack.c.bf16 %v571_v25, %v569_v23  ;;  %v1214_v28 = vpack.c.bf16 %v611_v26, %v609_v24 }
  0xd6   : > { %1322 = vst [vmem:[%s1546_s17 + $0x10] sm:$0xff] %v1174_v27  }
  0xd7   : > { %1330 = vst [vmem:[%s1546_s17 + $0x50] sm:$0xff] %v1214_v28  }
  0xd8   : > { %v650_v29 = vpop.f32.mrf.mxu2  ;;  %v690_v30 = vpop.f32.mrf.mxu3 }
  0xd9   : > { %v651_v33 = vadd.f32 %v1535_v42, %v650_v29  ;;  %v691_v34 = vadd.f32 %v1535_v42, %v690_v30  ;;  %v573_v35 = vpop.f32.mrf.mxu0  ;;  %v613_v36 = vpop.f32.mrf.mxu1 }
  0xda   : > { %v574_v44 = vadd.f32 %v1535_v42, %v573_v35  ;;  %v614_v45 = vadd.f32 %v1535_v42, %v613_v36 }
  0xdb   : > { %v1254_v37 = vpack.c.bf16 %v651_v33, %v649_v31  ;;  %v1294_v38 = vpack.c.bf16 %v691_v34, %v689_v32 }
  0xdd   : > { %1338 = vst [vmem:[%s1546_s17 + $0x90] sm:$0xff] %v1254_v37  }
  0xde   : > { %1346 = vst [vmem:[%s1546_s17 + $0xd0] sm:$0xff] %v1294_v38  }
  0xe0   : > { %v653_v39 = vpop.f32.mrf.mxu2  ;;  %v693_v40 = vpop.f32.mrf.mxu3 }
  0xe1   : > { %v575_v41 = vpop.f32.mrf.mxu0  ;;  %v615_v43 = vpop.f32.mrf.mxu1  ;;  %v654_v52 = vadd.f32 %v1535_v42, %v653_v39  ;;  %v694_v53 = vadd.f32 %v1535_v42, %v693_v40 }
  0xe2   : > { %v576_v46 = vadd.f32 %v1535_v42, %v575_v41  ;;  %v616_v47 = vadd.f32 %v1535_v42, %v615_v43 }
  0xe4   : > { %v1179_v48 = vpack.c.bf16 %v576_v46, %v574_v44  ;;  %v1219_v49 = vpack.c.bf16 %v616_v47, %v614_v45 }
  0xe6   : > { %1323 = vst [vmem:[%s1546_s17 + $0x18] sm:$0xff] %v1179_v48  }
  0xe7   : > { %1331 = vst [vmem:[%s1546_s17 + $0x58] sm:$0xff] %v1219_v49  }
  0xe8   : > { %v655_v50 = vpop.f32.mrf.mxu2  ;;  %v695_v51 = vpop.f32.mrf.mxu3 }
  0xe9   : > { %v656_v54 = vadd.f32 %v1535_v42, %v655_v50  ;;  %v696_v55 = vadd.f32 %v1535_v42, %v695_v51  ;;  %v578_v56 = vpop.f32.mrf.mxu0  ;;  %v618_v57 = vpop.f32.mrf.mxu1 }
  0xea   : > { %v579_v0 = vadd.f32 %v1535_v42, %v578_v56  ;;  %v619_v1 = vadd.f32 %v1535_v42, %v618_v57 }
  0xeb   : > { %v1259_v58 = vpack.c.bf16 %v656_v54, %v654_v52  ;;  %v1299_v59 = vpack.c.bf16 %v696_v55, %v694_v53 }
  0xed   : > { %1339 = vst [vmem:[%s1546_s17 + $0x98] sm:$0xff] %v1259_v58  }
  0xee   : > { %1347 = vst [vmem:[%s1546_s17 + $0xd8] sm:$0xff] %v1299_v59  }
  0xf0   : > { %v658_v60 = vpop.f32.mrf.mxu2  ;;  %v698_v61 = vpop.f32.mrf.mxu3 }
  0xf1   : > { %v580_v62 = vpop.f32.mrf.mxu0  ;;  %v620_v63 = vpop.f32.mrf.mxu1  ;;  %v659_v8 = vadd.f32 %v1535_v42, %v658_v60  ;;  %v699_v9 = vadd.f32 %v1535_v42, %v698_v61 }
  0xf2   : > { %v581_v2 = vadd.f32 %v1535_v42, %v580_v62  ;;  %v621_v3 = vadd.f32 %v1535_v42, %v620_v63 }
  0xf4   : > { %v1184_v4 = vpack.c.bf16 %v581_v2, %v579_v0  ;;  %v1224_v5 = vpack.c.bf16 %v621_v3, %v619_v1 }
  0xf6   : > { %1324 = vst [vmem:[%s1546_s17 + $0x20] sm:$0xff] %v1184_v4  }
  0xf7   : > { %1332 = vst [vmem:[%s1546_s17 + $0x60] sm:$0xff] %v1224_v5  }
  0xf8   : > { %v660_v6 = vpop.f32.mrf.mxu2  ;;  %v700_v7 = vpop.f32.mrf.mxu3 }
  0xf9   : > { %v661_v10 = vadd.f32 %v1535_v42, %v660_v6  ;;  %v701_v11 = vadd.f32 %v1535_v42, %v700_v7  ;;  %v583_v12 = vpop.f32.mrf.mxu0  ;;  %v623_v13 = vpop.f32.mrf.mxu1 }
  0xfa   : > { %v584_v20 = vadd.f32 %v1535_v42, %v583_v12  ;;  %v624_v21 = vadd.f32 %v1535_v42, %v623_v13 }
  0xfb   : > { %v1264_v14 = vpack.c.bf16 %v661_v10, %v659_v8  ;;  %v1304_v15 = vpack.c.bf16 %v701_v11, %v699_v9 }
  0xfd   : > { %1340 = vst [vmem:[%s1546_s17 + $0xa0] sm:$0xff] %v1264_v14  }
  0xfe   : > { %1348 = vst [vmem:[%s1546_s17 + $0xe0] sm:$0xff] %v1304_v15  }
 0x100   : > { %v663_v16 = vpop.f32.mrf.mxu2  ;;  %v703_v17 = vpop.f32.mrf.mxu3 }
 0x101   : > { %v585_v18 = vpop.f32.mrf.mxu0  ;;  %v625_v19 = vpop.f32.mrf.mxu1  ;;  %v664_v28 = vadd.f32 %v1535_v42, %v663_v16  ;;  %v704_v29 = vadd.f32 %v1535_v42, %v703_v17 }
 0x102   : > { %v586_v22 = vadd.f32 %v1535_v42, %v585_v18  ;;  %v626_v23 = vadd.f32 %v1535_v42, %v625_v19 }
 0x104   : > { %v1189_v24 = vpack.c.bf16 %v586_v22, %v584_v20  ;;  %v1229_v25 = vpack.c.bf16 %v626_v23, %v624_v21 }
 0x106   : > { %1325 = vst [vmem:[%s1546_s17 + $0x28] sm:$0xff] %v1189_v24  }
 0x107   : > { %1333 = vst [vmem:[%s1546_s17 + $0x68] sm:$0xff] %v1229_v25  }
 0x108   : > { %v665_v26 = vpop.f32.mrf.mxu2  ;;  %v705_v27 = vpop.f32.mrf.mxu3 }
 0x109   : > { %v666_v30 = vadd.f32 %v1535_v42, %v665_v26  ;;  %v706_v31 = vadd.f32 %v1535_v42, %v705_v27  ;;  %v588_v32 = vpop.f32.mrf.mxu0  ;;  %v628_v33 = vpop.f32.mrf.mxu1 }
 0x10a   : > { %v589_v40 = vadd.f32 %v1535_v42, %v588_v32  ;;  %v629_v41 = vadd.f32 %v1535_v42, %v628_v33 }
 0x10b   : > { %v1269_v34 = vpack.c.bf16 %v666_v30, %v664_v28  ;;  %v1309_v35 = vpack.c.bf16 %v706_v31, %v704_v29 }
 0x10d   : > { %1341 = vst [vmem:[%s1546_s17 + $0xa8] sm:$0xff] %v1269_v34  }
 0x10e   : > { %1349 = vst [vmem:[%s1546_s17 + $0xe8] sm:$0xff] %v1309_v35  }
 0x110   : > { %v668_v36 = vpop.f32.mrf.mxu2  ;;  %v708_v37 = vpop.f32.mrf.mxu3 }
 0x111   : > { %v590_v38 = vpop.f32.mrf.mxu0  ;;  %v630_v39 = vpop.f32.mrf.mxu1  ;;  %v669_v49 = vadd.f32 %v1535_v42, %v668_v36  ;;  %v709_v50 = vadd.f32 %v1535_v42, %v708_v37 }
 0x112   : > { %v591_v43 = vadd.f32 %v1535_v42, %v590_v38  ;;  %v631_v44 = vadd.f32 %v1535_v42, %v630_v39 }
 0x114   : > { %v1194_v45 = vpack.c.bf16 %v591_v43, %v589_v40  ;;  %v1234_v46 = vpack.c.bf16 %v631_v44, %v629_v41 }
 0x116   : > { %1326 = vst [vmem:[%s1546_s17 + $0x30] sm:$0xff] %v1194_v45  }
 0x117   : > { %1334 = vst [vmem:[%s1546_s17 + $0x70] sm:$0xff] %v1234_v46  }
 0x118   : > { %v670_v47 = vpop.f32.mrf.mxu2  ;;  %v710_v48 = vpop.f32.mrf.mxu3 }
 0x119   : > { %v671_v51 = vadd.f32 %v1535_v42, %v670_v47  ;;  %v711_v52 = vadd.f32 %v1535_v42, %v710_v48  ;;  %v593_v53 = vpop.f32.mrf.mxu0  ;;  %v633_v54 = vpop.f32.mrf.mxu1 }
 0x11a   : > { %v594_v61 = vadd.f32 %v1535_v42, %v593_v53  ;;  %v634_v62 = vadd.f32 %v1535_v42, %v633_v54 }
 0x11b   : > { %v1274_v55 = vpack.c.bf16 %v671_v51, %v669_v49  ;;  %v1314_v56 = vpack.c.bf16 %v711_v52, %v709_v50 }
 0x11d   : > { %1342 = vst [vmem:[%s1546_s17 + $0xb0] sm:$0xff] %v1274_v55  }
 0x11e   : > { %1350 = vst [vmem:[%s1546_s17 + $0xf0] sm:$0xff] %v1314_v56  }
 0x120   : > { %v673_v57 = vpop.f32.mrf.mxu2  ;;  %v713_v58 = vpop.f32.mrf.mxu3 }
 0x121   : > { %v595_v59 = vpop.f32.mrf.mxu0  ;;  %v635_v60 = vpop.f32.mrf.mxu1  ;;  %v674_v5 = vadd.f32 %v1535_v42, %v673_v57  ;;  %v714_v6 = vadd.f32 %v1535_v42, %v713_v58 }
 0x122   : > { %v596_v63 = vadd.f32 %v1535_v42, %v595_v59  ;;  %v636_v0 = vadd.f32 %v1535_v42, %v635_v60 }
 0x124   : > { %v1199_v1 = vpack.c.bf16 %v596_v63, %v594_v61  ;;  %v1239_v2 = vpack.c.bf16 %v636_v0, %v634_v62 }
 0x126   : > { %1327 = vst [vmem:[%s1546_s17 + $0x38] sm:$0xff] %v1199_v1  }
 0x127   : > { %1335 = vst [vmem:[%s1546_s17 + $0x78] sm:$0xff] %v1239_v2  }
 0x128   : > { %v675_v3 = vpop.f32.mrf.mxu2  ;;  %v715_v4 = vpop.f32.mrf.mxu3 }
 0x129   : > { %v676_v7 = vadd.f32 %v1535_v42, %v675_v3  ;;  %v716_v8 = vadd.f32 %v1535_v42, %v715_v4 }
 0x12b   : > { %v1279_v9 = vpack.c.bf16 %v676_v7, %v674_v5  ;;  %v1319_v10 = vpack.c.bf16 %v716_v8, %v714_v6 }
 0x12d   : > { %1343 = vst [vmem:[%s1546_s17 + $0xb8] sm:$0xff] %v1279_v9  }
 0x12e   : > { %1351 = vst [vmem:[%s1546_s17 + $0xf8] sm:$0xff] %v1319_v10  }
 0x12f PF: > { %s13_s14 = sadd.s32 1, %s1423_s14   ;;  %s1653_s12 = smov %s1419_s13 }
 0x130   : > { %p10_p5 = scmp.ge.s32.totalorder %s13_s14, 7   ;;  %s1654_s13 = smov %s1656_s15 }
 0x132   :  { %12 = sbr.rel (!%p10_p5) target bundleno = 2 (0x2), region = 68 }

// kernel: cnn_forward.8
= control target key start
LH: loop header
LB: loop body
LE: loop exit
PB: predicated region body
PF: predicated region fallthrough
CT: control target
= control target key end

     0   :  { %s911_s6 = smov 0   ;;  %s1137_s0 = inlined_call_operand.vmem [shape: bf16[2,34,17,256], index: 0, kind: input, shape index: {}]   ;;  %s1138_s1 = inlined_call_operand.vmem [shape: bf16[2,17,17,128], index: 1, kind: output, shape index: {}]  }
   0x1 LB: > { %s821_s7 = sadd.s32 4294967295, %s899_s6   ;;  %p825_p0 = scmp.ge.s32.totalorder %s899_s6, 1  ;;  %s899_s6 = sphi %s911_s6, %s11_s6  }
   0x2   : > { %p87_p1 = scmp.lt.s32.totalorder %s899_s6, 3 }
   0x4   : > { %p88_p2 = pnand %p825_p0, %p87_p1 }
   0x5   : > { %p107_p3 = scmp.lt.s32.totalorder (!%p88_p2), %s821_s7, 1 }
   0x6   : > { %91 = sbr.rel (%p88_p2) target bundleno = 141 (0x8d), region = 24 }
   0xb   : > { %s1142_s7 = smov (!%p107_p3, %s821_s7), 1  ;;  %vm680_vm0 = vcmask 1040384   ;;  %vm681_vm1 = vsmask.f32 256 }
   0xc   : > { %s883_s8 = smul.u32 816, %s1142_s7  ;;  %vm949_vm2 = vmand %vm680_vm0, %vm681_vm1 }
   0xd   : > { %s884_s12 = smul.u32 204, %s1142_s7 }
   0xe   : > { %s925_s11 = scalar_lea.vmem %s1137_s0, %s883_s8 }
   0xf   : > { %v117_v0 = vld [vmem:[%s925_s11] sm:$0xff]  ;;  %v118_v1 = vld [vmem:[%s925_s11 + $0x8] sm:$0xff]  ;;  %v120_v2 = vld [vmem:[%s925_s11 + $0x18] sm:$0xff]  ;;  %s942_s15 = scalar_lea.vmem %s1138_s1, %s884_s12 }
  0x10   : > { %v121_v3 = vld [vmem:[%s925_s11 + $0x20] sm:$0xff]  ;;  %v219_v4 = vunpack.c.l.bf16 %v117_v0  ;;  %v220_v5 = vunpack.c.h.bf16 %v117_v0  ;;  %v221_v6 = vunpack.c.l.bf16 %v118_v1  ;;  %v222_v7 = vunpack.c.h.bf16 %v118_v1  ;;  %v119_v8 = vld [vmem:[%s925_s11 + $0x10] sm:$0x11]  ;;  %v122_v9 = vld [vmem:[%s925_s11 + $0x28] sm:$0x11] }
  0x11   : > { %v225_v10 = vunpack.c.l.bf16 %v120_v2  ;;  %v226_v11 = vunpack.c.h.bf16 %v120_v2  ;;  %v227_v12 = vunpack.c.l.bf16 %v121_v3  ;;  %v228_v13 = vunpack.c.h.bf16 %v121_v3  ;;  %v123_v14 = vld [vmem:[%s925_s11 + $0x30] sm:$0xff]  ;;  %v126_v19 = vld [vmem:[%s925_s11 + $0x48] sm:$0xff]  ;;  %v124_v24 = vld [vmem:[%s925_s11 + $0x38] sm:$0xff] }
  0x12   : > { %v223_v15 = vunpack.c.l.bf16 %v119_v8  ;;  %v224_v16 = vunpack.c.h.bf16 %v119_v8  ;;  %v229_v17 = vunpack.c.l.bf16 %v122_v9  ;;  %v230_v18 = vunpack.c.h.bf16 %v122_v9  ;;  %v127_v25 = vld [vmem:[%s925_s11 + $0x50] sm:$0xff]  ;;  %v125_v34 = vld [vmem:[%s925_s11 + $0x40] sm:$0x11]  ;;  %v128_v39 = vld [vmem:[%s925_s11 + $0x58] sm:$0x11] }
  0x13   : > { %v423_v20 = vmax.f32 %v219_v4, %v225_v10  ;;  %v424_v21 = vmax.f32 %v220_v5, %v226_v11  ;;  %v425_v22 = vmax.f32 %v221_v6, %v227_v12  ;;  %v426_v23 = vmax.f32 %v222_v7, %v228_v13  ;;  %v129_v44 = vld [vmem:[%s925_s11 + $0x60] sm:$0xff]  ;;  %v130_v49 = vld [vmem:[%s925_s11 + $0x68] sm:$0xff]  ;;  %v132_v59 = vld [vmem:[%s925_s11 + $0x78] sm:$0xff] }
  0x14   : > { %v427_v26 = vmax.f32 %v223_v15, %v229_v17  ;;  %v428_v27 = vmax.f32 %v224_v16, %v230_v18  ;;  %v231_v28 = vunpack.c.l.bf16 %v123_v14  ;;  %v232_v29 = vunpack.c.h.bf16 %v123_v14  ;;  %v683_v52 = vld [vmem:[%s942_s15 + $0x8] sm:$0x1]  ;;  %v133_v60 = vld [vmem:[%s925_s11 + $0x80] sm:$0xff]  ;;  %v131_v2 = vld [vmem:[%s925_s11 + $0x70] sm:$0x11] }
  0x15   : > { %v525_v30 = vmax.f32 %v423_v20, %v424_v21  ;;  %v526_v31 = vmax.f32 %v425_v22, %v426_v23  ;;  %v237_v32 = vunpack.c.l.bf16 %v126_v19  ;;  %v238_v33 = vunpack.c.h.bf16 %v126_v19  ;;  %v134_v11 = vld [vmem:[%s925_s11 + $0x88] sm:$0x11]  ;;  %v135_v16 = vld [vmem:[%s925_s11 + $0x90] sm:$0xff] }
  0x16   : > { %v527_v35 = vmax.f32 %v427_v26, %v428_v27  ;;  %v233_v36 = vunpack.c.l.bf16 %v124_v24  ;;  %v234_v37 = vunpack.c.h.bf16 %v124_v24  ;;  %v239_v38 = vunpack.c.l.bf16 %v127_v25  ;;  %v138_v21 = vld [vmem:[%s925_s11 + $0xa8] sm:$0xff]  ;;  %v136_v26 = vld [vmem:[%s925_s11 + $0x98] sm:$0xff]  ;;  %v688_v27 = vld [vmem:[%s942_s15 + $0x14] sm:$0x1] }
  0x17   : > { %v576_v40 = vmax.f32 %v525_v30, 0.0  ;;  %v577_v41 = vmax.f32 %v526_v31, 0.0  ;;  %v429_v42 = vmax.f32 %v231_v28, %v237_v32  ;;  %v430_v43 = vmax.f32 %v232_v29, %v238_v33 }
  0x18   : > { %v578_v45 = vmax.f32 %v527_v35, 0.0  ;;  %v240_v46 = vunpack.c.h.bf16 %v127_v25  ;;  %v431_v47 = vmax.f32 %v233_v36, %v239_v38  ;;  %v235_v48 = vunpack.c.l.bf16 %v125_v34  ;;  %v139_v36 = vld [vmem:[%s925_s11 + $0xb0] sm:$0xff] }
  0x19   : > { %v833_v50 = vpack.c.bf16 %v577_v41, %v576_v40  ;;  %v528_v53 = vmax.f32 %v429_v42, %v430_v43  ;;  %v236_v54 = vunpack.c.h.bf16 %v125_v34  ;;  %v241_v55 = vunpack.c.l.bf16 %v128_v39  ;;  %v137_v41 = vld [vmem:[%s925_s11 + $0xa0] sm:$0x11]  ;;  %v140_v42 = vld [vmem:[%s925_s11 + $0xb8] sm:$0x11] }
  0x1a   : > { %v629_v56 = vpack.c.bf16 %v578_v45, %v578_v45  ;;  %v432_v57 = vmax.f32 %v234_v37, %v240_v46  ;;  %v242_v58 = vunpack.c.h.bf16 %v128_v39  ;;  %v243_v61 = vunpack.c.l.bf16 %v129_v44 }
  0x1b   : > { %834 = vst [vmem:[%s942_s15] sm:$0xff] %v833_v50   ;;  %v579_v62 = vmax.f32 %v528_v53, 0.0  ;;  %v433_v63 = vmax.f32 %v235_v48, %v241_v55  ;;  %v244_v0 = vunpack.c.h.bf16 %v129_v44  ;;  %v245_v1 = vunpack.c.l.bf16 %v130_v49 }
  0x1c   : > { %v684_v3 = vsel %vm949_vm2, %v629_v56, %v683_v52  ;;  %v529_v4 = vmax.f32 %v431_v47, %v432_v57  ;;  %v434_v5 = vmax.f32 %v236_v54, %v242_v58  ;;  %v246_v6 = vunpack.c.h.bf16 %v130_v49  ;;  %v141_v52 = vld [vmem:[%s925_s11 + $0xc0] sm:$0xff]  ;;  %v142_v57 = vld [vmem:[%s925_s11 + $0xc8] sm:$0xff] }
  0x1d   : > { %685 = vst [vmem:[%s942_s15 + $0x8] sm:$0x1] %v684_v3  ;;  %v630_v7 = vpack.c.bf16 %v579_v62, %v579_v62  ;;  %v249_v8 = vunpack.c.l.bf16 %v132_v59  ;;  %v250_v9 = vunpack.c.h.bf16 %v132_v59  ;;  %v251_v10 = vunpack.c.l.bf16 %v133_v60  ;;  %v144_v62 = vld [vmem:[%s925_s11 + $0xd8] sm:$0xff] }
  0x1e   : > { %v580_v12 = vmax.f32 %v529_v4, 0.0  ;;  %v530_v13 = vmax.f32 %v433_v63, %v434_v5  ;;  %v252_v14 = vunpack.c.h.bf16 %v133_v60  ;;  %v247_v15 = vunpack.c.l.bf16 %v131_v2  ;;  %v693_v63 = vld [vmem:[%s942_s15 + $0x20] sm:$0x1] }
  0x1f   : > { %686 = vst [vmem:[%s942_s15 + $0xc] sm:$0xf] %v630_v7  ;;  %v435_v17 = vmax.f32 %v243_v61, %v249_v8  ;;  %v436_v18 = vmax.f32 %v244_v0, %v250_v9  ;;  %v437_v19 = vmax.f32 %v245_v1, %v251_v10  ;;  %v248_v20 = vunpack.c.h.bf16 %v131_v2  ;;  %v145_v2 = vld [vmem:[%s925_s11 + $0xe0] sm:$0xff] }
  0x20   : > { %v631_v22 = vpack.c.bf16 %v580_v12, %v580_v12  ;;  %v581_v23 = vmax.f32 %v530_v13, 0.0  ;;  %v438_v24 = vmax.f32 %v246_v6, %v252_v14  ;;  %v253_v25 = vunpack.c.l.bf16 %v134_v11  ;;  %v143_v13 = vld [vmem:[%s925_s11 + $0xd0] sm:$0x11] }
  0x21   : > { %v531_v28 = vmax.f32 %v435_v17, %v436_v18  ;;  %v254_v29 = vunpack.c.h.bf16 %v134_v11  ;;  %v255_v30 = vunpack.c.l.bf16 %v135_v16  ;;  %v256_v31 = vunpack.c.h.bf16 %v135_v16  ;;  %v146_v18 = vld [vmem:[%s925_s11 + $0xe8] sm:$0x11] }
  0x22   : > { %687 = vst [vmem:[%s942_s15 + $0x10] sm:$0xf] %v631_v22  ;;  %v632_v32 = vpack.c.bf16 %v581_v23, %v581_v23  ;;  %v532_v33 = vmax.f32 %v437_v19, %v438_v24  ;;  %v439_v34 = vmax.f32 %v247_v15, %v253_v25  ;;  %v261_v35 = vunpack.c.l.bf16 %v138_v21  ;;  %v147_v23 = vld [vmem:[%s925_s11 + $0xf0] sm:$0xff]  ;;  %v150_v24 = vld [vmem:[%s925_s11 + $0x108] sm:$0xff] }
  0x23   : > { %v582_v37 = vmax.f32 %v531_v28, 0.0  ;;  %v440_v38 = vmax.f32 %v248_v20, %v254_v29  ;;  %v262_v39 = vunpack.c.h.bf16 %v138_v21  ;;  %v257_v40 = vunpack.c.l.bf16 %v136_v26 }
  0x24   : > { %v689_v43 = vsel %vm949_vm2, %v632_v32, %v688_v27  ;;  %v583_v44 = vmax.f32 %v532_v33, 0.0  ;;  %v441_v45 = vmax.f32 %v255_v30, %v261_v35  ;;  %v258_v46 = vunpack.c.h.bf16 %v136_v26  ;;  %v148_v33 = vld [vmem:[%s925_s11 + $0xf8] sm:$0xff] }
  0x25   : > { %690 = vst [vmem:[%s942_s15 + $0x14] sm:$0x1] %v689_v43  ;;  %v533_v47 = vmax.f32 %v439_v34, %v440_v38  ;;  %v442_v48 = vmax.f32 %v256_v31, %v262_v39  ;;  %v263_v49 = vunpack.c.l.bf16 %v139_v36  ;;  %v264_v50 = vunpack.c.h.bf16 %v139_v36  ;;  %v698_v34 = vld [vmem:[%s942_s15 + $0x2c] sm:$0x1]  ;;  %v151_v39 = vld [vmem:[%s925_s11 + $0x110] sm:$0xff] }
  0x26   : > { %v838_v53 = vpack.c.bf16 %v583_v44, %v582_v37  ;;  %v259_v54 = vunpack.c.l.bf16 %v137_v41  ;;  %v260_v55 = vunpack.c.h.bf16 %v137_v41  ;;  %v265_v56 = vunpack.c.l.bf16 %v140_v42  ;;  %v149_v44 = vld [vmem:[%s925_s11 + $0x100] sm:$0x11] }
  0x27   : > { %v584_v58 = vmax.f32 %v533_v47, 0.0  ;;  %v534_v59 = vmax.f32 %v441_v45, %v442_v48  ;;  %v443_v60 = vmax.f32 %v257_v40, %v263_v49  ;;  %v444_v61 = vmax.f32 %v258_v46, %v264_v50  ;;  %v152_v49 = vld [vmem:[%s925_s11 + $0x118] sm:$0x11] }
  0x28   : > { %875 = vst [vmem:[%s942_s15 + $0x18] sm:$0xff] %v838_v53   ;;  %v266_v0 = vunpack.c.h.bf16 %v140_v42  ;;  %v445_v1 = vmax.f32 %v259_v54, %v265_v56  ;;  %v267_v3 = vunpack.c.l.bf16 %v141_v52  ;;  %v268_v4 = vunpack.c.h.bf16 %v141_v52 }
  0x29   : > { %v635_v5 = vpack.c.bf16 %v584_v58, %v584_v58  ;;  %v585_v6 = vmax.f32 %v534_v59, 0.0  ;;  %v535_v7 = vmax.f32 %v443_v60, %v444_v61  ;;  %v269_v8 = vunpack.c.l.bf16 %v142_v57  ;;  %v153_v59 = vld [vmem:[%s925_s11 + $0x120] sm:$0xff]  ;;  %v154_v60 = vld [vmem:[%s925_s11 + $0x128] sm:$0xff] }
  0x2a   : > { %v446_v9 = vmax.f32 %v260_v55, %v266_v0  ;;  %v270_v10 = vunpack.c.h.bf16 %v142_v57  ;;  %v273_v11 = vunpack.c.l.bf16 %v144_v62  ;;  %v274_v12 = vunpack.c.h.bf16 %v144_v62 }
  0x2b   : > { %v694_v14 = vsel %vm949_vm2, %v635_v5, %v693_v63  ;;  %v636_v15 = vpack.c.bf16 %v585_v6, %v585_v6  ;;  %v586_v16 = vmax.f32 %v535_v7, 0.0  ;;  %v275_v17 = vunpack.c.l.bf16 %v145_v2  ;;  %v156_v5 = vld [vmem:[%s925_s11 + $0x138] sm:$0xff]  ;;  %v157_v6 = vld [vmem:[%s925_s11 + $0x140] sm:$0xff] }
  0x2c   : > { %695 = vst [vmem:[%s942_s15 + $0x20] sm:$0x1] %v694_v14  ;;  %v536_v19 = vmax.f32 %v445_v1, %v446_v9  ;;  %v276_v20 = vunpack.c.h.bf16 %v145_v2  ;;  %v447_v21 = vmax.f32 %v267_v3, %v273_v11  ;;  %v448_v22 = vmax.f32 %v268_v4, %v274_v12  ;;  %v703_v7 = vld [vmem:[%s942_s15 + $0x38] sm:$0x1] }
  0x2d   : > { %696 = vst [vmem:[%s942_s15 + $0x24] sm:$0xf] %v636_v15  ;;  %v637_v25 = vpack.c.bf16 %v586_v16, %v586_v16  ;;  %v449_v26 = vmax.f32 %v269_v8, %v275_v17  ;;  %v271_v27 = vunpack.c.l.bf16 %v143_v13  ;;  %v272_v28 = vunpack.c.h.bf16 %v143_v13 }
  0x2e   : > { %v587_v29 = vmax.f32 %v536_v19, 0.0  ;;  %v450_v30 = vmax.f32 %v270_v10, %v276_v20  ;;  %v537_v31 = vmax.f32 %v447_v21, %v448_v22  ;;  %v277_v32 = vunpack.c.l.bf16 %v146_v18  ;;  %v155_v20 = vld [vmem:[%s925_s11 + $0x130] sm:$0x11] }
  0x2f   : > { %697 = vst [vmem:[%s942_s15 + $0x28] sm:$0xf] %v637_v25  ;;  %v278_v35 = vunpack.c.h.bf16 %v146_v18  ;;  %v279_v36 = vunpack.c.l.bf16 %v147_v23  ;;  %v280_v37 = vunpack.c.h.bf16 %v147_v23  ;;  %v285_v38 = vunpack.c.l.bf16 %v150_v24  ;;  %v158_v25 = vld [vmem:[%s925_s11 + $0x148] sm:$0x11] }
  0x30   : > { %v638_v40 = vpack.c.bf16 %v587_v29, %v587_v29  ;;  %v538_v41 = vmax.f32 %v449_v26, %v450_v30  ;;  %v588_v42 = vmax.f32 %v537_v31, 0.0  ;;  %v451_v43 = vmax.f32 %v271_v27, %v277_v32  ;;  %v159_v30 = vld [vmem:[%s925_s11 + $0x150] sm:$0xff]  ;;  %v162_v31 = vld [vmem:[%s925_s11 + $0x168] sm:$0xff] }
  0x31   : > { %v452_v45 = vmax.f32 %v272_v28, %v278_v35  ;;  %v286_v46 = vunpack.c.h.bf16 %v150_v24  ;;  %v453_v47 = vmax.f32 %v279_v36, %v285_v38  ;;  %v281_v48 = vunpack.c.l.bf16 %v148_v33  ;;  %v708_v36 = vld [vmem:[%s942_s15 + $0x44] sm:$0x1] }
  0x32   : > { %v699_v50 = vsel %vm949_vm2, %v638_v40, %v698_v34  ;;  %v589_v52 = vmax.f32 %v538_v41, 0.0  ;;  %v282_v53 = vunpack.c.h.bf16 %v148_v33  ;;  %v287_v54 = vunpack.c.l.bf16 %v151_v39  ;;  %v160_v41 = vld [vmem:[%s925_s11 + $0x158] sm:$0xff] }
  0x33   : > { %700 = vst [vmem:[%s942_s15 + $0x2c] sm:$0x1] %v699_v50  ;;  %v539_v55 = vmax.f32 %v451_v43, %v452_v45  ;;  %v454_v56 = vmax.f32 %v280_v37, %v286_v46  ;;  %v288_v57 = vunpack.c.h.bf16 %v151_v39  ;;  %v283_v58 = vunpack.c.l.bf16 %v149_v44  ;;  %v163_v46 = vld [vmem:[%s925_s11 + $0x170] sm:$0xff] }
  0x34   : > { %v843_v61 = vpack.c.bf16 %v589_v52, %v588_v42  ;;  %v455_v62 = vmax.f32 %v281_v48, %v287_v54  ;;  %v284_v63 = vunpack.c.h.bf16 %v149_v44  ;;  %v289_v0 = vunpack.c.l.bf16 %v152_v49  ;;  %v161_v52 = vld [vmem:[%s925_s11 + $0x160] sm:$0x11] }
  0x35   : > { %v590_v1 = vmax.f32 %v539_v55, 0.0  ;;  %v540_v2 = vmax.f32 %v453_v47, %v454_v56  ;;  %v456_v3 = vmax.f32 %v282_v53, %v288_v57  ;;  %v290_v4 = vunpack.c.h.bf16 %v152_v49  ;;  %v164_v57 = vld [vmem:[%s925_s11 + $0x178] sm:$0x11] }
  0x36   : > { %876 = vst [vmem:[%s942_s15 + $0x30] sm:$0xff] %v843_v61   ;;  %v457_v8 = vmax.f32 %v283_v58, %v289_v0  ;;  %v291_v9 = vunpack.c.l.bf16 %v153_v59  ;;  %v292_v10 = vunpack.c.h.bf16 %v153_v59  ;;  %v293_v11 = vunpack.c.l.bf16 %v154_v60 }
  0x37   : > { %v641_v12 = vpack.c.bf16 %v590_v1, %v590_v1  ;;  %v591_v13 = vmax.f32 %v540_v2, 0.0  ;;  %v541_v14 = vmax.f32 %v455_v62, %v456_v3  ;;  %v458_v15 = vmax.f32 %v284_v63, %v290_v4  ;;  %v165_v62 = vld [vmem:[%s925_s11 + $0x180] sm:$0xff]  ;;  %v166_v3 = vld [vmem:[%s925_s11 + $0x188] sm:$0xff] }
  0x38   : > { %v294_v16 = vunpack.c.h.bf16 %v154_v60  ;;  %v297_v17 = vunpack.c.l.bf16 %v156_v5  ;;  %v298_v18 = vunpack.c.h.bf16 %v156_v5  ;;  %v299_v19 = vunpack.c.l.bf16 %v157_v6 }
  0x39   : > { %v704_v21 = vsel %vm949_vm2, %v641_v12, %v703_v7  ;;  %v642_v22 = vpack.c.bf16 %v591_v13, %v591_v13  ;;  %v592_v23 = vmax.f32 %v541_v14, 0.0  ;;  %v542_v24 = vmax.f32 %v457_v8, %v458_v15  ;;  %v713_v8 = vld [vmem:[%s942_s15 + $0x50] sm:$0x1]  ;;  %v168_v12 = vld [vmem:[%s925_s11 + $0x198] sm:$0xff]  ;;  %v169_v13 = vld [vmem:[%s925_s11 + $0x1a0] sm:$0xff] }
  0x3a   : > { %705 = vst [vmem:[%s942_s15 + $0x38] sm:$0x1] %v704_v21  ;;  %v300_v26 = vunpack.c.h.bf16 %v157_v6  ;;  %v459_v27 = vmax.f32 %v291_v9, %v297_v17  ;;  %v460_v28 = vmax.f32 %v292_v10, %v298_v18  ;;  %v461_v29 = vmax.f32 %v293_v11, %v299_v19 }
  0x3b   : > { %706 = vst [vmem:[%s942_s15 + $0x3c] sm:$0xf] %v642_v22  ;;  %v643_v32 = vpack.c.bf16 %v592_v23, %v592_v23  ;;  %v593_v33 = vmax.f32 %v542_v24, 0.0  ;;  %v295_v34 = vunpack.c.l.bf16 %v155_v20  ;;  %v296_v35 = vunpack.c.h.bf16 %v155_v20  ;;  %v167_v23 = vld [vmem:[%s925_s11 + $0x190] sm:$0x11] }
  0x3c   : > { %v462_v37 = vmax.f32 %v294_v16, %v300_v26  ;;  %v543_v38 = vmax.f32 %v459_v27, %v460_v28  ;;  %v301_v39 = vunpack.c.l.bf16 %v158_v25  ;;  %v302_v40 = vunpack.c.h.bf16 %v158_v25 }
  0x3d   : > { %707 = vst [vmem:[%s942_s15 + $0x40] sm:$0xf] %v643_v32  ;;  %v644_v42 = vpack.c.bf16 %v593_v33, %v593_v33  ;;  %v303_v43 = vunpack.c.l.bf16 %v159_v30  ;;  %v304_v44 = vunpack.c.h.bf16 %v159_v30  ;;  %v309_v45 = vunpack.c.l.bf16 %v162_v31  ;;  %v170_v32 = vld [vmem:[%s925_s11 + $0x1a8] sm:$0x11]  ;;  %v171_v33 = vld [vmem:[%s925_s11 + $0x1b0] sm:$0xff] }
  0x3e   : > { %v544_v47 = vmax.f32 %v461_v29, %v462_v37  ;;  %v594_v48 = vmax.f32 %v543_v38, 0.0  ;;  %v463_v49 = vmax.f32 %v295_v34, %v301_v39  ;;  %v464_v50 = vmax.f32 %v296_v35, %v302_v40  ;;  %v174_v38 = vld [vmem:[%s925_s11 + $0x1c8] sm:$0xff] }
  0x3f   : > { %v709_v53 = vsel %vm949_vm2, %v644_v42, %v708_v36  ;;  %v310_v54 = vunpack.c.h.bf16 %v162_v31  ;;  %v465_v55 = vmax.f32 %v303_v43, %v309_v45  ;;  %v305_v56 = vunpack.c.l.bf16 %v160_v41  ;;  %v718_v43 = vld [vmem:[%s942_s15 + $0x5c] sm:$0x1] }
  0x40   : > { %710 = vst [vmem:[%s942_s15 + $0x44] sm:$0x1] %v709_v53  ;;  %v595_v58 = vmax.f32 %v544_v47, 0.0  ;;  %v545_v59 = vmax.f32 %v463_v49, %v464_v50  ;;  %v306_v60 = vunpack.c.h.bf16 %v160_v41  ;;  %v311_v61 = vunpack.c.l.bf16 %v163_v46 }
  0x41   : > { %v466_v63 = vmax.f32 %v304_v44, %v310_v54  ;;  %v312_v0 = vunpack.c.h.bf16 %v163_v46  ;;  %v307_v1 = vunpack.c.l.bf16 %v161_v52  ;;  %v308_v2 = vunpack.c.h.bf16 %v161_v52  ;;  %v175_v54 = vld [vmem:[%s925_s11 + $0x1d0] sm:$0xff] }
  0x42   : > { %v848_v4 = vpack.c.bf16 %v595_v58, %v594_v48  ;;  %v596_v5 = vmax.f32 %v545_v59, 0.0  ;;  %v467_v6 = vmax.f32 %v305_v56, %v311_v61  ;;  %v313_v7 = vunpack.c.l.bf16 %v164_v57  ;;  %v172_v48 = vld [vmem:[%s925_s11 + $0x1b8] sm:$0xff]  ;;  %v173_v59 = vld [vmem:[%s925_s11 + $0x1c0] sm:$0x11] }
  0x43   : > { %v546_v9 = vmax.f32 %v465_v55, %v466_v63  ;;  %v468_v10 = vmax.f32 %v306_v60, %v312_v0  ;;  %v314_v11 = vunpack.c.h.bf16 %v164_v57  ;;  %v315_v14 = vunpack.c.l.bf16 %v165_v62  ;;  %v176_v0 = vld [vmem:[%s925_s11 + $0x1d8] sm:$0x11] }
  0x44   : > { %877 = vst [vmem:[%s942_s15 + $0x48] sm:$0xff] %v848_v4   ;;  %v647_v15 = vpack.c.bf16 %v596_v5, %v596_v5  ;;  %v469_v16 = vmax.f32 %v307_v1, %v313_v7  ;;  %v316_v17 = vunpack.c.h.bf16 %v165_v62  ;;  %v317_v18 = vunpack.c.l.bf16 %v166_v3  ;;  %v177_v5 = vld [vmem:[%s925_s11 + $0x1e0] sm:$0xff] }
  0x45   : > { %v597_v19 = vmax.f32 %v546_v9, 0.0  ;;  %v547_v20 = vmax.f32 %v467_v6, %v468_v10  ;;  %v470_v21 = vmax.f32 %v308_v2, %v314_v11  ;;  %v318_v22 = vunpack.c.h.bf16 %v166_v3  ;;  %v178_v10 = vld [vmem:[%s925_s11 + $0x1e8] sm:$0xff] }
  0x46   : > { %v714_v24 = vsel %vm949_vm2, %v647_v15, %v713_v8  ;;  %v321_v25 = vunpack.c.l.bf16 %v168_v12  ;;  %v322_v26 = vunpack.c.h.bf16 %v168_v12  ;;  %v323_v27 = vunpack.c.l.bf16 %v169_v13  ;;  %v180_v15 = vld [vmem:[%s925_s11 + $0x1f8] sm:$0xff] }
  0x47   : > { %715 = vst [vmem:[%s942_s15 + $0x50] sm:$0x1] %v714_v24  ;;  %v648_v28 = vpack.c.bf16 %v597_v19, %v597_v19  ;;  %v598_v29 = vmax.f32 %v547_v20, 0.0  ;;  %v548_v30 = vmax.f32 %v469_v16, %v470_v21  ;;  %v324_v31 = vunpack.c.h.bf16 %v169_v13  ;;  %v723_v16 = vld [vmem:[%s942_s15 + $0x68] sm:$0x1]  ;;  %v181_v19 = vld [vmem:[%s925_s11 + $0x200] sm:$0xff] }
  0x48   : > { %v471_v34 = vmax.f32 %v315_v14, %v321_v25  ;;  %v472_v35 = vmax.f32 %v316_v17, %v322_v26  ;;  %v473_v36 = vmax.f32 %v317_v18, %v323_v27  ;;  %v319_v37 = vunpack.c.l.bf16 %v167_v23 }
  0x49   : > { %716 = vst [vmem:[%s942_s15 + $0x54] sm:$0xf] %v648_v28  ;;  %v649_v39 = vpack.c.bf16 %v598_v29, %v598_v29  ;;  %v599_v40 = vmax.f32 %v548_v30, 0.0  ;;  %v474_v41 = vmax.f32 %v318_v22, %v324_v31  ;;  %v320_v42 = vunpack.c.h.bf16 %v167_v23  ;;  %v179_v30 = vld [vmem:[%s925_s11 + $0x1f0] sm:$0x11] }
  0x4a   : > { %v549_v44 = vmax.f32 %v471_v34, %v472_v35  ;;  %v325_v45 = vunpack.c.l.bf16 %v170_v32  ;;  %v326_v46 = vunpack.c.h.bf16 %v170_v32  ;;  %v327_v47 = vunpack.c.l.bf16 %v171_v33  ;;  %v182_v35 = vld [vmem:[%s925_s11 + $0x208] sm:$0x11] }
  0x4b   : > { %717 = vst [vmem:[%s942_s15 + $0x58] sm:$0xf] %v649_v39  ;;  %v650_v49 = vpack.c.bf16 %v599_v40, %v599_v40  ;;  %v550_v50 = vmax.f32 %v473_v36, %v474_v41  ;;  %v328_v52 = vunpack.c.h.bf16 %v171_v33  ;;  %v333_v53 = vunpack.c.l.bf16 %v174_v38  ;;  %v183_v40 = vld [vmem:[%s925_s11 + $0x210] sm:$0xff] }
  0x4c   : > { %v600_v55 = vmax.f32 %v549_v44, 0.0  ;;  %v475_v56 = vmax.f32 %v319_v37, %v325_v45  ;;  %v476_v57 = vmax.f32 %v320_v42, %v326_v46  ;;  %v334_v58 = vunpack.c.h.bf16 %v174_v38  ;;  %v186_v45 = vld [vmem:[%s925_s11 + $0x228] sm:$0xff] }
  0x4d   : > { %v719_v60 = vsel %vm949_vm2, %v650_v49, %v718_v43  ;;  %v601_v61 = vmax.f32 %v550_v50, 0.0  ;;  %v477_v62 = vmax.f32 %v327_v47, %v333_v53  ;;  %v329_v63 = vunpack.c.l.bf16 %v172_v48  ;;  %v184_v50 = vld [vmem:[%s925_s11 + $0x218] sm:$0xff] }
  0x4e   : > { %720 = vst [vmem:[%s942_s15 + $0x5c] sm:$0x1] %v719_v60  ;;  %v551_v1 = vmax.f32 %v475_v56, %v476_v57  ;;  %v478_v2 = vmax.f32 %v328_v52, %v334_v58  ;;  %v330_v3 = vunpack.c.h.bf16 %v172_v48  ;;  %v335_v4 = vunpack.c.l.bf16 %v175_v54  ;;  %v728_v52 = vld [vmem:[%s942_s15 + $0x74] sm:$0x1] }
  0x4f   : > { %v853_v6 = vpack.c.bf16 %v601_v61, %v600_v55  ;;  %v336_v7 = vunpack.c.h.bf16 %v175_v54  ;;  %v331_v8 = vunpack.c.l.bf16 %v173_v59  ;;  %v332_v9 = vunpack.c.h.bf16 %v173_v59  ;;  %v187_v61 = vld [vmem:[%s925_s11 + $0x230] sm:$0xff] }
  0x50   : > { %v602_v11 = vmax.f32 %v551_v1, 0.0  ;;  %v552_v12 = vmax.f32 %v477_v62, %v478_v2  ;;  %v479_v13 = vmax.f32 %v329_v63, %v335_v4  ;;  %v337_v14 = vunpack.c.l.bf16 %v176_v0  ;;  %v185_v2 = vld [vmem:[%s925_s11 + $0x220] sm:$0x11] }
  0x51   : > { %878 = vst [vmem:[%s942_s15 + $0x60] sm:$0xff] %v853_v6   ;;  %v480_v17 = vmax.f32 %v330_v3, %v336_v7  ;;  %v338_v18 = vunpack.c.h.bf16 %v176_v0  ;;  %v339_v20 = vunpack.c.l.bf16 %v177_v5  ;;  %v340_v21 = vunpack.c.h.bf16 %v177_v5  ;;  %v188_v3 = vld [vmem:[%s925_s11 + $0x238] sm:$0x11] }
  0x52   : > { %v653_v22 = vpack.c.bf16 %v602_v11, %v602_v11  ;;  %v603_v23 = vmax.f32 %v552_v12, 0.0  ;;  %v481_v24 = vmax.f32 %v331_v8, %v337_v14  ;;  %v341_v25 = vunpack.c.l.bf16 %v178_v10  ;;  %v189_v12 = vld [vmem:[%s925_s11 + $0x240] sm:$0xff] }
  0x53   : > { %v553_v26 = vmax.f32 %v479_v13, %v480_v17  ;;  %v482_v27 = vmax.f32 %v332_v9, %v338_v18  ;;  %v342_v28 = vunpack.c.h.bf16 %v178_v10  ;;  %v345_v29 = vunpack.c.l.bf16 %v180_v15  ;;  %v190_v17 = vld [vmem:[%s925_s11 + $0x248] sm:$0xff] }
  0x54   : > { %v724_v31 = vsel %vm949_vm2, %v653_v22, %v723_v16  ;;  %v654_v32 = vpack.c.bf16 %v603_v23, %v603_v23  ;;  %v346_v33 = vunpack.c.h.bf16 %v180_v15  ;;  %v347_v34 = vunpack.c.l.bf16 %v181_v19  ;;  %v192_v22 = vld [vmem:[%s925_s11 + $0x258] sm:$0xff]  ;;  %v733_v23 = vld [vmem:[%s942_s15 + $0x80] sm:$0x1] }
  0x55   : > { %725 = vst [vmem:[%s942_s15 + $0x68] sm:$0x1] %v724_v31  ;;  %v604_v36 = vmax.f32 %v553_v26, 0.0  ;;  %v554_v37 = vmax.f32 %v481_v24, %v482_v27  ;;  %v348_v38 = vunpack.c.h.bf16 %v181_v19  ;;  %v483_v39 = vmax.f32 %v339_v20, %v345_v29  ;;  %v193_v26 = vld [vmem:[%s925_s11 + $0x260] sm:$0xff] }
  0x56   : > { %726 = vst [vmem:[%s942_s15 + $0x6c] sm:$0xf] %v654_v32  ;;  %v484_v41 = vmax.f32 %v340_v21, %v346_v33  ;;  %v485_v42 = vmax.f32 %v341_v25, %v347_v34  ;;  %v343_v43 = vunpack.c.l.bf16 %v179_v30  ;;  %v344_v44 = vunpack.c.h.bf16 %v179_v30 }
  0x57   : > { %v655_v46 = vpack.c.bf16 %v604_v36, %v604_v36  ;;  %v605_v47 = vmax.f32 %v554_v37, 0.0  ;;  %v486_v48 = vmax.f32 %v342_v28, %v348_v38  ;;  %v349_v49 = vunpack.c.l.bf16 %v182_v35  ;;  %v191_v37 = vld [vmem:[%s925_s11 + $0x250] sm:$0x11] }
  0x58   : > { %v555_v53 = vmax.f32 %v483_v39, %v484_v41  ;;  %v350_v54 = vunpack.c.h.bf16 %v182_v35  ;;  %v351_v55 = vunpack.c.l.bf16 %v183_v40  ;;  %v352_v56 = vunpack.c.h.bf16 %v183_v40 }
  0x59   : > { %727 = vst [vmem:[%s942_s15 + $0x70] sm:$0xf] %v655_v46  ;;  %v656_v57 = vpack.c.bf16 %v605_v47, %v605_v47  ;;  %v556_v58 = vmax.f32 %v485_v42, %v486_v48  ;;  %v487_v59 = vmax.f32 %v343_v43, %v349_v49  ;;  %v357_v60 = vunpack.c.l.bf16 %v186_v45  ;;  %v194_v42 = vld [vmem:[%s925_s11 + $0x268] sm:$0x11]  ;;  %v195_v47 = vld [vmem:[%s925_s11 + $0x270] sm:$0xff] }
  0x5a   : > { %v606_v62 = vmax.f32 %v555_v53, 0.0  ;;  %v488_v63 = vmax.f32 %v344_v44, %v350_v54  ;;  %v358_v0 = vunpack.c.h.bf16 %v186_v45  ;;  %v353_v1 = vunpack.c.l.bf16 %v184_v50  ;;  %v198_v48 = vld [vmem:[%s925_s11 + $0x288] sm:$0xff] }
  0x5b   : > { %v729_v4 = vsel %vm949_vm2, %v656_v57, %v728_v52  ;;  %v607_v5 = vmax.f32 %v556_v58, 0.0  ;;  %v489_v6 = vmax.f32 %v351_v55, %v357_v60  ;;  %v354_v7 = vunpack.c.h.bf16 %v184_v50  ;;  %v196_v58 = vld [vmem:[%s925_s11 + $0x278] sm:$0xff] }
  0x5c   : > { %730 = vst [vmem:[%s942_s15 + $0x74] sm:$0x1] %v729_v4  ;;  %v557_v8 = vmax.f32 %v487_v59, %v488_v63  ;;  %v490_v9 = vmax.f32 %v352_v56, %v358_v0  ;;  %v359_v10 = vunpack.c.l.bf16 %v187_v61  ;;  %v360_v11 = vunpack.c.h.bf16 %v187_v61  ;;  %v738_v59 = vld [vmem:[%s942_s15 + $0x8c] sm:$0x1]  ;;  %v199_v0 = vld [vmem:[%s925_s11 + $0x290] sm:$0xff] }
  0x5d   : > { %v858_v13 = vpack.c.bf16 %v607_v5, %v606_v62  ;;  %v355_v14 = vunpack.c.l.bf16 %v185_v2  ;;  %v356_v15 = vunpack.c.h.bf16 %v185_v2  ;;  %v361_v16 = vunpack.c.l.bf16 %v188_v3  ;;  %v197_v5 = vld [vmem:[%s925_s11 + $0x280] sm:$0x11] }
  0x5e   : > { %v608_v18 = vmax.f32 %v557_v8, 0.0  ;;  %v558_v19 = vmax.f32 %v489_v6, %v490_v9  ;;  %v491_v20 = vmax.f32 %v353_v1, %v359_v10  ;;  %v492_v21 = vmax.f32 %v354_v7, %v360_v11  ;;  %v200_v10 = vld [vmem:[%s925_s11 + $0x298] sm:$0x11] }
  0x5f   : > { %879 = vst [vmem:[%s942_s15 + $0x78] sm:$0xff] %v858_v13   ;;  %v362_v24 = vunpack.c.h.bf16 %v188_v3  ;;  %v493_v25 = vmax.f32 %v355_v14, %v361_v16  ;;  %v363_v27 = vunpack.c.l.bf16 %v189_v12  ;;  %v364_v28 = vunpack.c.h.bf16 %v189_v12 }
  0x60   : > { %v659_v29 = vpack.c.bf16 %v608_v18, %v608_v18  ;;  %v609_v30 = vmax.f32 %v558_v19, 0.0  ;;  %v559_v31 = vmax.f32 %v491_v20, %v492_v21  ;;  %v365_v32 = vunpack.c.l.bf16 %v190_v17  ;;  %v201_v19 = vld [vmem:[%s925_s11 + $0x2a0] sm:$0xff]  ;;  %v202_v20 = vld [vmem:[%s925_s11 + $0x2a8] sm:$0xff] }
  0x61   : > { %v494_v33 = vmax.f32 %v356_v15, %v362_v24  ;;  %v366_v34 = vunpack.c.h.bf16 %v190_v17  ;;  %v369_v35 = vunpack.c.l.bf16 %v192_v22  ;;  %v370_v36 = vunpack.c.h.bf16 %v192_v22 }
  0x62   : > { %v734_v38 = vsel %vm949_vm2, %v659_v29, %v733_v23  ;;  %v660_v39 = vpack.c.bf16 %v609_v30, %v609_v30  ;;  %v610_v40 = vmax.f32 %v559_v31, 0.0  ;;  %v371_v41 = vunpack.c.l.bf16 %v193_v26  ;;  %v204_v29 = vld [vmem:[%s925_s11 + $0x2b8] sm:$0xff]  ;;  %v205_v30 = vld [vmem:[%s925_s11 + $0x2c0] sm:$0xff] }
  0x63   : > { %735 = vst [vmem:[%s942_s15 + $0x80] sm:$0x1] %v734_v38  ;;  %v560_v43 = vmax.f32 %v493_v25, %v494_v33  ;;  %v372_v44 = vunpack.c.h.bf16 %v193_v26  ;;  %v495_v45 = vmax.f32 %v363_v27, %v369_v35  ;;  %v496_v46 = vmax.f32 %v364_v28, %v370_v36  ;;  %v743_v31 = vld [vmem:[%s942_s15 + $0x98] sm:$0x1] }
  0x64   : > { %736 = vst [vmem:[%s942_s15 + $0x84] sm:$0xf] %v660_v39  ;;  %v661_v49 = vpack.c.bf16 %v610_v40, %v610_v40  ;;  %v497_v50 = vmax.f32 %v365_v32, %v371_v41  ;;  %v367_v52 = vunpack.c.l.bf16 %v191_v37  ;;  %v368_v53 = vunpack.c.h.bf16 %v191_v37 }
  0x65   : > { %v611_v54 = vmax.f32 %v560_v43, 0.0  ;;  %v498_v55 = vmax.f32 %v366_v34, %v372_v44  ;;  %v561_v56 = vmax.f32 %v495_v45, %v496_v46  ;;  %v373_v57 = vunpack.c.l.bf16 %v194_v42  ;;  %v203_v44 = vld [vmem:[%s925_s11 + $0x2b0] sm:$0x11] }
  0x66   : > { %737 = vst [vmem:[%s942_s15 + $0x88] sm:$0xf] %v661_v49  ;;  %v374_v60 = vunpack.c.h.bf16 %v194_v42  ;;  %v375_v61 = vunpack.c.l.bf16 %v195_v47  ;;  %v376_v62 = vunpack.c.h.bf16 %v195_v47  ;;  %v381_v63 = vunpack.c.l.bf16 %v198_v48  ;;  %v206_v49 = vld [vmem:[%s925_s11 + $0x2c8] sm:$0x11] }
  0x67   : > { %v662_v1 = vpack.c.bf16 %v611_v54, %v611_v54  ;;  %v562_v2 = vmax.f32 %v497_v50, %v498_v55  ;;  %v612_v3 = vmax.f32 %v561_v56, 0.0  ;;  %v499_v4 = vmax.f32 %v367_v52, %v373_v57  ;;  %v207_v55 = vld [vmem:[%s925_s11 + $0x2d0] sm:$0xff]  ;;  %v210_v56 = vld [vmem:[%s925_s11 + $0x2e8] sm:$0xff] }
  0x68   : > { %v500_v6 = vmax.f32 %v368_v53, %v374_v60  ;;  %v382_v7 = vunpack.c.h.bf16 %v198_v48  ;;  %v501_v8 = vmax.f32 %v375_v61, %v381_v63  ;;  %v377_v9 = vunpack.c.l.bf16 %v196_v58  ;;  %v748_v61 = vld [vmem:[%s942_s15 + $0xa4] sm:$0x1] }
  0x69   : > { %v739_v11 = vsel %vm949_vm2, %v662_v1, %v738_v59  ;;  %v613_v12 = vmax.f32 %v562_v2, 0.0  ;;  %v378_v13 = vunpack.c.h.bf16 %v196_v58  ;;  %v383_v14 = vunpack.c.l.bf16 %v199_v0  ;;  %v208_v2 = vld [vmem:[%s925_s11 + $0x2d8] sm:$0xff] }
  0x6a   : > { %740 = vst [vmem:[%s942_s15 + $0x8c] sm:$0x1] %v739_v11  ;;  %v563_v15 = vmax.f32 %v499_v4, %v500_v6  ;;  %v502_v16 = vmax.f32 %v376_v62, %v382_v7  ;;  %v384_v17 = vunpack.c.h.bf16 %v199_v0  ;;  %v379_v18 = vunpack.c.l.bf16 %v197_v5  ;;  %v211_v7 = vld [vmem:[%s925_s11 + $0x2f0] sm:$0xff] }
  0x6b   : > { %v863_v21 = vpack.c.bf16 %v613_v12, %v612_v3  ;;  %v503_v22 = vmax.f32 %v377_v9, %v383_v14  ;;  %v380_v23 = vunpack.c.h.bf16 %v197_v5  ;;  %v385_v24 = vunpack.c.l.bf16 %v200_v10  ;;  %v209_v12 = vld [vmem:[%s925_s11 + $0x2e0] sm:$0x11] }
  0x6c   : > { %v614_v25 = vmax.f32 %v563_v15, 0.0  ;;  %v564_v26 = vmax.f32 %v501_v8, %v502_v16  ;;  %v504_v27 = vmax.f32 %v378_v13, %v384_v17  ;;  %v386_v28 = vunpack.c.h.bf16 %v200_v10  ;;  %v212_v17 = vld [vmem:[%s925_s11 + $0x2f8] sm:$0x11] }
  0x6d   : > { %880 = vst [vmem:[%s942_s15 + $0x90] sm:$0xff] %v863_v21   ;;  %v505_v32 = vmax.f32 %v379_v18, %v385_v24  ;;  %v387_v33 = vunpack.c.l.bf16 %v201_v19  ;;  %v388_v34 = vunpack.c.h.bf16 %v201_v19  ;;  %v389_v35 = vunpack.c.l.bf16 %v202_v20 }
  0x6e   : > { %v665_v36 = vpack.c.bf16 %v614_v25, %v614_v25  ;;  %v615_v37 = vmax.f32 %v564_v26, 0.0  ;;  %v565_v38 = vmax.f32 %v503_v22, %v504_v27  ;;  %v506_v39 = vmax.f32 %v380_v23, %v386_v28  ;;  %v213_v22 = vld [vmem:[%s925_s11 + $0x300] sm:$0xff]  ;;  %v214_v27 = vld [vmem:[%s925_s11 + $0x308] sm:$0xff] }
  0x6f   : > { %v390_v40 = vunpack.c.h.bf16 %v202_v20  ;;  %v393_v41 = vunpack.c.l.bf16 %v204_v29  ;;  %v394_v42 = vunpack.c.h.bf16 %v204_v29  ;;  %v395_v43 = vunpack.c.l.bf16 %v205_v30 }
  0x70   : > { %v744_v45 = vsel %vm949_vm2, %v665_v36, %v743_v31  ;;  %v666_v46 = vpack.c.bf16 %v615_v37, %v615_v37  ;;  %v616_v47 = vmax.f32 %v565_v38, 0.0  ;;  %v566_v48 = vmax.f32 %v505_v32, %v506_v39  ;;  %v753_v32 = vld [vmem:[%s942_s15 + $0xb0] sm:$0x1]  ;;  %v216_v36 = vld [vmem:[%s925_s11 + $0x318] sm:$0xff]  ;;  %v217_v37 = vld [vmem:[%s925_s11 + $0x320] sm:$0xff] }
  0x71   : > { %745 = vst [vmem:[%s942_s15 + $0x98] sm:$0x1] %v744_v45  ;;  %v396_v50 = vunpack.c.h.bf16 %v205_v30  ;;  %v507_v52 = vmax.f32 %v387_v33, %v393_v41  ;;  %v508_v53 = vmax.f32 %v388_v34, %v394_v42  ;;  %v509_v54 = vmax.f32 %v389_v35, %v395_v43 }
  0x72   : > { %746 = vst [vmem:[%s942_s15 + $0x9c] sm:$0xf] %v666_v46  ;;  %v667_v57 = vpack.c.bf16 %v616_v47, %v616_v47  ;;  %v617_v58 = vmax.f32 %v566_v48, 0.0  ;;  %v391_v59 = vunpack.c.l.bf16 %v203_v44  ;;  %v392_v60 = vunpack.c.h.bf16 %v203_v44  ;;  %v215_v47 = vld [vmem:[%s925_s11 + $0x310] sm:$0x11] }
  0x73   : > { %v510_v62 = vmax.f32 %v390_v40, %v396_v50  ;;  %v567_v63 = vmax.f32 %v507_v52, %v508_v53  ;;  %v397_v0 = vunpack.c.l.bf16 %v206_v49  ;;  %v398_v1 = vunpack.c.h.bf16 %v206_v49 }
  0x74   : > { %747 = vst [vmem:[%s942_s15 + $0xa0] sm:$0xf] %v667_v57  ;;  %v668_v3 = vpack.c.bf16 %v617_v58, %v617_v58  ;;  %v399_v4 = vunpack.c.l.bf16 %v207_v55  ;;  %v400_v5 = vunpack.c.h.bf16 %v207_v55  ;;  %v405_v6 = vunpack.c.l.bf16 %v210_v56  ;;  %v218_v57 = vld [vmem:[%s925_s11 + $0x328] sm:$0x11] }
  0x75   : > { %v568_v8 = vmax.f32 %v509_v54, %v510_v62  ;;  %v618_v9 = vmax.f32 %v567_v63, 0.0  ;;  %v511_v10 = vmax.f32 %v391_v59, %v397_v0  ;;  %v512_v11 = vmax.f32 %v392_v60, %v398_v1 }
  0x76   : > { %v749_v13 = vsel %vm949_vm2, %v668_v3, %v748_v61  ;;  %v406_v14 = vunpack.c.h.bf16 %v210_v56  ;;  %v513_v15 = vmax.f32 %v399_v4, %v405_v6  ;;  %v401_v16 = vunpack.c.l.bf16 %v208_v2 }
  0x77   : > { %750 = vst [vmem:[%s942_s15 + $0xa4] sm:$0x1] %v749_v13  ;;  %v619_v18 = vmax.f32 %v568_v8, 0.0  ;;  %v569_v19 = vmax.f32 %v511_v10, %v512_v11  ;;  %v402_v20 = vunpack.c.h.bf16 %v208_v2  ;;  %v407_v21 = vunpack.c.l.bf16 %v211_v7  ;;  %v758_v2 = vld [vmem:[%s942_s15 + $0xbc] sm:$0x1] }
  0x78   : > { %v514_v23 = vmax.f32 %v400_v5, %v406_v14  ;;  %v408_v24 = vunpack.c.h.bf16 %v211_v7  ;;  %v403_v25 = vunpack.c.l.bf16 %v209_v12  ;;  %v404_v26 = vunpack.c.h.bf16 %v209_v12 }
  0x79   : > { %v868_v28 = vpack.c.bf16 %v619_v18, %v618_v9  ;;  %v620_v29 = vmax.f32 %v569_v19, 0.0  ;;  %v515_v30 = vmax.f32 %v401_v16, %v407_v21  ;;  %v409_v31 = vunpack.c.l.bf16 %v212_v17  ;;  %v763_v16 = vld [vmem:[%s942_s15 + $0xc8] sm:$0x1] }
  0x7a   : > { %v570_v33 = vmax.f32 %v513_v15, %v514_v23  ;;  %v516_v34 = vmax.f32 %v402_v20, %v408_v24  ;;  %v410_v35 = vunpack.c.h.bf16 %v212_v17  ;;  %v411_v38 = vunpack.c.l.bf16 %v213_v22 }
  0x7b   : > { %881 = vst [vmem:[%s942_s15 + $0xa8] sm:$0xff] %v868_v28   ;;  %v671_v39 = vpack.c.bf16 %v620_v29, %v620_v29  ;;  %v517_v40 = vmax.f32 %v403_v25, %v409_v31  ;;  %v412_v41 = vunpack.c.h.bf16 %v213_v22  ;;  %v413_v42 = vunpack.c.l.bf16 %v214_v27 }
  0x7c   : > { %v621_v43 = vmax.f32 %v570_v33, 0.0  ;;  %v571_v44 = vmax.f32 %v515_v30, %v516_v34  ;;  %v518_v45 = vmax.f32 %v404_v26, %v410_v35  ;;  %v414_v46 = vunpack.c.h.bf16 %v214_v27 }
  0x7d   : > { %v754_v48 = vsel %vm949_vm2, %v671_v39, %v753_v32  ;;  %v417_v49 = vunpack.c.l.bf16 %v216_v36  ;;  %v418_v50 = vunpack.c.h.bf16 %v216_v36  ;;  %v419_v52 = vunpack.c.l.bf16 %v217_v37 }
  0x7e   : > { %755 = vst [vmem:[%s942_s15 + $0xb0] sm:$0x1] %v754_v48  ;;  %v672_v53 = vpack.c.bf16 %v621_v43, %v621_v43  ;;  %v622_v54 = vmax.f32 %v571_v44, 0.0  ;;  %v572_v55 = vmax.f32 %v517_v40, %v518_v45  ;;  %v420_v56 = vunpack.c.h.bf16 %v217_v37 }
  0x7f   : > { %v519_v58 = vmax.f32 %v411_v38, %v417_v49  ;;  %v520_v59 = vmax.f32 %v412_v41, %v418_v50  ;;  %v521_v60 = vmax.f32 %v413_v42, %v419_v52  ;;  %v415_v61 = vunpack.c.l.bf16 %v215_v47 }
  0x80   : > { %756 = vst [vmem:[%s942_s15 + $0xb4] sm:$0xf] %v672_v53  ;;  %v673_v62 = vpack.c.bf16 %v622_v54, %v622_v54  ;;  %v623_v63 = vmax.f32 %v572_v55, 0.0  ;;  %v522_v0 = vmax.f32 %v414_v46, %v420_v56  ;;  %v416_v1 = vunpack.c.h.bf16 %v215_v47 }
  0x81   : > { %v573_v3 = vmax.f32 %v519_v58, %v520_v59  ;;  %v421_v4 = vunpack.c.l.bf16 %v218_v57  ;;  %v422_v5 = vunpack.c.h.bf16 %v218_v57 }
  0x82   : > { %757 = vst [vmem:[%s942_s15 + $0xb8] sm:$0xf] %v673_v62  ;;  %v674_v6 = vpack.c.bf16 %v623_v63, %v623_v63  ;;  %v574_v7 = vmax.f32 %v521_v60, %v522_v0 }
  0x83   : > { %v624_v8 = vmax.f32 %v573_v3, 0.0  ;;  %v523_v9 = vmax.f32 %v415_v61, %v421_v4  ;;  %v524_v10 = vmax.f32 %v416_v1, %v422_v5 }
  0x84   : > { %v759_v11 = vsel %vm949_vm2, %v674_v6, %v758_v2  ;;  %v625_v12 = vmax.f32 %v574_v7, 0.0 }
  0x85   : > { %760 = vst [vmem:[%s942_s15 + $0xbc] sm:$0x1] %v759_v11  ;;  %v575_v13 = vmax.f32 %v523_v9, %v524_v10 }
  0x86   : > { %v873_v14 = vpack.c.bf16 %v625_v12, %v624_v8 }
  0x87   : > { %v626_v15 = vmax.f32 %v575_v13, 0.0 }
  0x88   : > { %882 = vst [vmem:[%s942_s15 + $0xc0] sm:$0xff] %v873_v14  }
  0x89   : > { %v677_v17 = vpack.c.bf16 %v626_v15, %v626_v15 }
  0x8b   : > { %v764_v18 = vsel %vm949_vm2, %v677_v17, %v763_v16 }
  0x8c   : > { %765 = vst [vmem:[%s942_s15 + $0xc8] sm:$0x1] %v764_v18 }
  0x8d PF: > { %s11_s6 = sadd.s32 1, %s899_s6  }
  0x8e   : > { %p8_p4 = scmp.ge.s32.totalorder %s11_s6, 4  }
  0x90   :  { %10 = sbr.rel (!%p8_p4) target bundleno = 1 (0x1), region = 54 }

// kernel: cnn_forward.9
= control target key start
LH: loop header
LB: loop body
LE: loop exit
PB: predicated region body
PF: predicated region fallthrough
CT: control target
= control target key end

     0   :  { %s2383_s12 = smov 0   ;;  %s2385_s13 = smov 0   ;;  %s2837_s0 = inlined_call_operand.vmem [shape: bf16[480,640], index: 0, kind: input, shape index: {}]   ;;  %s2838_s1 = inlined_call_operand.vmem [shape: bf16[640,128], index: 1, kind: input, shape index: {}]   ;;  %s2839_s2 = inlined_call_operand.vmem [shape: f32[1,128], index: 2, kind: input, shape index: {}]   ;;  %s2840_s3 = inlined_call_operand.vmem [shape: bf16[480,128], index: 3, kind: output, shape index: {}]  }
   0x1   :  { %s2387_s14 = smov 0  }
   0x2 LB: > { %s25_s15 = sadd.s32 1, %s2357_s13  ;;  %p1620_p0 = scmp.ge.s32.totalorder %s2361_s14, 1  ;;  %s2361_s14 = sphi %s2387_s14, %s13_s14   ;;  %s2357_s13 = sphi %s2385_s13, %s2842_s13   ;;  %s2353_s12 = sphi %s2383_s12, %s2841_s12  }
   0x3   : > { %p27_p1 = scmp.ge.s32.totalorder %s25_s15, 2  ;;  %p170_p2 = scmp.lt.s32.totalorder %s2361_s14, 3 }
   0x5   : > { %s2844_s15 = smov (%p27_p1, %s25_s15), 0  ;;  %p171_p3 = pnand %p1620_p0, %p170_p2 }
   0x6   : > { %s205_s22 = smul.u32 (!%p171_p3), 30, %s2353_s12 }
   0x7   : > { %174 = sbr.rel (%p171_p3) target bundleno = 481 (0x1e1), region = 32 }
   0x8   : > { %p206_p4 = scmp.lt.s32.totalorder (!%p171_p3), %s205_s22, 59 }
   0xc   : > { %v2167_v0 = vld [vmem:[%s2838_s1 + $0x38] sm:$0xff]  ;;  %v2166_v1 = vld [vmem:[%s2838_s1 + $0x30] sm:$0xff]  ;;  %v2165_v2 = vld [vmem:[%s2838_s1 + $0x28] sm:$0xff]  ;;  %s2846_s22 = smov (!%p206_p4, %s205_s22), 59 }
   0xd   : > { %2289 = vmatpush.bf16.msra.mxu1 %v2167_v0  ;;  %2290 = vmatpush.bf16.msra.mxu2 %v2167_v0  ;;  %v2164_v3 = vld [vmem:[%s2838_s1 + $0x20] sm:$0xff]  ;;  %v2163_v4 = vld [vmem:[%s2838_s1 + $0x18] sm:$0xff]  ;;  %v2162_v5 = vld [vmem:[%s2838_s1 + $0x10] sm:$0xff]  ;;  %s2313_s29 = smul.u32 20, %s2846_s22  ;;  %s1622_s10 = sshll.u32 %s2846_s22, 2 }
   0xe   : > { %1032 = vmatpush.bf16.msra.mxu0 %v2167_v0  ;;  %2291 = vmatpush.bf16.msra.mxu3 %v2167_v0  ;;  %v2161_v6 = vld [vmem:[%s2838_s1 + $0x8] sm:$0xff]  ;;  %v2160_v7 = vld [vmem:[%s2838_s1] sm:$0xff]  ;;  %v2183_v12 = vld [vmem:[%s2838_s1 + $0xb8] sm:$0xff]  ;;  %s2739_s16 = scalar_lea.vmem %s2840_s3, %s1622_s10 }
   0xf   : > { %s2431_s7 = scalar_lea.vmem %s2837_s0, %s2313_s29  ;;  %v2175_v15 = vld [vmem:[%s2838_s1 + $0x78] sm:$0xff]  ;;  %v2182_v22 = vld [vmem:[%s2838_s1 + $0xb0] sm:$0xff]  ;;  %v2181_v27 = vld [vmem:[%s2838_s1 + $0xa8] sm:$0xff] }
  0x10   : > { %v1705_v8 = vld [vmem:[%s2431_s7 + $0xa0] sm:$0xf]  ;;  %v2107_v9 = vld [vmem:[%s2431_s7 + $0xb0] sm:$0xf0]  ;;  %v2191_v21 = vld [vmem:[%s2838_s1 + $0xf8] sm:$0xff] }
  0x11   : > { %2292 = vmatpush.bf16.msra.mxu1 %v2166_v1  ;;  %2293 = vmatpush.bf16.msra.mxu2 %v2166_v1  ;;  %v1785_v10 = vld [vmem:[%s2431_s7 + $0x140] sm:$0xf]  ;;  %v2127_v11 = vld [vmem:[%s2431_s7 + $0x150] sm:$0xf0]  ;;  %v1706_v18 = vor.u32 %v2107_v9, %v1705_v8  ;;  %v2199_v24 = vld [vmem:[%s2838_s1 + $0x138] sm:$0xff] }
  0x12   : > { %1033 = vmatpush.bf16.msra.mxu0 %v2166_v1  ;;  %2294 = vmatpush.bf16.msra.mxu3 %v2166_v1  ;;  %v1625_v13 = vld [vmem:[%s2431_s7] sm:$0xf]  ;;  %v2087_v14 = vld [vmem:[%s2431_s7 + $0x10] sm:$0xf0]  ;;  %v1786_v19 = vor.u32 %v2127_v11, %v1785_v10  ;;  %v2173_v29 = vld [vmem:[%s2838_s1 + $0x68] sm:$0xff] }
  0x13   : > { %v1865_v16 = vld [vmem:[%s2431_s7 + $0x1e0] sm:$0xf]  ;;  %v2147_v17 = vld [vmem:[%s2431_s7 + $0x1f0] sm:$0xf0]  ;;  %v1626_v20 = vor.u32 %v2087_v14, %v1625_v13  ;;  %v2189_v30 = vld [vmem:[%s2838_s1 + $0xe8] sm:$0xff] }
  0x14   : > { %v1866_v23 = vor.u32 %v2147_v17, %v1865_v16  ;;  %v2174_v25 = vld [vmem:[%s2838_s1 + $0x70] sm:$0xff]  ;;  %v2180_v31 = vld [vmem:[%s2838_s1 + $0xa0] sm:$0xff]  ;;  %v2197_v32 = vld [vmem:[%s2838_s1 + $0x128] sm:$0xff] }
  0x15   : > { %2295 = vmatpush.bf16.msra.mxu1 %v2165_v2  ;;  %2296 = vmatpush.bf16.msra.mxu2 %v2165_v2  ;;  %v2190_v26 = vld [vmem:[%s2838_s1 + $0xf0] sm:$0xff]  ;;  %v2172_v33 = vld [vmem:[%s2838_s1 + $0x60] sm:$0xff]  ;;  %v1725_v34 = vld [vmem:[%s2431_s7 + $0xc8] sm:$0xf] }
  0x16   : > { %1034 = vmatpush.bf16.msra.mxu0 %v2165_v2  ;;  %2297 = vmatpush.bf16.msra.mxu3 %v2165_v2  ;;  %v2198_v28 = vld [vmem:[%s2838_s1 + $0x130] sm:$0xff]  ;;  %v2112_v35 = vld [vmem:[%s2431_s7 + $0xd8] sm:$0xf0]  ;;  %v1805_v36 = vld [vmem:[%s2431_s7 + $0x168] sm:$0xf] }
  0x17   : > { %v2132_v37 = vld [vmem:[%s2431_s7 + $0x178] sm:$0xf0]  ;;  %v1645_v38 = vld [vmem:[%s2431_s7 + $0x28] sm:$0xf]  ;;  %v2188_v39 = vld [vmem:[%s2838_s1 + $0xe0] sm:$0xff]  ;;  %v1726_v46 = vor.u32 %v2112_v35, %v1725_v34 }
  0x18   : > { %v2092_v40 = vld [vmem:[%s2431_s7 + $0x38] sm:$0xf0]  ;;  %v1885_v41 = vld [vmem:[%s2431_s7 + $0x208] sm:$0xf]  ;;  %v2196_v44 = vld [vmem:[%s2838_s1 + $0x120] sm:$0xff]  ;;  %v1806_v47 = vor.u32 %v2132_v37, %v1805_v36 }
  0x19   : > { %2298 = vmatpush.bf16.msra.mxu1 %v2164_v3  ;;  %2299 = vmatpush.bf16.msra.mxu2 %v2164_v3  ;;  %v2179_v42 = vld [vmem:[%s2838_s1 + $0x98] sm:$0xff]  ;;  %v1646_v48 = vor.u32 %v2092_v40, %v1645_v38  ;;  %v2178_v51 = vld [vmem:[%s2838_s1 + $0x90] sm:$0xff]  ;;  %v2177_v55 = vld [vmem:[%s2838_s1 + $0x88] sm:$0xff] }
  0x1a   : > { %1035 = vmatpush.bf16.msra.mxu0 %v2164_v3  ;;  %2300 = vmatpush.bf16.msra.mxu3 %v2164_v3  ;;  %v2152_v43 = vld [vmem:[%s2431_s7 + $0x218] sm:$0xf0]  ;;  %v2170_v53 = vld [vmem:[%s2838_s1 + $0x50] sm:$0xff]  ;;  %v2169_v57 = vld [vmem:[%s2838_s1 + $0x48] sm:$0xff] }
  0x1b   : > { %v2171_v45 = vld [vmem:[%s2838_s1 + $0x58] sm:$0xff]  ;;  %v1886_v50 = vor.u32 %v2152_v43, %v1885_v41  ;;  %v2186_v54 = vld [vmem:[%s2838_s1 + $0xd0] sm:$0xff]  ;;  %v2185_v58 = vld [vmem:[%s2838_s1 + $0xc8] sm:$0xff] }
  0x1c   : > { %v2187_v49 = vld [vmem:[%s2838_s1 + $0xd8] sm:$0xff]  ;;  %v2194_v56 = vld [vmem:[%s2838_s1 + $0x110] sm:$0xff]  ;;  %v2176_v59 = vld [vmem:[%s2838_s1 + $0x80] sm:$0xff] }
  0x1d   : > { %2301 = vmatpush.bf16.msra.mxu1 %v2163_v4  ;;  %2302 = vmatpush.bf16.msra.mxu2 %v2163_v4  ;;  %v2195_v52 = vld [vmem:[%s2838_s1 + $0x118] sm:$0xff]  ;;  %v2193_v60 = vld [vmem:[%s2838_s1 + $0x108] sm:$0xff]  ;;  %v2168_v61 = vld [vmem:[%s2838_s1 + $0x40] sm:$0xff] }
  0x1e   : > { %1036 = vmatpush.bf16.msra.mxu0 %v2163_v4  ;;  %2303 = vmatpush.bf16.msra.mxu3 %v2163_v4  ;;  %v1745_v62 = vld [vmem:[%s2431_s7 + $0xf0] sm:$0xf]  ;;  %v2117_v63 = vld [vmem:[%s2431_s7 + $0x100] sm:$0xf0]  ;;  %v2122_v13 = vld [vmem:[%s2431_s7 + $0x128] sm:$0xf0] }
  0x1f   : > { %v1825_v0 = vld [vmem:[%s2431_s7 + $0x190] sm:$0xf]  ;;  %v2137_v1 = vld [vmem:[%s2431_s7 + $0x1a0] sm:$0xf0]  ;;  %v1746_v8 = vor.u32 %v2117_v63, %v1745_v62  ;;  %v1845_v14 = vld [vmem:[%s2431_s7 + $0x1b8] sm:$0xf] }
  0x20   : > { %v2184_v2 = vld [vmem:[%s2838_s1 + $0xc0] sm:$0xff]  ;;  %v1665_v3 = vld [vmem:[%s2431_s7 + $0x50] sm:$0xf]  ;;  %v1826_v9 = vor.u32 %v2137_v1, %v1825_v0  ;;  %v1685_v16 = vld [vmem:[%s2431_s7 + $0x78] sm:$0xf] }
  0x21   : > { %2304 = vmatpush.bf16.msra.mxu1 %v2162_v5  ;;  %2305 = vmatpush.bf16.msra.mxu2 %v2162_v5  ;;  %v2097_v4 = vld [vmem:[%s2431_s7 + $0x60] sm:$0xf0]  ;;  %v2102_v17 = vld [vmem:[%s2431_s7 + $0x88] sm:$0xf0]  ;;  %v1647_v37 = vld [vmem:[%s2431_s7 + $0x3c] sm:$0xf0] }
  0x22   : > { %1037 = vmatpush.bf16.msra.mxu0 %v2162_v5  ;;  %2306 = vmatpush.bf16.msra.mxu3 %v2162_v5  ;;  %v1905_v5 = vld [vmem:[%s2431_s7 + $0x230] sm:$0xf]  ;;  %v1666_v10 = vor.u32 %v2097_v4, %v1665_v3  ;;  %v2090_v36 = vld [vmem:[%s2431_s7 + $0x2c] sm:$0xf]  ;;  %v1661_v40 = vld [vmem:[%s2431_s7 + $0x38] sm:$0xf] }
  0x23   : > { %v1653_v38 = vld [vmem:[%s2431_s7 + $0x30] sm:$0xf]  ;;  %v2094_v41 = vld [vmem:[%s2431_s7 + $0x48] sm:$0xf0]  ;;  %v1693_v62 = vld [vmem:[%s2431_s7 + $0x80] sm:$0xf] }
  0x24   : > { %v1675_v43 = vld [vmem:[%s2431_s7 + $0x6c] sm:$0xf0]  ;;  %v2103_v63 = vld [vmem:[%s2431_s7 + $0x90] sm:$0xf0]  ;;  %v1701_v0 = vld [vmem:[%s2431_s7 + $0x88] sm:$0xf] }
  0x25   : > { %2307 = vmatpush.bf16.msra.mxu1 %v2161_v6  ;;  %2308 = vmatpush.bf16.msra.mxu2 %v2161_v6  ;;  %v2104_v1 = vld [vmem:[%s2431_s7 + $0x98] sm:$0xf0]  ;;  %v1715_v3 = vld [vmem:[%s2431_s7 + $0xbc] sm:$0xf0] }
  0x26   : > { %1038 = vmatpush.bf16.msra.mxu0 %v2161_v6  ;;  %2309 = vmatpush.bf16.msra.mxu3 %v2161_v6  ;;  %v2157_v6 = vld [vmem:[%s2431_s7 + $0x240] sm:$0xf0] }
  0x27   : > { %v1906_v11 = vor.u32 %v2157_v6, %v1905_v5  ;;  %v1694_v5 = vor.u32 %v2103_v63, %v1693_v62  ;;  %v1702_v6 = vor.u32 %v2104_v1, %v1701_v0  ;;  %v2119_v62 = vld [vmem:[%s2431_s7 + $0x110] sm:$0xf0]  ;;  %v2121_v0 = vld [vmem:[%s2431_s7 + $0x124] sm:$0xf]  ;;  %v1775_v1 = vld [vmem:[%s2431_s7 + $0x134] sm:$0xf0] }
  0x29   : > { %2310 = vmatpush.bf16.msra.mxu1 %v2160_v7  ;;  %2311 = vmatpush.bf16.msra.mxu2 %v2160_v7 }
  0x2a   : > { %1039 = vmatpush.bf16.msra.mxu0 %v2160_v7  ;;  %2312 = vmatpush.bf16.msra.mxu3 %v2160_v7  ;;  %v2192_v7 = vld [vmem:[%s2838_s1 + $0x100] sm:$0xff] }
  0x2c   : > { %1060 = vmatmul.bf16.vlgmr.msra.gmra.mxu1 %v1706_v18  ;;  %1080 = vmatmul.bf16.vlgmr.msra.gmra.mxu2 %v1786_v19  ;;  %v2086_v18 = vld [vmem:[%s2431_s7 + $0xc] sm:$0xf]  ;;  %v1635_v19 = vld [vmem:[%s2431_s7 + $0x1c] sm:$0xf0] }
  0x2d   : > { %1200 = vmatpush.bf16.msrb.mxu2 %v2183_v12  ;;  %1116 = vmatpush.bf16.msrb.mxu1 %v2175_v15  ;;  %v1765_v12 = vld [vmem:[%s2431_s7 + $0x118] sm:$0xf]  ;;  %v2142_v15 = vld [vmem:[%s2431_s7 + $0x1c8] sm:$0xf0] }
  0x2e   : > { %1040 = vmatmul.bf16.vlgmr.msra.gmra.mxu0 %v1626_v20  ;;  %1284 = vmatpush.bf16.msrb.mxu3 %v2191_v21  ;;  %v1766_v20 = vor.u32 %v2122_v13, %v1765_v12  ;;  %v1846_v21 = vor.u32 %v2142_v15, %v1845_v14  ;;  %v2603_v12 = vld [vmem:[%s2839_s2] ss:$0 sm:$0xff]  ;;  %v1721_v13 = vld [vmem:[%s2431_s7 + $0xb0] sm:$0xf]  ;;  %v2109_v14 = vld [vmem:[%s2431_s7 + $0xc0] sm:$0xf0] }
  0x2f   : > { %1100 = vmatmul.bf16.vlgmr.msra.gmra.mxu3 %v1866_v23  ;;  %1368 = vmatpush.bf16.msrb.mxu0 %v2199_v24  ;;  %v1638_v23 = vor.u32 %v2086_v18, %v1635_v19  ;;  %v2085_v24 = vld [vmem:[%s2431_s7 + $0x4] sm:$0xf]  ;;  %v2111_v15 = vld [vmem:[%s2431_s7 + $0xd4] sm:$0xf] }
  0x31   : > { %1201 = vmatpush.bf16.msrb.mxu2 %v2182_v22  ;;  %1117 = vmatpush.bf16.msrb.mxu1 %v2174_v25  ;;  %v1686_v22 = vor.u32 %v2102_v17, %v1685_v16  ;;  %v1627_v25 = vld [vmem:[%s2431_s7 + $0x14] sm:$0xf0]  ;;  %v1735_v16 = vld [vmem:[%s2431_s7 + $0xe4] sm:$0xf0] }
  0x32   : > { %1285 = vmatpush.bf16.msrb.mxu3 %v2190_v26  ;;  %v1633_v26 = vld [vmem:[%s2431_s7 + $0x8] sm:$0xf] }
  0x33   : > { %1369 = vmatpush.bf16.msrb.mxu0 %v2198_v28  ;;  %v1641_v28 = vld [vmem:[%s2431_s7 + $0x10] sm:$0xf] }
  0x35   : > { %1202 = vmatpush.bf16.msrb.mxu2 %v2181_v27  ;;  %1118 = vmatpush.bf16.msrb.mxu1 %v2173_v29  ;;  %v2088_v27 = vld [vmem:[%s2431_s7 + $0x18] sm:$0xf0]  ;;  %v2089_v29 = vld [vmem:[%s2431_s7 + $0x20] sm:$0xf0] }
  0x36   : > { %1286 = vmatpush.bf16.msrb.mxu3 %v2189_v30  ;;  %v2091_v30 = vld [vmem:[%s2431_s7 + $0x34] sm:$0xf]  ;;  %v1642_v34 = vor.u32 %v2089_v29, %v1641_v28 }
  0x37   : > { %1370 = vmatpush.bf16.msrb.mxu0 %v2197_v32  ;;  %v1630_v32 = vor.u32 %v2085_v24, %v1627_v25 }
  0x39   : > { %1203 = vmatpush.bf16.msrb.mxu2 %v2180_v31  ;;  %1119 = vmatpush.bf16.msrb.mxu1 %v2172_v33  ;;  %v1655_v31 = vld [vmem:[%s2431_s7 + $0x44] sm:$0xf0]  ;;  %v1634_v33 = vor.u32 %v2088_v27, %v1633_v26 }
  0x3a   : > { %1287 = vmatpush.bf16.msrb.mxu3 %v2188_v39  ;;  %v1658_v35 = vor.u32 %v2091_v30, %v1655_v31  ;;  %v2093_v39 = vld [vmem:[%s2431_s7 + $0x40] sm:$0xf0]  ;;  %v2110_v31 = vld [vmem:[%s2431_s7 + $0xcc] sm:$0xf] }
  0x3b   : > { %1371 = vmatpush.bf16.msrb.mxu0 %v2196_v44  ;;  %v1650_v44 = vor.u32 %v2090_v36, %v1647_v37  ;;  %v2114_v36 = vld [vmem:[%s2431_s7 + $0xe8] sm:$0xf0] }
  0x3c   : > { %1065 = vmatmul.bf16.gmra.mxu1 %v1726_v46  ;;  %1085 = vmatmul.bf16.gmra.mxu2 %v1806_v47  ;;  %v1662_v46 = vor.u32 %v2094_v41, %v1661_v40 }
  0x3d   : > { %1204 = vmatpush.bf16.msrb.mxu2 %v2179_v42  ;;  %1120 = vmatpush.bf16.msrb.mxu1 %v2171_v45  ;;  %v2096_v42 = vld [vmem:[%s2431_s7 + $0x5c] sm:$0xf]  ;;  %v1654_v45 = vor.u32 %v2093_v39, %v1653_v38  ;;  %v1755_v39 = vld [vmem:[%s2431_s7 + $0x10c] sm:$0xf0] }
  0x3e   : > { %1045 = vmatmul.bf16.gmra.mxu0 %v1646_v48  ;;  %1288 = vmatpush.bf16.msrb.mxu3 %v2187_v49  ;;  %v1678_v47 = vor.u32 %v2096_v42, %v1675_v43  ;;  %v2095_v48 = vld [vmem:[%s2431_s7 + $0x54] sm:$0xf]  ;;  %v1667_v49 = vld [vmem:[%s2431_s7 + $0x64] sm:$0xf0]  ;;  %v2116_v38 = vld [vmem:[%s2431_s7 + $0xfc] sm:$0xf] }
  0x3f   : > { %1105 = vmatmul.bf16.gmra.mxu3 %v1886_v50  ;;  %1372 = vmatpush.bf16.msrb.mxu0 %v2195_v52  ;;  %v1673_v50 = vld [vmem:[%s2431_s7 + $0x58] sm:$0xf]  ;;  %v1681_v52 = vld [vmem:[%s2431_s7 + $0x60] sm:$0xf] }
  0x41   : > { %1205 = vmatpush.bf16.msrb.mxu2 %v2178_v51  ;;  %1121 = vmatpush.bf16.msrb.mxu1 %v2170_v53  ;;  %v2098_v51 = vld [vmem:[%s2431_s7 + $0x68] sm:$0xf0]  ;;  %v2099_v53 = vld [vmem:[%s2431_s7 + $0x70] sm:$0xf0] }
  0x42   : > { %1289 = vmatpush.bf16.msrb.mxu3 %v2186_v54  ;;  %v2101_v54 = vld [vmem:[%s2431_s7 + $0x84] sm:$0xf] }
  0x43   : > { %1373 = vmatpush.bf16.msrb.mxu0 %v2194_v56  ;;  %v1670_v56 = vor.u32 %v2095_v48, %v1667_v49  ;;  %v1758_v49 = vor.u32 %v2116_v38, %v1755_v39 }
  0x45   : > { %1206 = vmatpush.bf16.msrb.mxu2 %v2177_v55  ;;  %1122 = vmatpush.bf16.msrb.mxu1 %v2169_v57  ;;  %v1695_v55 = vld [vmem:[%s2431_s7 + $0x94] sm:$0xf0]  ;;  %v1674_v57 = vor.u32 %v2098_v51, %v1673_v50 }
  0x46   : > { %1290 = vmatpush.bf16.msrb.mxu3 %v2185_v58  ;;  %v1682_v58 = vor.u32 %v2099_v53, %v1681_v52 }
  0x47   : > { %1374 = vmatpush.bf16.msrb.mxu0 %v2193_v60  ;;  %v2100_v60 = vld [vmem:[%s2431_s7 + $0x7c] sm:$0xf] }
  0x49   : > { %1207 = vmatpush.bf16.msrb.mxu2 %v2176_v59  ;;  %1123 = vmatpush.bf16.msrb.mxu1 %v2168_v61  ;;  %v1698_v59 = vor.u32 %v2101_v54, %v1695_v55  ;;  %v1687_v61 = vld [vmem:[%s2431_s7 + $0x8c] sm:$0xf0] }
  0x4a   : > { %1291 = vmatpush.bf16.msrb.mxu3 %v2184_v2  ;;  %v2106_v2 = vld [vmem:[%s2431_s7 + $0xac] sm:$0xf]  ;;  %v1690_v4 = vor.u32 %v2100_v60, %v1687_v61  ;;  %v1761_v61 = vld [vmem:[%s2431_s7 + $0x100] sm:$0xf] }
  0x4b   : > { %1375 = vmatpush.bf16.msrb.mxu0 %v2192_v7  ;;  %v1718_v7 = vor.u32 %v2106_v2, %v1715_v3  ;;  %v2118_v60 = vld [vmem:[%s2431_s7 + $0x108] sm:$0xf0] }
  0x4c   : > { %1070 = vmatmul.bf16.gmra.mxu1 %v1746_v8  ;;  %1090 = vmatmul.bf16.gmra.mxu2 %v1826_v9  ;;  %v2105_v8 = vld [vmem:[%s2431_s7 + $0xa4] sm:$0xf]  ;;  %v1707_v9 = vld [vmem:[%s2431_s7 + $0xb4] sm:$0xf0] }
  0x4d   : > { %v1710_v17 = vor.u32 %v2105_v8, %v1707_v9 }
  0x4e   : > { %1050 = vmatmul.bf16.gmra.mxu0 %v1666_v10  ;;  %v1713_v10 = vld [vmem:[%s2431_s7 + $0xa8] sm:$0xf] }
  0x4f   : > { %1110 = vmatmul.bf16.gmra.mxu3 %v1906_v11  ;;  %v2108_v11 = vld [vmem:[%s2431_s7 + $0xb8] sm:$0xf0] }
  0x50   : > { %v1714_v18 = vor.u32 %v2108_v11, %v1713_v10  ;;  %v1778_v11 = vor.u32 %v2121_v0, %v1775_v1  ;;  %v2129_v0 = vld [vmem:[%s2431_s7 + $0x160] sm:$0xf0] }
  0x5c   : > { %1075 = vmatmul.bf16.gmra.mxu1 %v1766_v20  ;;  %1095 = vmatmul.bf16.gmra.mxu2 %v1846_v21  ;;  %v1722_v20 = vor.u32 %v2109_v14, %v1721_v13 }
  0x5e   : > { %1055 = vmatmul.bf16.gmra.mxu0 %v1686_v22 }
  0x5f   : > { %1292 = vmatmul.bf16.vlgmr.msrb.gmra.mxu3 %v1638_v23  ;;  %v1738_v23 = vor.u32 %v2111_v15, %v1735_v16 }
  0x6c   : > { %1124 = vmatmul.bf16.vlgmr.msrb.gmra.mxu1 %v1630_v32  ;;  %1208 = vmatmul.bf16.vlgmr.msrb.gmra.mxu2 %v1634_v33  ;;  %v1727_v32 = vld [vmem:[%s2431_s7 + $0xdc] sm:$0xf0]  ;;  %v1733_v33 = vld [vmem:[%s2431_s7 + $0xd0] sm:$0xf] }
  0x6d   : > { %v1730_v41 = vor.u32 %v2110_v31, %v1727_v32  ;;  %v2124_v31 = vld [vmem:[%s2431_s7 + $0x138] sm:$0xf0] }
  0x6e   : > { %1376 = vmatmul.bf16.vlgmr.msrb.gmra.mxu0 %v1642_v34  ;;  %v2113_v34 = vld [vmem:[%s2431_s7 + $0xe0] sm:$0xf0] }
  0x6f   : > { %1297 = vmatmul.bf16.gmra.mxu3 %v1658_v35  ;;  %v1741_v35 = vld [vmem:[%s2431_s7 + $0xd8] sm:$0xf]  ;;  %v1734_v42 = vor.u32 %v2113_v34, %v1733_v33  ;;  %v2126_v33 = vld [vmem:[%s2431_s7 + $0x14c] sm:$0xf]  ;;  %v1795_v34 = vld [vmem:[%s2431_s7 + $0x15c] sm:$0xf0] }
  0x7c   : > { %1129 = vmatmul.bf16.gmra.mxu1 %v1650_v44  ;;  %1213 = vmatmul.bf16.gmra.mxu2 %v1654_v45  ;;  %v1742_v44 = vor.u32 %v2114_v36, %v1741_v35 }
  0x7e   : > { %1381 = vmatmul.bf16.gmra.mxu0 %v1662_v46 }
  0x7f   : > { %1302 = vmatmul.bf16.gmra.mxu3 %v1678_v47 }
  0x8c   : > { %1134 = vmatmul.bf16.gmra.mxu1 %v1670_v56  ;;  %1218 = vmatmul.bf16.gmra.mxu2 %v1674_v57  ;;  %v2115_v57 = vld [vmem:[%s2431_s7 + $0xf4] sm:$0xf] }
  0x8e   : > { %1386 = vmatmul.bf16.gmra.mxu0 %v1682_v58  ;;  %v1747_v58 = vld [vmem:[%s2431_s7 + $0x104] sm:$0xf0] }
  0x8f   : > { %1307 = vmatmul.bf16.gmra.mxu3 %v1698_v59  ;;  %v1753_v59 = vld [vmem:[%s2431_s7 + $0xf8] sm:$0xf]  ;;  %v1750_v3 = vor.u32 %v2115_v57, %v1747_v58 }
  0x9c   : > { %1139 = vmatmul.bf16.gmra.mxu1 %v1690_v4  ;;  %1223 = vmatmul.bf16.gmra.mxu2 %v1694_v5  ;;  %v1754_v4 = vor.u32 %v2118_v60, %v1753_v59  ;;  %v2125_v59 = vld [vmem:[%s2431_s7 + $0x144] sm:$0xf]  ;;  %v1787_v60 = vld [vmem:[%s2431_s7 + $0x154] sm:$0xf0] }
  0x9e   : > { %1391 = vmatmul.bf16.gmra.mxu0 %v1702_v6  ;;  %v1762_v6 = vor.u32 %v2119_v62, %v1761_v61  ;;  %v1793_v61 = vld [vmem:[%s2431_s7 + $0x148] sm:$0xf]  ;;  %v2128_v62 = vld [vmem:[%s2431_s7 + $0x158] sm:$0xf0] }
  0x9f   : > { %1312 = vmatmul.bf16.gmra.mxu3 %v1718_v7 }
  0xa9   : > { %v1061_v19 = vpop.f32.mrf.mxu1 }
  0xaa   : > { %v2610_v21 = vadd.f32 %v2603_v12, %v1061_v19 }
  0xab   : > { %v2612_v22 = vpop.f32.mrf.mxu0 }
  0xac   : > { %1144 = vmatmul.bf16.gmra.mxu1 %v1710_v17  ;;  %1228 = vmatmul.bf16.gmra.mxu2 %v1714_v18 }
  0xae   : > { %1396 = vmatmul.bf16.gmra.mxu0 %v1722_v20  ;;  %v2120_v20 = vld [vmem:[%s2431_s7 + $0x11c] sm:$0xf] }
  0xaf   : > { %1317 = vmatmul.bf16.gmra.mxu3 %v1738_v23  ;;  %v1081_v24 = vpop.f32.mrf.mxu2  ;;  %v1767_v23 = vld [vmem:[%s2431_s7 + $0x12c] sm:$0xf0] }
  0xb0   : > { %v2615_v25 = vadd.f32 %v2603_v12, %v1081_v24  ;;  %v1773_v24 = vld [vmem:[%s2431_s7 + $0x120] sm:$0xf]  ;;  %v1770_v36 = vor.u32 %v2120_v20, %v1767_v23 }
  0xb1   : > { %v1063_v26 = vpop.f32.mrf.mxu1 }
  0xb2   : > { %v1101_v27 = vpop.f32.mrf.mxu3  ;;  %v2618_v28 = vadd.f32 %v2603_v12, %v1063_v26  ;;  %v2123_v26 = vld [vmem:[%s2431_s7 + $0x130] sm:$0xf0] }
  0xb3   : > { %v2620_v29 = vpop.f32.mrf.mxu0  ;;  %v2623_v30 = vadd.f32 %v2603_v12, %v1101_v27  ;;  %v1781_v27 = vld [vmem:[%s2431_s7 + $0x128] sm:$0xf] }
  0xb4   : > { %v1782_v39 = vor.u32 %v2124_v31, %v1781_v27 }
  0xb7   : > { %v1083_v37 = vpop.f32.mrf.mxu2 }
  0xb8   : > { %v2634_v40 = vadd.f32 %v2603_v12, %v1083_v37  ;;  %v1774_v37 = vor.u32 %v2123_v26, %v1773_v24  ;;  %v1042_v24 = vadd.f32 %v2603_v12, %v2612_v22  ;;  %v1835_v22 = vld [vmem:[%s2431_s7 + $0x1ac] sm:$0xf0] }
  0xb9   : > { %v1066_v43 = vpop.f32.mrf.mxu1 }
  0xba   : > { %v1103_v45 = vpop.f32.mrf.mxu3  ;;  %v2637_v46 = vadd.f32 %v2603_v12, %v1066_v43 }
  0xbb   : > { %v2639_v47 = vpop.f32.mrf.mxu0  ;;  %v2642_v48 = vadd.f32 %v2603_v12, %v1103_v45  ;;  %v1798_v45 = vor.u32 %v2126_v33, %v1795_v34  ;;  %v1044_v33 = vadd.f32 %v2603_v12, %v2620_v29 }
  0xbc   : > { %1149 = vmatmul.bf16.gmra.mxu1 %v1730_v41  ;;  %1233 = vmatmul.bf16.gmra.mxu2 %v1734_v42 }
  0xbe   : > { %1401 = vmatmul.bf16.gmra.mxu0 %v1742_v44 }
  0xbf   : > { %1322 = vmatmul.bf16.gmra.mxu3 %v1758_v49  ;;  %v1086_v50 = vpop.f32.mrf.mxu2 }
  0xc0   : > { %v2645_v51 = vadd.f32 %v2603_v12, %v1086_v50 }
  0xc1   : > { %v1068_v52 = vpop.f32.mrf.mxu1 }
  0xc2   : > { %v1106_v53 = vpop.f32.mrf.mxu3  ;;  %v2648_v54 = vadd.f32 %v2603_v12, %v1068_v52 }
  0xc3   : > { %v2650_v55 = vpop.f32.mrf.mxu0  ;;  %v2653_v56 = vadd.f32 %v2603_v12, %v1106_v53 }
  0xc7   : > { %v1088_v63 = vpop.f32.mrf.mxu2 }
  0xc8   : > { %v2664_v2 = vadd.f32 %v2603_v12, %v1088_v63  ;;  %v1801_v63 = vld [vmem:[%s2431_s7 + $0x150] sm:$0xf] }
  0xc9   : > { %v1071_v5 = vpop.f32.mrf.mxu1 }
  0xca   : > { %v1108_v7 = vpop.f32.mrf.mxu3  ;;  %v2667_v8 = vadd.f32 %v2603_v12, %v1071_v5 }
  0xcb   : > { %v2669_v9 = vpop.f32.mrf.mxu0  ;;  %v2672_v10 = vadd.f32 %v2603_v12, %v1108_v7  ;;  %v1794_v7 = vor.u32 %v2128_v62, %v1793_v61 }
  0xcc   : > { %1154 = vmatmul.bf16.gmra.mxu1 %v1750_v3  ;;  %1238 = vmatmul.bf16.gmra.mxu2 %v1754_v4  ;;  %v2131_v3 = vld [vmem:[%s2431_s7 + $0x174] sm:$0xf]  ;;  %v1815_v4 = vld [vmem:[%s2431_s7 + $0x184] sm:$0xf0] }
  0xcd   : > { %v1818_v20 = vor.u32 %v2131_v3, %v1815_v4 }
  0xce   : > { %1406 = vmatmul.bf16.gmra.mxu0 %v1762_v6  ;;  %v1790_v6 = vor.u32 %v2125_v59, %v1787_v60  ;;  %v2136_v59 = vld [vmem:[%s2431_s7 + $0x19c] sm:$0xf] }
  0xcf   : > { %1327 = vmatmul.bf16.gmra.mxu3 %v1778_v11  ;;  %v1091_v13 = vpop.f32.mrf.mxu2 }
  0xd0   : > { %v2675_v14 = vadd.f32 %v2603_v12, %v1091_v13  ;;  %v1802_v13 = vor.u32 %v2129_v0, %v1801_v63 }
  0xd1   : > { %v1073_v15 = vpop.f32.mrf.mxu1 }
  0xd2   : > { %v1111_v16 = vpop.f32.mrf.mxu3  ;;  %v2678_v17 = vadd.f32 %v2603_v12, %v1073_v15 }
  0xd3   : > { %v2680_v18 = vpop.f32.mrf.mxu0  ;;  %v2683_v19 = vadd.f32 %v2603_v12, %v1111_v16 }
  0xd7   : > { %v1093_v32 = vpop.f32.mrf.mxu2 }
  0xd8   : > { %v2694_v35 = vadd.f32 %v2603_v12, %v1093_v32 }
  0xd9   : > { %v1076_v38 = vpop.f32.mrf.mxu1 }
  0xda   : > { %v1113_v41 = vpop.f32.mrf.mxu3  ;;  %v2697_v42 = vadd.f32 %v2603_v12, %v1076_v38  ;;  %v1813_v38 = vld [vmem:[%s2431_s7 + $0x170] sm:$0xf] }
  0xdb   : > { %v2699_v43 = vpop.f32.mrf.mxu0  ;;  %v2702_v44 = vadd.f32 %v2603_v12, %v1113_v41 }
  0xdc   : > { %1159 = vmatmul.bf16.gmra.mxu1 %v1770_v36  ;;  %1243 = vmatmul.bf16.gmra.mxu2 %v1774_v37  ;;  %v2130_v36 = vld [vmem:[%s2431_s7 + $0x16c] sm:$0xf]  ;;  %v1807_v37 = vld [vmem:[%s2431_s7 + $0x17c] sm:$0xf0] }
  0xdd   : > { %v1810_v62 = vor.u32 %v2130_v36, %v1807_v37  ;;  %v2138_v36 = vld [vmem:[%s2431_s7 + $0x1a8] sm:$0xf0] }
  0xde   : > { %1411 = vmatmul.bf16.gmra.mxu0 %v1782_v39  ;;  %v2133_v39 = vld [vmem:[%s2431_s7 + $0x180] sm:$0xf0] }
  0xdf   : > { %1332 = vmatmul.bf16.gmra.mxu3 %v1798_v45  ;;  %v1096_v49 = vpop.f32.mrf.mxu2  ;;  %v1821_v45 = vld [vmem:[%s2431_s7 + $0x178] sm:$0xf]  ;;  %v1814_v63 = vor.u32 %v2133_v39, %v1813_v38  ;;  %v1841_v38 = vld [vmem:[%s2431_s7 + $0x1a0] sm:$0xf]  ;;  %v2139_v39 = vld [vmem:[%s2431_s7 + $0x1b0] sm:$0xf0] }
  0xe0   : > { %v2705_v50 = vadd.f32 %v2603_v12, %v1096_v49  ;;  %v2134_v49 = vld [vmem:[%s2431_s7 + $0x188] sm:$0xf0] }
  0xe1   : > { %v1078_v52 = vpop.f32.mrf.mxu1 }
  0xe2   : > { %v1293_v53 = vpop.f32.mrf.mxu3  ;;  %v2708_v57 = vadd.f32 %v2603_v12, %v1078_v52 }
  0xe3   : > { %v2710_v58 = vpop.f32.mrf.mxu0 }
  0xe7   : > { %v1098_v1 = vpop.f32.mrf.mxu2 }
  0xe8   : > { %v2721_v5 = vadd.f32 %v2603_v12, %v1098_v1  ;;  %v1822_v1 = vor.u32 %v2134_v49, %v1821_v45  ;;  %v1855_v45 = vld [vmem:[%s2431_s7 + $0x1d4] sm:$0xf0] }
  0xe9   : > { %v1125_v11 = vpop.f32.mrf.mxu1 }
  0xea   : > { %v1295_v15 = vpop.f32.mrf.mxu3  ;;  %v1126_v31 = vadd.f32 %v1125_v11, %v1042_v24 }
  0xeb   : > { %v1377_v16 = vpop.f32.mrf.mxu0 }
  0xec   : > { %1164 = vmatmul.bf16.gmra.mxu1 %v1790_v6  ;;  %1248 = vmatmul.bf16.gmra.mxu2 %v1794_v7  ;;  %v1838_v6 = vor.u32 %v2136_v59, %v1835_v22 }
  0xee   : > { %1416 = vmatmul.bf16.gmra.mxu0 %v1802_v13 }
  0xef   : > { %1337 = vmatmul.bf16.gmra.mxu3 %v1818_v20  ;;  %v1209_v23 = vpop.f32.mrf.mxu2 }
  0xf0   : > { %v1210_v34 = vadd.f32 %v1209_v23, %v1126_v31 }
  0xf1   : > { %v1127_v26 = vpop.f32.mrf.mxu1 }
  0xf2   : > { %v1298_v27 = vpop.f32.mrf.mxu3  ;;  %v1128_v41 = vadd.f32 %v1127_v26, %v1044_v33  ;;  %v1294_v60 = vadd.f32 %v1293_v53, %v1210_v34  ;;  %v1049_v26 = vadd.f32 %v2603_v12, %v2650_v55  ;;  %v1827_v33 = vld [vmem:[%s2431_s7 + $0x1a4] sm:$0xf0]  ;;  %v1833_v34 = vld [vmem:[%s2431_s7 + $0x198] sm:$0xf] }
  0xf3   : > { %v1379_v32 = vpop.f32.mrf.mxu0  ;;  %v1834_v22 = vor.u32 %v2138_v36, %v1833_v34  ;;  %v1875_v36 = vld [vmem:[%s2431_s7 + $0x1fc] sm:$0xf0] }
  0xf4   : > { %v1378_v7 = vadd.f32 %v1377_v16, %v1294_v60 }
  0xf7   : > { %v1211_v52 = vpop.f32.mrf.mxu2 }
  0xf8   : > { %v1212_v61 = vadd.f32 %v1211_v52, %v1128_v41 }
  0xf9   : > { %v1130_v0 = vpop.f32.mrf.mxu1 }
  0xfa   : > { %v1300_v3 = vpop.f32.mrf.mxu3  ;;  %v1296_v29 = vadd.f32 %v1295_v15, %v1212_v61  ;;  %v1047_v15 = vadd.f32 %v2603_v12, %v2639_v47  ;;  %v2141_v47 = vld [vmem:[%s2431_s7 + $0x1c4] sm:$0xf]  ;;  %v1842_v61 = vor.u32 %v2139_v39, %v1841_v38 }
  0xfb   : > { %v1382_v4 = vpop.f32.mrf.mxu0 }
  0xfc   : > { %v1380_v11 = vadd.f32 %v1379_v32, %v1296_v29  ;;  %1169 = vmatmul.bf16.gmra.mxu1 %v1810_v62  ;;  %1253 = vmatmul.bf16.gmra.mxu2 %v1814_v63  ;;  %v1131_v23 = vadd.f32 %v1130_v0, %v1047_v15  ;;  %v2135_v32 = vld [vmem:[%s2431_s7 + $0x194] sm:$0xf]  ;;  %v1858_v0 = vor.u32 %v2141_v47, %v1855_v45 }
  0xfd   : > { %v1830_v59 = vor.u32 %v2135_v32, %v1827_v33  ;;  %v1861_v32 = vld [vmem:[%s2431_s7 + $0x1c8] sm:$0xf]  ;;  %v2144_v33 = vld [vmem:[%s2431_s7 + $0x1d8] sm:$0xf0] }
  0xfe   : > { %1421 = vmatmul.bf16.gmra.mxu0 %v1822_v1  ;;  %v2203_v53 = vpack.c.bf16 %v1380_v11, %v1378_v7  ;;  %v1052_v7 = vadd.f32 %v2603_v12, %v2669_v9  ;;  %v2146_v9 = vld [vmem:[%s2431_s7 + $0x1ec] sm:$0xf]  ;;  %v1862_v45 = vor.u32 %v2144_v33, %v1861_v32 }
  0xff   : > { %1342 = vmatmul.bf16.gmra.mxu3 %v1838_v6  ;;  %v1214_v13 = vpop.f32.mrf.mxu2 }
 0x100   : > { %2204 = vst [vmem:[%s2739_s16] sm:$0xff] %v2203_v53   ;;  %v1215_v31 = vadd.f32 %v1214_v13, %v1131_v23  ;;  %v1054_v13 = vadd.f32 %v2603_v12, %v2680_v18  ;;  %v1847_v23 = vld [vmem:[%s2431_s7 + $0x1cc] sm:$0xf0] }
 0x101   : > { %v1132_v16 = vpop.f32.mrf.mxu1 }
 0x102   : > { %v1303_v20 = vpop.f32.mrf.mxu3  ;;  %v1133_v37 = vadd.f32 %v1132_v16, %v1049_v26  ;;  %v1299_v49 = vadd.f32 %v1298_v27, %v1215_v31  ;;  %v2140_v16 = vld [vmem:[%s2431_s7 + $0x1bc] sm:$0xf]  ;;  %v2143_v26 = vld [vmem:[%s2431_s7 + $0x1d0] sm:$0xf0] }
 0x103   : > { %v1384_v24 = vpop.f32.mrf.mxu0  ;;  %v1850_v39 = vor.u32 %v2140_v16, %v1847_v23  ;;  %v1895_v23 = vld [vmem:[%s2431_s7 + $0x224] sm:$0xf0] }
 0x104   : > { %v1383_v1 = vadd.f32 %v1382_v4, %v1299_v49 }
 0x107   : > { %v1216_v41 = vpop.f32.mrf.mxu2 }
 0x108   : > { %v1217_v52 = vadd.f32 %v1216_v41, %v1133_v37 }
 0x109   : > { %v1135_v60 = vpop.f32.mrf.mxu1 }
 0x10a   : > { %v1305_v62 = vpop.f32.mrf.mxu3  ;;  %v1301_v55 = vadd.f32 %v1300_v3, %v1217_v52  ;;  %v1136_v11 = vadd.f32 %v1135_v60, %v1052_v7  ;;  %v1867_v7 = vld [vmem:[%s2431_s7 + $0x1f4] sm:$0xf0] }
 0x10b   : > { %v1387_v63 = vpop.f32.mrf.mxu0 }
 0x10c   : > { %v1385_v29 = vadd.f32 %v1384_v24, %v1301_v55  ;;  %1174 = vmatmul.bf16.gmra.mxu1 %v1830_v59  ;;  %1258 = vmatmul.bf16.gmra.mxu2 %v1834_v22  ;;  %v1853_v24 = vld [vmem:[%s2431_s7 + $0x1c0] sm:$0xf]  ;;  %v1878_v59 = vor.u32 %v2146_v9, %v1875_v36  ;;  %v1057_v55 = vadd.f32 %v2603_v12, %v2699_v43  ;;  %v2151_v43 = vld [vmem:[%s2431_s7 + $0x214] sm:$0xf] }
 0x10d   : > { %v1854_v41 = vor.u32 %v2143_v26, %v1853_v24  ;;  %v1898_v36 = vor.u32 %v2151_v43, %v1895_v23 }
 0x10e   : > { %1426 = vmatmul.bf16.gmra.mxu0 %v1842_v61  ;;  %v2208_v27 = vpack.c.bf16 %v1385_v29, %v1383_v1  ;;  %v1059_v29 = vadd.f32 %v2603_v12, %v2710_v58 }
 0x10f   : > { %1347 = vmatmul.bf16.gmra.mxu3 %v1858_v0  ;;  %v1219_v6 = vpop.f32.mrf.mxu2 }
 0x110   : > { %2275 = vst [vmem:[%s2739_s16 + $0x8] sm:$0xff] %v2208_v27   ;;  %v1220_v15 = vadd.f32 %v1219_v6, %v1136_v11  ;;  %v2145_v6 = vld [vmem:[%s2431_s7 + $0x1e4] sm:$0xf]  ;;  %v2148_v11 = vld [vmem:[%s2431_s7 + $0x1f8] sm:$0xf0] }
 0x111   : > { %v1137_v3 = vpop.f32.mrf.mxu1 }
 0x112   : > { %v1308_v4 = vpop.f32.mrf.mxu3  ;;  %v1138_v31 = vadd.f32 %v1137_v3, %v1054_v13  ;;  %v1304_v37 = vadd.f32 %v1303_v20, %v1220_v15  ;;  %v1873_v3 = vld [vmem:[%s2431_s7 + $0x1e8] sm:$0xf]  ;;  %v1881_v13 = vld [vmem:[%s2431_s7 + $0x1f0] sm:$0xf]  ;;  %v2149_v15 = vld [vmem:[%s2431_s7 + $0x200] sm:$0xf0] }
 0x113   : > { %v1389_v53 = vpop.f32.mrf.mxu0  ;;  %v1874_v32 = vor.u32 %v2148_v11, %v1873_v3 }
 0x114   : > { %v1388_v22 = vadd.f32 %v1387_v63, %v1304_v37 }
 0x117   : > { %v1221_v34 = vpop.f32.mrf.mxu2 }
 0x118   : > { %v1222_v38 = vadd.f32 %v1221_v34, %v1138_v31  ;;  %v1870_v31 = vor.u32 %v2145_v6, %v1867_v7  ;;  %v1882_v34 = vor.u32 %v2149_v15, %v1881_v13 }
 0x119   : > { %v1140_v47 = vpop.f32.mrf.mxu1 }
 0x11a   : > { %v1310_v49 = vpop.f32.mrf.mxu3  ;;  %v1306_v18 = vadd.f32 %v1305_v62, %v1222_v38  ;;  %v1141_v0 = vadd.f32 %v1140_v47, %v1057_v55  ;;  %v2154_v55 = vld [vmem:[%s2431_s7 + $0x228] sm:$0xf0] }
 0x11b   : > { %v1392_v52 = vpop.f32.mrf.mxu0 }
 0x11c   : > { %v1390_v60 = vadd.f32 %v1389_v53, %v1306_v18  ;;  %1179 = vmatmul.bf16.gmra.mxu1 %v1850_v39  ;;  %1263 = vmatmul.bf16.gmra.mxu2 %v1854_v41 }
 0x11e   : > { %1431 = vmatmul.bf16.gmra.mxu0 %v1862_v45  ;;  %v2213_v20 = vpack.c.bf16 %v1390_v60, %v1388_v22  ;;  %v1893_v22 = vld [vmem:[%s2431_s7 + $0x210] sm:$0xf]  ;;  %v2153_v60 = vld [vmem:[%s2431_s7 + $0x220] sm:$0xf0] }
 0x11f   : > { %1352 = vmatmul.bf16.gmra.mxu3 %v1878_v59  ;;  %v1224_v61 = vpop.f32.mrf.mxu2  ;;  %v1887_v59 = vld [vmem:[%s2431_s7 + $0x21c] sm:$0xf0]  ;;  %v1894_v7 = vor.u32 %v2153_v60, %v1893_v22 }
 0x120   : > { %2276 = vst [vmem:[%s2739_s16 + $0x10] sm:$0xff] %v2213_v20   ;;  %v1225_v27 = vadd.f32 %v1224_v61, %v1141_v0  ;;  %v1901_v61 = vld [vmem:[%s2431_s7 + $0x218] sm:$0xf]  ;;  %v2156_v0 = vld [vmem:[%s2431_s7 + $0x23c] sm:$0xf] }
 0x121   : > { %v1142_v62 = vpop.f32.mrf.mxu1 }
 0x122   : > { %v1313_v63 = vpop.f32.mrf.mxu3  ;;  %v1143_v53 = vadd.f32 %v1142_v62, %v1059_v29  ;;  %v1309_v24 = vadd.f32 %v1308_v4, %v1225_v27 }
 0x123   : > { %v1394_v1 = vpop.f32.mrf.mxu0 }
 0x124   : > { %v1393_v37 = vadd.f32 %v1392_v52, %v1309_v24  ;;  %v2150_v52 = vld [vmem:[%s2431_s7 + $0x20c] sm:$0xf] }
 0x125   : > { %v1890_v6 = vor.u32 %v2150_v52, %v1887_v59 }
 0x127   : > { %v1226_v16 = vpop.f32.mrf.mxu2 }
 0x128   : > { %v1227_v26 = vadd.f32 %v1226_v16, %v1143_v53 }
 0x129   : > { %v1145_v33 = vpop.f32.mrf.mxu1 }
 0x12a   : > { %v1315_v9 = vpop.f32.mrf.mxu3  ;;  %v1311_v12 = vadd.f32 %v1310_v49, %v1227_v26  ;;  %v1146_v45 = vadd.f32 %v1145_v33, %v2610_v21  ;;  %v1902_v21 = vor.u32 %v2154_v55, %v1901_v61  ;;  %v2155_v33 = vld [vmem:[%s2431_s7 + $0x234] sm:$0xf] }
 0x12b   : > { %v1397_v58 = vpop.f32.mrf.mxu0 }
 0x12c   : > { %v1395_v38 = vadd.f32 %v1394_v1, %v1311_v12  ;;  %1184 = vmatmul.bf16.gmra.mxu1 %v1870_v31  ;;  %1268 = vmatmul.bf16.gmra.mxu2 %v1874_v32  ;;  %v1915_v1 = vld [vmem:[%s2431_s7 + $0x24c] sm:$0xf0]  ;;  %v2158_v12 = vld [vmem:[%s2431_s7 + $0x248] sm:$0xf0] }
 0x12d   : > { %v1918_v15 = vor.u32 %v2156_v0, %v1915_v1 }
 0x12e   : > { %1436 = vmatmul.bf16.gmra.mxu0 %v1882_v34  ;;  %v2218_v4 = vpack.c.bf16 %v1395_v38, %v1393_v37  ;;  %v1907_v34 = vld [vmem:[%s2431_s7 + $0x244] sm:$0xf0]  ;;  %v2159_v37 = vld [vmem:[%s2431_s7 + $0x250] sm:$0xf0] }
 0x12f   : > { %1357 = vmatmul.bf16.gmra.mxu3 %v1898_v36  ;;  %v1229_v39 = vpop.f32.mrf.mxu2  ;;  %v1921_v36 = vld [vmem:[%s2431_s7 + $0x240] sm:$0xf] }
 0x130   : > { %2277 = vst [vmem:[%s2739_s16 + $0x18] sm:$0xff] %v2218_v4   ;;  %v1230_v18 = vadd.f32 %v1229_v39, %v1146_v45 }
 0x131   : > { %v1147_v41 = vpop.f32.mrf.mxu1 }
 0x132   : > { %v1318_v47 = vpop.f32.mrf.mxu3  ;;  %v1148_v20 = vadd.f32 %v1147_v41, %v2618_v28  ;;  %v1314_v29 = vadd.f32 %v1313_v63, %v1230_v18  ;;  %v1910_v41 = vor.u32 %v2155_v33, %v1907_v34  ;;  %v1922_v18 = vor.u32 %v2159_v37, %v1921_v36 }
 0x133   : > { %v1399_v49 = vpop.f32.mrf.mxu0 }
 0x134   : > { %v1398_v16 = vadd.f32 %v1397_v58, %v1314_v29 }
 0x137   : > { %v1231_v62 = vpop.f32.mrf.mxu2 }
 0x138   : > { %v1232_v27 = vadd.f32 %v1231_v62, %v1148_v20 }
 0x139   : > { %v1150_v3 = vpop.f32.mrf.mxu1 }
 0x13a   : > { %v1320_v11 = vpop.f32.mrf.mxu3  ;;  %v1316_v53 = vadd.f32 %v1315_v9, %v1232_v27  ;;  %v1151_v26 = vadd.f32 %v1150_v3, %v2637_v46  ;;  %v1913_v9 = vld [vmem:[%s2431_s7 + $0x238] sm:$0xf] }
 0x13b   : > { %v1402_v13 = vpop.f32.mrf.mxu0  ;;  %v1914_v45 = vor.u32 %v2158_v12, %v1913_v9 }
 0x13c   : > { %v1400_v28 = vadd.f32 %v1399_v49, %v1316_v53  ;;  %1189 = vmatmul.bf16.gmra.mxu1 %v1890_v6  ;;  %1273 = vmatmul.bf16.gmra.mxu2 %v1894_v7 }
 0x13e   : > { %1441 = vmatmul.bf16.gmra.mxu0 %v1902_v21  ;;  %v2223_v63 = vpack.c.bf16 %v1400_v28, %v1398_v16 }
 0x13f   : > { %1362 = vmatmul.bf16.gmra.mxu3 %v1918_v15  ;;  %v1234_v43 = vpop.f32.mrf.mxu2 }
 0x140   : > { %2278 = vst [vmem:[%s2739_s16 + $0x20] sm:$0xff] %v2223_v63   ;;  %v1235_v32 = vadd.f32 %v1234_v43, %v1151_v26 }
 0x141   : > { %v1152_v23 = vpop.f32.mrf.mxu1 }
 0x142   : > { %v1323_v24 = vpop.f32.mrf.mxu3  ;;  %v1153_v58 = vadd.f32 %v1152_v23, %v2648_v54  ;;  %v1319_v4 = vadd.f32 %v1318_v47, %v1235_v32 }
 0x143   : > { %v1404_v31 = vpop.f32.mrf.mxu0 }
 0x144   : > { %v1403_v22 = vadd.f32 %v1402_v13, %v1319_v4 }
 0x147   : > { %v1236_v38 = vpop.f32.mrf.mxu2 }
 0x148   : > { %v1237_v39 = vadd.f32 %v1236_v38, %v1153_v58 }
 0x149   : > { %v1155_v49 = vpop.f32.mrf.mxu1 }
 0x14a   : > { %v1325_v52 = vpop.f32.mrf.mxu3  ;;  %v1321_v46 = vadd.f32 %v1320_v11, %v1237_v39  ;;  %v1156_v47 = vadd.f32 %v1155_v49, %v2667_v8 }
 0x14b   : > { %v1407_v59 = vpop.f32.mrf.mxu0 }
 0x14c   : > { %v1405_v60 = vadd.f32 %v1404_v31, %v1321_v46  ;;  %1194 = vmatmul.bf16.gmra.mxu1 %v1910_v41  ;;  %1278 = vmatmul.bf16.gmra.mxu2 %v1914_v45 }
 0x14e   : > { %1446 = vmatmul.bf16.gmra.mxu0 %v1922_v18  ;;  %v2228_v20 = vpack.c.bf16 %v1405_v60, %v1403_v22 }
 0x14f   : > { %v1239_v54 = vpop.f32.mrf.mxu2 }
 0x150   : > { %2279 = vst [vmem:[%s2739_s16 + $0x28] sm:$0xff] %v2228_v20   ;;  %v1240_v0 = vadd.f32 %v1239_v54, %v1156_v47 }
 0x151   : > { %v1157_v61 = vpop.f32.mrf.mxu1 }
 0x152   : > { %v1328_v55 = vpop.f32.mrf.mxu3  ;;  %v1158_v1 = vadd.f32 %v1157_v61, %v2678_v17  ;;  %v1324_v27 = vadd.f32 %v1323_v24, %v1240_v0 }
 0x153   : > { %v1409_v62 = vpop.f32.mrf.mxu0 }
 0x154   : > { %v1408_v53 = vadd.f32 %v1407_v59, %v1324_v27 }
 0x157   : > { %v1241_v29 = vpop.f32.mrf.mxu2 }
 0x158   : > { %v1242_v6 = vadd.f32 %v1241_v29, %v1158_v1 }
 0x159   : > { %v1160_v7 = vpop.f32.mrf.mxu1 }
 0x15a   : > { %v1330_v3 = vpop.f32.mrf.mxu3  ;;  %v1326_v21 = vadd.f32 %v1325_v52, %v1242_v6  ;;  %v1161_v8 = vadd.f32 %v1160_v7, %v2697_v42 }
 0x15b   : > { %v1412_v11 = vpop.f32.mrf.mxu0 }
 0x15c   : > { %v1410_v13 = vadd.f32 %v1409_v62, %v1326_v21 }
 0x15e   : > { %v2233_v15 = vpack.c.bf16 %v1410_v13, %v1408_v53 }
 0x15f   : > { %v1244_v16 = vpop.f32.mrf.mxu2 }
 0x160   : > { %2280 = vst [vmem:[%s2739_s16 + $0x30] sm:$0xff] %v2233_v15   ;;  %v1245_v23 = vadd.f32 %v1244_v16, %v1161_v8 }
 0x161   : > { %v1162_v28 = vpop.f32.mrf.mxu1 }
 0x162   : > { %v1333_v63 = vpop.f32.mrf.mxu3  ;;  %v1163_v17 = vadd.f32 %v1162_v28, %v2708_v57  ;;  %v1329_v26 = vadd.f32 %v1328_v55, %v1245_v23 }
 0x163   : > { %v1414_v43 = vpop.f32.mrf.mxu0 }
 0x164   : > { %v1413_v12 = vadd.f32 %v1412_v11, %v1329_v26 }
 0x167   : > { %v1246_v24 = vpop.f32.mrf.mxu2 }
 0x168   : > { %v1247_v31 = vadd.f32 %v1246_v24, %v1163_v17 }
 0x169   : > { %v1165_v32 = vpop.f32.mrf.mxu1 }
 0x16a   : > { %v1335_v33 = vpop.f32.mrf.mxu3  ;;  %v1331_v34 = vadd.f32 %v1330_v3, %v1247_v31  ;;  %v1166_v42 = vadd.f32 %v1165_v32, %v2615_v25 }
 0x16b   : > { %v1417_v9 = vpop.f32.mrf.mxu0 }
 0x16c   : > { %v1415_v58 = vadd.f32 %v1414_v43, %v1331_v34 }
 0x16e   : > { %v2238_v36 = vpack.c.bf16 %v1415_v58, %v1413_v12 }
 0x16f   : > { %v1249_v37 = vpop.f32.mrf.mxu2 }
 0x170   : > { %2281 = vst [vmem:[%s2739_s16 + $0x38] sm:$0xff] %v2238_v36   ;;  %v1250_v41 = vadd.f32 %v1249_v37, %v1166_v42 }
 0x171   : > { %v1167_v38 = vpop.f32.mrf.mxu1 }
 0x172   : > { %v1338_v4 = vpop.f32.mrf.mxu3  ;;  %v1168_v57 = vadd.f32 %v1167_v38, %v2634_v40  ;;  %v1334_v49 = vadd.f32 %v1333_v63, %v1250_v41 }
 0x173   : > { %v1419_v39 = vpop.f32.mrf.mxu0 }
 0x174   : > { %v1418_v60 = vadd.f32 %v1417_v9, %v1334_v49 }
 0x177   : > { %v1251_v45 = vpop.f32.mrf.mxu2 }
 0x178   : > { %v1252_v18 = vadd.f32 %v1251_v45, %v1168_v57 }
 0x179   : > { %v1170_v52 = vpop.f32.mrf.mxu1 }
 0x17a   : > { %v1340_v46 = vpop.f32.mrf.mxu3  ;;  %v1336_v59 = vadd.f32 %v1335_v33, %v1252_v18  ;;  %v1171_v25 = vadd.f32 %v1170_v52, %v2645_v51 }
 0x17b   : > { %v1422_v22 = vpop.f32.mrf.mxu0 }
 0x17c   : > { %v1420_v20 = vadd.f32 %v1419_v39, %v1336_v59 }
 0x17e   : > { %v2243_v54 = vpack.c.bf16 %v1420_v20, %v1418_v60 }
 0x17f   : > { %v1254_v61 = vpop.f32.mrf.mxu2 }
 0x180   : > { %2282 = vst [vmem:[%s2739_s16 + $0x40] sm:$0xff] %v2243_v54   ;;  %v1255_v0 = vadd.f32 %v1254_v61, %v1171_v25 }
 0x181   : > { %v1172_v55 = vpop.f32.mrf.mxu1 }
 0x182   : > { %v1343_v47 = vpop.f32.mrf.mxu3  ;;  %v1173_v40 = vadd.f32 %v1172_v55, %v2664_v2  ;;  %v1339_v29 = vadd.f32 %v1338_v4, %v1255_v0 }
 0x183   : > { %v1424_v62 = vpop.f32.mrf.mxu0 }
 0x184   : > { %v1423_v11 = vadd.f32 %v1422_v22, %v1339_v29 }
 0x187   : > { %v1256_v1 = vpop.f32.mrf.mxu2 }
 0x188   : > { %v1257_v27 = vadd.f32 %v1256_v1, %v1173_v40 }
 0x189   : > { %v1175_v6 = vpop.f32.mrf.mxu1 }
 0x18a   : > { %v1345_v7 = vpop.f32.mrf.mxu3  ;;  %v1341_v3 = vadd.f32 %v1340_v46, %v1257_v27  ;;  %v1176_v28 = vadd.f32 %v1175_v6, %v2675_v14 }
 0x18b   : > { %v1427_v21 = vpop.f32.mrf.mxu0 }
 0x18c   : > { %v1425_v53 = vadd.f32 %v1424_v62, %v1341_v3 }
 0x18e   : > { %v2248_v13 = vpack.c.bf16 %v1425_v53, %v1423_v11 }
 0x18f   : > { %v1259_v15 = vpop.f32.mrf.mxu2 }
 0x190   : > { %2283 = vst [vmem:[%s2739_s16 + $0x48] sm:$0xff] %v2248_v13   ;;  %v1260_v8 = vadd.f32 %v1259_v15, %v1176_v28 }
 0x191   : > { %v1177_v16 = vpop.f32.mrf.mxu1 }
 0x192   : > { %v1348_v63 = vpop.f32.mrf.mxu3  ;;  %v1178_v2 = vadd.f32 %v1177_v16, %v2694_v35  ;;  %v1344_v23 = vadd.f32 %v1343_v47, %v1260_v8 }
 0x193   : > { %v1429_v51 = vpop.f32.mrf.mxu0 }
 0x194   : > { %v1428_v32 = vadd.f32 %v1427_v21, %v1344_v23 }
 0x197   : > { %v1261_v43 = vpop.f32.mrf.mxu2 }
 0x198   : > { %v1262_v17 = vadd.f32 %v1261_v43, %v1178_v2 }
 0x199   : > { %v1180_v24 = vpop.f32.mrf.mxu1 }
 0x19a   : > { %v1346_v26 = vadd.f32 %v1345_v7, %v1262_v17  ;;  %v1350_v34 = vpop.f32.mrf.mxu3  ;;  %v1181_v14 = vadd.f32 %v1180_v24, %v2705_v50 }
 0x19b   : > { %v1432_v31 = vpop.f32.mrf.mxu0 }
 0x19c   : > { %v1430_v33 = vadd.f32 %v1429_v51, %v1346_v26 }
 0x19e   : > { %v2253_v9 = vpack.c.bf16 %v1430_v33, %v1428_v32 }
 0x19f   : > { %v1264_v12 = vpop.f32.mrf.mxu2 }
 0x1a0   : > { %2284 = vst [vmem:[%s2739_s16 + $0x50] sm:$0xff] %v2253_v9   ;;  %v1265_v37 = vadd.f32 %v1264_v12, %v1181_v14 }
 0x1a1   : > { %v1182_v58 = vpop.f32.mrf.mxu1 }
 0x1a2   : > { %v1183_v35 = vadd.f32 %v1182_v58, %v2721_v5  ;;  %v1353_v4 = vpop.f32.mrf.mxu3  ;;  %v1349_v42 = vadd.f32 %v1348_v63, %v1265_v37 }
 0x1a3   : > { %v1434_v36 = vpop.f32.mrf.mxu0 }
 0x1a4   : > { %v1433_v49 = vadd.f32 %v1432_v31, %v1349_v42 }
 0x1a7   : > { %v1266_v38 = vpop.f32.mrf.mxu2 }
 0x1a8   : > { %v1267_v39 = vadd.f32 %v1266_v38, %v1183_v35 }
 0x1a9   : > { %v1185_v41 = vpop.f32.mrf.mxu1 }
 0x1aa   : > { %v1351_v57 = vadd.f32 %v1350_v34, %v1267_v39  ;;  %v1355_v22 = vpop.f32.mrf.mxu3  ;;  %v1186_v50 = vadd.f32 %v1185_v41, %v2623_v30 }
 0x1ab   : > { %v1437_v45 = vpop.f32.mrf.mxu0 }
 0x1ac   : > { %v1435_v18 = vadd.f32 %v1434_v36, %v1351_v57 }
 0x1ae   : > { %v2258_v52 = vpack.c.bf16 %v1435_v18, %v1433_v49 }
 0x1af   : > { %v1269_v46 = vpop.f32.mrf.mxu2 }
 0x1b0   : > { %2285 = vst [vmem:[%s2739_s16 + $0x58] sm:$0xff] %v2258_v52   ;;  %v1270_v20 = vadd.f32 %v1269_v46, %v1186_v50 }
 0x1b1   : > { %v1187_v59 = vpop.f32.mrf.mxu1 }
 0x1b2   : > { %v1188_v5 = vadd.f32 %v1187_v59, %v2642_v48  ;;  %v1354_v61 = vadd.f32 %v1353_v4, %v1270_v20  ;;  %v1358_v62 = vpop.f32.mrf.mxu3 }
 0x1b3   : > { %v1439_v60 = vpop.f32.mrf.mxu0 }
 0x1b4   : > { %v1438_v0 = vadd.f32 %v1437_v45, %v1354_v61 }
 0x1b7   : > { %v1271_v54 = vpop.f32.mrf.mxu2 }
 0x1b8   : > { %v1272_v55 = vadd.f32 %v1271_v54, %v1188_v5 }
 0x1b9   : > { %v1190_v47 = vpop.f32.mrf.mxu1 }
 0x1ba   : > { %v1356_v25 = vadd.f32 %v1355_v22, %v1272_v55  ;;  %v1191_v30 = vadd.f32 %v1190_v47, %v2653_v56  ;;  %v1360_v3 = vpop.f32.mrf.mxu3 }
 0x1bb   : > { %v1442_v1 = vpop.f32.mrf.mxu0 }
 0x1bc   : > { %v1440_v40 = vadd.f32 %v1439_v60, %v1356_v25 }
 0x1be   : > { %v2263_v29 = vpack.c.bf16 %v1440_v40, %v1438_v0 }
 0x1bf   : > { %v1274_v27 = vpop.f32.mrf.mxu2 }
 0x1c0   : > { %2286 = vst [vmem:[%s2739_s16 + $0x60] sm:$0xff] %v2263_v29   ;;  %v1275_v7 = vadd.f32 %v1274_v27, %v1191_v30 }
 0x1c1   : > { %v1192_v6 = vpop.f32.mrf.mxu1 }
 0x1c2   : > { %v1193_v48 = vadd.f32 %v1192_v6, %v2672_v10  ;;  %v1359_v53 = vadd.f32 %v1358_v62, %v1275_v7  ;;  %v1363_v8 = vpop.f32.mrf.mxu3 }
 0x1c3   : > { %v1444_v21 = vpop.f32.mrf.mxu0 }
 0x1c4   : > { %v1443_v28 = vadd.f32 %v1442_v1, %v1359_v53 }
 0x1c7   : > { %v1276_v11 = vpop.f32.mrf.mxu2 }
 0x1c8   : > { %v1277_v13 = vadd.f32 %v1276_v11, %v1193_v48 }
 0x1c9   : > { %v1195_v15 = vpop.f32.mrf.mxu1 }
 0x1ca   : > { %v1361_v16 = vadd.f32 %v1360_v3, %v1277_v13  ;;  %v1196_v56 = vadd.f32 %v1195_v15, %v2683_v19  ;;  %v1365_v32 = vpop.f32.mrf.mxu3 }
 0x1cb   : > { %v1447_v43 = vpop.f32.mrf.mxu0 }
 0x1cc   : > { %v1445_v51 = vadd.f32 %v1444_v21, %v1361_v16 }
 0x1ce   : > { %v2268_v63 = vpack.c.bf16 %v1445_v51, %v1443_v28 }
 0x1cf   : > { %v1279_v2 = vpop.f32.mrf.mxu2 }
 0x1d0   : > { %2287 = vst [vmem:[%s2739_s16 + $0x68] sm:$0xff] %v2268_v63   ;;  %v1280_v17 = vadd.f32 %v1279_v2, %v1196_v56 }
 0x1d1   : > { %v1197_v23 = vpop.f32.mrf.mxu1 }
 0x1d2   : > { %v1198_v10 = vadd.f32 %v1197_v23, %v2702_v44  ;;  %v1364_v26 = vadd.f32 %v1363_v8, %v1280_v17 }
 0x1d3   : > { %v1449_v34 = vpop.f32.mrf.mxu0 }
 0x1d4   : > { %v1448_v9 = vadd.f32 %v1447_v43, %v1364_v26 }
 0x1d7   : > { %v1281_v24 = vpop.f32.mrf.mxu2 }
 0x1d8   : > { %v1282_v31 = vadd.f32 %v1281_v24, %v1198_v10 }
 0x1da   : > { %v1366_v33 = vadd.f32 %v1365_v32, %v1282_v31 }
 0x1dc   : > { %v1450_v12 = vadd.f32 %v1449_v34, %v1366_v33 }
 0x1de   : > { %v2273_v58 = vpack.c.bf16 %v1450_v12, %v1448_v9 }
 0x1e0   : > { %2288 = vst [vmem:[%s2739_s16 + $0x70] sm:$0xff] %v2273_v58  }
 0x1e1 PF: > { %s13_s14 = sadd.s32 1, %s2361_s14   ;;  %s2841_s12 = smov %s2357_s13 }
 0x1e2   : > { %p10_p5 = scmp.ge.s32.totalorder %s13_s14, 4   ;;  %s2842_s13 = smov %s2844_s15 }
 0x1e4   :  { %12 = sbr.rel (!%p10_p5) target bundleno = 2 (0x2), region = 68 }

// kernel: cnn_forward.10
= control target key start
LH: loop header
LB: loop body
LE: loop exit
PB: predicated region body
PF: predicated region fallthrough
CT: control target
= control target key end

     0   :  { %s310_s6 = smov 0   ;;  %s383_s0 = inlined_call_operand.vmem [shape: bf16[2,14,7,256], index: 0, kind: input, shape index: {}]   ;;  %s384_s1 = inlined_call_operand.vmem [shape: bf16[2,7,7,128], index: 1, kind: output, shape index: {}]  }
   0x1 LB: > { %s273_s7 = sadd.s32 4294967295, %s298_s6   ;;  %p277_p0 = scmp.ge.s32.totalorder %s298_s6, 1  ;;  %s298_s6 = sphi %s310_s6, %s11_s6  }
   0x2   : > { %p87_p1 = scmp.lt.s32.totalorder %s298_s6, 3 }
   0x4   : > { %p88_p2 = pnand %p277_p0, %p87_p1 }
   0x5   : > { %p107_p3 = scmp.lt.s32.totalorder (!%p88_p2), %s273_s7, 1 }
   0x6   : > { %91 = sbr.rel (%p88_p2) target bundleno = 41 (0x29), region = 24 }
   0xb   : > { %s388_s7 = smov (!%p107_p3, %s273_s7), 1  ;;  %vm194_vm0 = vcmask 1043456   ;;  %vm195_vm1 = vsmask.f32 3328 }
   0xc   : > { %s282_s8 = smul.u32 112, %s388_s7  ;;  %vm345_vm2 = vmand %vm194_vm0, %vm195_vm1 }
   0xd   : > { %s283_s12 = smul.u32 28, %s388_s7 }
   0xe   : > { %s324_s11 = scalar_lea.vmem %s383_s0, %s282_s8 }
   0xf   : > { %v117_v0 = vld [vmem:[%s324_s11] sm:$0xff]  ;;  %v118_v1 = vld [vmem:[%s324_s11 + $0x8] sm:$0xff]  ;;  %v119_v2 = vld [vmem:[%s324_s11 + $0x10] sm:$0xff]  ;;  %s339_s15 = scalar_lea.vmem %s384_s1, %s283_s12 }
  0x10   : > { %v131_v3 = vunpack.c.l.bf16 %v117_v0  ;;  %v132_v4 = vunpack.c.h.bf16 %v117_v0  ;;  %v133_v5 = vunpack.c.l.bf16 %v118_v1  ;;  %v134_v6 = vunpack.c.h.bf16 %v118_v1  ;;  %v120_v7 = vld [vmem:[%s324_s11 + $0x18] sm:$0xff]  ;;  %v121_v12 = vld [vmem:[%s324_s11 + $0x20] sm:$0xff]  ;;  %v122_v13 = vld [vmem:[%s324_s11 + $0x28] sm:$0xff] }
  0x11   : > { %v135_v8 = vunpack.c.l.bf16 %v119_v2  ;;  %v136_v9 = vunpack.c.h.bf16 %v119_v2  ;;  %v137_v10 = vunpack.c.l.bf16 %v120_v7  ;;  %v138_v11 = vunpack.c.h.bf16 %v120_v7  ;;  %v123_v18 = vld [vmem:[%s324_s11 + $0x30] sm:$0xff]  ;;  %v124_v19 = vld [vmem:[%s324_s11 + $0x38] sm:$0xff]  ;;  %v125_v24 = vld [vmem:[%s324_s11 + $0x40] sm:$0xff] }
  0x12   : > { %v159_v14 = vmax.f32 %v131_v3, %v133_v5  ;;  %v160_v15 = vmax.f32 %v132_v4, %v134_v6  ;;  %v139_v16 = vunpack.c.l.bf16 %v121_v12  ;;  %v140_v17 = vunpack.c.h.bf16 %v121_v12  ;;  %v126_v29 = vld [vmem:[%s324_s11 + $0x48] sm:$0xff]  ;;  %v127_v34 = vld [vmem:[%s324_s11 + $0x50] sm:$0xff]  ;;  %v197_v40 = vld [vmem:[%s339_s15] sm:$0xf] }
  0x13   : > { %v161_v20 = vmax.f32 %v135_v8, %v137_v10  ;;  %v162_v21 = vmax.f32 %v136_v9, %v138_v11  ;;  %v141_v22 = vunpack.c.l.bf16 %v122_v13  ;;  %v142_v23 = vunpack.c.h.bf16 %v122_v13  ;;  %v128_v45 = vld [vmem:[%s324_s11 + $0x58] sm:$0xff]  ;;  %v200_v47 = vld [vmem:[%s339_s15 + $0x4] sm:$0xf]  ;;  %v203_v57 = vld [vmem:[%s339_s15 + $0x8] sm:$0xf] }
  0x14   : > { %v173_v25 = vmax.f32 %v159_v14, %v160_v15  ;;  %v143_v26 = vunpack.c.l.bf16 %v123_v18  ;;  %v144_v27 = vunpack.c.h.bf16 %v123_v18  ;;  %v145_v28 = vunpack.c.l.bf16 %v124_v19  ;;  %v129_v51 = vld [vmem:[%s324_s11 + $0x60] sm:$0xff]  ;;  %v130_v61 = vld [vmem:[%s324_s11 + $0x68] sm:$0xff]  ;;  %v209_v14 = vld [vmem:[%s339_s15 + $0x10] sm:$0xf] }
  0x15   : > { %v174_v30 = vmax.f32 %v161_v20, %v162_v21  ;;  %v163_v31 = vmax.f32 %v139_v16, %v141_v22  ;;  %v164_v32 = vmax.f32 %v140_v17, %v142_v23  ;;  %v146_v33 = vunpack.c.h.bf16 %v124_v19  ;;  %v206_v2 = vld [vmem:[%s339_s15 + $0xc] sm:$0xf]  ;;  %v212_v19 = vld [vmem:[%s339_s15 + $0x14] sm:$0xf] }
  0x16   : > { %v180_v35 = vmax.f32 %v173_v25, 0.0  ;;  %v165_v36 = vmax.f32 %v143_v26, %v145_v28  ;;  %v147_v37 = vunpack.c.l.bf16 %v125_v24  ;;  %v148_v38 = vunpack.c.h.bf16 %v125_v24  ;;  %v215_v25 = vld [vmem:[%s339_s15 + $0x18] sm:$0xf] }
  0x17   : > { %v181_v41 = vmax.f32 %v174_v30, 0.0  ;;  %v175_v42 = vmax.f32 %v163_v31, %v164_v32  ;;  %v166_v43 = vmax.f32 %v144_v27, %v146_v33  ;;  %v149_v44 = vunpack.c.l.bf16 %v126_v29 }
  0x18   : > { %v187_v46 = vpack.c.bf16 %v180_v35, %v180_v35  ;;  %v150_v48 = vunpack.c.h.bf16 %v126_v29  ;;  %v151_v49 = vunpack.c.l.bf16 %v127_v34  ;;  %v152_v50 = vunpack.c.h.bf16 %v127_v34 }
  0x19   : > { %v188_v52 = vpack.c.bf16 %v181_v41, %v181_v41  ;;  %v182_v53 = vmax.f32 %v175_v42, 0.0  ;;  %v176_v54 = vmax.f32 %v165_v36, %v166_v43  ;;  %v167_v55 = vmax.f32 %v147_v37, %v149_v44 }
  0x1a   : > { %v198_v56 = vsel %vm345_vm2, %v187_v46, %v197_v40  ;;  %v168_v58 = vmax.f32 %v148_v38, %v150_v48  ;;  %v153_v59 = vunpack.c.l.bf16 %v128_v45  ;;  %v154_v60 = vunpack.c.h.bf16 %v128_v45 }
  0x1b   : > { %199 = vst [vmem:[%s339_s15] sm:$0xf] %v198_v56  ;;  %v201_v62 = vsel %vm345_vm2, %v188_v52, %v200_v47  ;;  %v189_v63 = vpack.c.bf16 %v182_v53, %v182_v53  ;;  %v183_v0 = vmax.f32 %v176_v54, 0.0  ;;  %v155_v1 = vunpack.c.l.bf16 %v129_v51 }
  0x1c   : > { %202 = vst [vmem:[%s339_s15 + $0x4] sm:$0xf] %v201_v62  ;;  %v177_v3 = vmax.f32 %v167_v55, %v168_v58  ;;  %v169_v4 = vmax.f32 %v151_v49, %v153_v59  ;;  %v170_v5 = vmax.f32 %v152_v50, %v154_v60  ;;  %v156_v6 = vunpack.c.h.bf16 %v129_v51 }
  0x1d   : > { %v204_v7 = vsel %vm345_vm2, %v189_v63, %v203_v57  ;;  %v190_v8 = vpack.c.bf16 %v183_v0, %v183_v0  ;;  %v157_v9 = vunpack.c.l.bf16 %v130_v61  ;;  %v158_v10 = vunpack.c.h.bf16 %v130_v61 }
  0x1e   : > { %205 = vst [vmem:[%s339_s15 + $0x8] sm:$0xf] %v204_v7  ;;  %v184_v11 = vmax.f32 %v177_v3, 0.0  ;;  %v178_v12 = vmax.f32 %v169_v4, %v170_v5 }
  0x1f   : > { %v207_v13 = vsel %vm345_vm2, %v190_v8, %v206_v2  ;;  %v171_v15 = vmax.f32 %v155_v1, %v157_v9  ;;  %v172_v16 = vmax.f32 %v156_v6, %v158_v10 }
  0x20   : > { %208 = vst [vmem:[%s339_s15 + $0xc] sm:$0xf] %v207_v13  ;;  %v191_v17 = vpack.c.bf16 %v184_v11, %v184_v11  ;;  %v185_v18 = vmax.f32 %v178_v12, 0.0 }
  0x21   : > { %v179_v20 = vmax.f32 %v171_v15, %v172_v16 }
  0x22   : > { %v210_v21 = vsel %vm345_vm2, %v191_v17, %v209_v14  ;;  %v192_v22 = vpack.c.bf16 %v185_v18, %v185_v18 }
  0x23   : > { %211 = vst [vmem:[%s339_s15 + $0x10] sm:$0xf] %v210_v21  ;;  %v186_v23 = vmax.f32 %v179_v20, 0.0 }
  0x24   : > { %v213_v24 = vsel %vm345_vm2, %v192_v22, %v212_v19 }
  0x25   : > { %214 = vst [vmem:[%s339_s15 + $0x14] sm:$0xf] %v213_v24  ;;  %v193_v26 = vpack.c.bf16 %v186_v23, %v186_v23 }
  0x27   : > { %v216_v27 = vsel %vm345_vm2, %v193_v26, %v215_v25 }
  0x28   : > { %217 = vst [vmem:[%s339_s15 + $0x18] sm:$0xf] %v216_v27 }
  0x29 PF: > { %s11_s6 = sadd.s32 1, %s298_s6  }
  0x2a   : > { %p8_p4 = scmp.ge.s32.totalorder %s11_s6, 4  }
  0x2c   :  { %10 = sbr.rel (!%p8_p4) target bundleno = 1 (0x1), region = 54 }

// kernel: cnn_forward.11
= control target key start
LH: loop header
LB: loop body
LE: loop exit
PB: predicated region body
PF: predicated region fallthrough
CT: control target
= control target key end

     0   :  { %s2781_s12 = smov 0   ;;  %s2783_s13 = smov 0   ;;  %s3493_s0 = inlined_call_operand.vmem [shape: bf16[64,1152], index: 0, kind: input, shape index: {}]   ;;  %s3494_s1 = inlined_call_operand.vmem [shape: bf16[1152,256], index: 1, kind: input, shape index: {}]   ;;  %s3495_s2 = inlined_call_operand.vmem [shape: f32[1,256], index: 2, kind: input, shape index: {}]   ;;  %s3496_s3 = inlined_call_operand.vmem [shape: bf16[64,256], index: 3, kind: output, shape index: {}]  }
   0x1   :  { %s2785_s14 = smov 0   ;;  %s2787_s15 = smov 0  }
   0x2   :  { %s2789_s16 = smov 0  }
   0x3 LB: > { %s22_s17 = sadd.s32 1, %s2755_s15  ;;  %s2087_s18 = sadd.s32 4294967295, %s2759_s16   ;;  %s2759_s16 = sphi %s2789_s16, %s13_s16   ;;  %s2755_s15 = sphi %s2787_s15, %s3501_s15   ;;  %s2751_s14 = sphi %s2785_s14, %s3500_s14   ;;  %s2747_s13 = sphi %s2783_s13, %s3499_s13   ;;  %s2743_s12 = sphi %s2781_s12, %s3498_s12  }
   0x4   : > { %p23_p0 = scmp.ge.s32.totalorder %s22_s17, 2  ;;  %p65_p1 = scmp.ne.s32.totalorder %s2747_s13, %s2743_s12 }
   0x5   : > { %p66_p2 = scmp.eq.s32.totalorder %s2759_s16, 0  ;;  %p123_p4 = scmp.eq.s32.totalorder %s2087_s18, 1 }
   0x6   : > { %s3503_s17 = smov (%p23_p0, %s22_s17), 0  ;;  %s58_s20 = sadd.s32 1, %s2747_s13 }
   0x7   : > { %p67_p3 = por %p66_p2, %p65_p1  ;;  %s55_s19 = ssub.s32 %s2755_s15, %s3503_s17 }
   0x8   : > { %p56_p5 = scmp.eq.s32.totalorder %s55_s19, 0  ;;  %p2816_p6 = por %p123_p4, %p65_p1 }
   0x9   : > { %p2091_p7 = scmp.ge.s32.totalorder %s2759_s16, 2 }
   0xa   : > { %s2821_s22 = scalar_select %p56_p5, %s2747_s13, %s58_s20  }
   0xb   : > { %155 = sbr.rel (%p2091_p7) target bundleno = 165 (0xa5), region = 20 }
  0x10   : > { %158 = sbr.rel (!%p67_p3) target bundleno = 165 (0xa5), region = 24  ;;  %s160_s23 = sand.u32 (%p67_p3), 1, %s2747_s13  }
  0x11   : > { %s2092_s24 = sshll.u32 (%p67_p3), %s2755_s15, 2  ;;  %s2678_s25 = smul.u32 (%p67_p3), 576, %s160_s23 }
  0x12   : > { %s2829_s28 = scalar_lea.vmem (%p67_p3), %s3494_s1, %s2092_s24 }
  0x13   : > { %v181_v0 = vld [vmem:[%s2829_s28] sm:$0xf] (%p67_p3)  ;;  %v183_v1 = vld [vmem:[%s2829_s28 + $0x8] sm:$0xf] (%p67_p3)  ;;  %v185_v2 = vld [vmem:[%s2829_s28 + $0x10] sm:$0xf] (%p67_p3) }
  0x14   : > { %s2834_s29 = scalar_lea.vmem (%p67_p3), [#allocation2], %s2678_s25  ;;  %v187_v3 = vld [vmem:[%s2829_s28 + $0x18] sm:$0xf] (%p67_p3)  ;;  %v189_v4 = vld [vmem:[%s2829_s28 + $0x20] sm:$0xf] (%p67_p3) }
  0x15   : > { %182 = vst [vmem:[%s2834_s29] sm:$0xf] %v181_v0  ;;  %v191_v5 = vld [vmem:[%s2829_s28 + $0x28] sm:$0xf]  ;;  %v193_v6 = vld [vmem:[%s2829_s28 + $0x30] sm:$0xf] }
  0x16   : > { %184 = vst [vmem:[%s2834_s29 + $0x4] sm:$0xf] %v183_v1  ;;  %v195_v7 = vld [vmem:[%s2829_s28 + $0x38] sm:$0xf]  ;;  %v197_v8 = vld [vmem:[%s2829_s28 + $0x40] sm:$0xf] }
  0x17   : > { %186 = vst [vmem:[%s2834_s29 + $0x8] sm:$0xf] %v185_v2  ;;  %v199_v9 = vld [vmem:[%s2829_s28 + $0x48] sm:$0xf]  ;;  %v201_v10 = vld [vmem:[%s2829_s28 + $0x50] sm:$0xf] }
  0x18   : > { %188 = vst [vmem:[%s2834_s29 + $0xc] sm:$0xf] %v187_v3  ;;  %v203_v11 = vld [vmem:[%s2829_s28 + $0x58] sm:$0xf]  ;;  %v205_v12 = vld [vmem:[%s2829_s28 + $0x60] sm:$0xf] }
  0x19   : > { %190 = vst [vmem:[%s2834_s29 + $0x10] sm:$0xf] %v189_v4  ;;  %v207_v13 = vld [vmem:[%s2829_s28 + $0x68] sm:$0xf]  ;;  %v209_v14 = vld [vmem:[%s2829_s28 + $0x70] sm:$0xf] }
  0x1a   : > { %192 = vst [vmem:[%s2834_s29 + $0x14] sm:$0xf] %v191_v5  ;;  %v211_v15 = vld [vmem:[%s2829_s28 + $0x78] sm:$0xf]  ;;  %v213_v16 = vld [vmem:[%s2829_s28 + $0x80] sm:$0xf] }
  0x1b   : > { %194 = vst [vmem:[%s2834_s29 + $0x18] sm:$0xf] %v193_v6  ;;  %v215_v17 = vld [vmem:[%s2829_s28 + $0x88] sm:$0xf]  ;;  %v217_v18 = vld [vmem:[%s2829_s28 + $0x90] sm:$0xf] }
  0x1c   : > { %196 = vst [vmem:[%s2834_s29 + $0x1c] sm:$0xf] %v195_v7  ;;  %v219_v19 = vld [vmem:[%s2829_s28 + $0x98] sm:$0xf]  ;;  %v221_v20 = vld [vmem:[%s2829_s28 + $0xa0] sm:$0xf] }
  0x1d   : > { %198 = vst [vmem:[%s2834_s29 + $0x20] sm:$0xf] %v197_v8  ;;  %v223_v21 = vld [vmem:[%s2829_s28 + $0xa8] sm:$0xf]  ;;  %v225_v22 = vld [vmem:[%s2829_s28 + $0xb0] sm:$0xf] }
  0x1e   : > { %200 = vst [vmem:[%s2834_s29 + $0x24] sm:$0xf] %v199_v9  ;;  %v227_v23 = vld [vmem:[%s2829_s28 + $0xb8] sm:$0xf]  ;;  %v229_v24 = vld [vmem:[%s2829_s28 + $0xc0] sm:$0xf] }
  0x1f   : > { %202 = vst [vmem:[%s2834_s29 + $0x28] sm:$0xf] %v201_v10  ;;  %v231_v25 = vld [vmem:[%s2829_s28 + $0xc8] sm:$0xf]  ;;  %v233_v26 = vld [vmem:[%s2829_s28 + $0xd0] sm:$0xf] }
  0x20   : > { %204 = vst [vmem:[%s2834_s29 + $0x2c] sm:$0xf] %v203_v11  ;;  %v235_v27 = vld [vmem:[%s2829_s28 + $0xd8] sm:$0xf]  ;;  %v237_v28 = vld [vmem:[%s2829_s28 + $0xe0] sm:$0xf] }
  0x21   : > { %206 = vst [vmem:[%s2834_s29 + $0x30] sm:$0xf] %v205_v12  ;;  %v239_v29 = vld [vmem:[%s2829_s28 + $0xe8] sm:$0xf]  ;;  %v241_v30 = vld [vmem:[%s2829_s28 + $0xf0] sm:$0xf] }
  0x22   : > { %208 = vst [vmem:[%s2834_s29 + $0x34] sm:$0xf] %v207_v13  ;;  %v243_v31 = vld [vmem:[%s2829_s28 + $0xf8] sm:$0xf]  ;;  %v245_v32 = vld [vmem:[%s2829_s28 + $0x100] sm:$0xf] }
  0x23   : > { %210 = vst [vmem:[%s2834_s29 + $0x38] sm:$0xf] %v209_v14  ;;  %v247_v33 = vld [vmem:[%s2829_s28 + $0x108] sm:$0xf]  ;;  %v249_v34 = vld [vmem:[%s2829_s28 + $0x110] sm:$0xf] }
  0x24   : > { %212 = vst [vmem:[%s2834_s29 + $0x3c] sm:$0xf] %v211_v15  ;;  %v251_v35 = vld [vmem:[%s2829_s28 + $0x118] sm:$0xf]  ;;  %v253_v36 = vld [vmem:[%s2829_s28 + $0x120] sm:$0xf] }
  0x25   : > { %214 = vst [vmem:[%s2834_s29 + $0x40] sm:$0xf] %v213_v16  ;;  %v255_v37 = vld [vmem:[%s2829_s28 + $0x128] sm:$0xf]  ;;  %v257_v38 = vld [vmem:[%s2829_s28 + $0x130] sm:$0xf] }
  0x26   : > { %216 = vst [vmem:[%s2834_s29 + $0x44] sm:$0xf] %v215_v17  ;;  %v259_v39 = vld [vmem:[%s2829_s28 + $0x138] sm:$0xf]  ;;  %v261_v40 = vld [vmem:[%s2829_s28 + $0x140] sm:$0xf] }
  0x27   : > { %218 = vst [vmem:[%s2834_s29 + $0x48] sm:$0xf] %v217_v18  ;;  %v263_v41 = vld [vmem:[%s2829_s28 + $0x148] sm:$0xf]  ;;  %v265_v42 = vld [vmem:[%s2829_s28 + $0x150] sm:$0xf] }
  0x28   : > { %220 = vst [vmem:[%s2834_s29 + $0x4c] sm:$0xf] %v219_v19  ;;  %v267_v43 = vld [vmem:[%s2829_s28 + $0x158] sm:$0xf]  ;;  %v269_v44 = vld [vmem:[%s2829_s28 + $0x160] sm:$0xf] }
  0x29   : > { %222 = vst [vmem:[%s2834_s29 + $0x50] sm:$0xf] %v221_v20  ;;  %v271_v45 = vld [vmem:[%s2829_s28 + $0x168] sm:$0xf]  ;;  %v273_v46 = vld [vmem:[%s2829_s28 + $0x170] sm:$0xf] }
  0x2a   : > { %224 = vst [vmem:[%s2834_s29 + $0x54] sm:$0xf] %v223_v21  ;;  %v275_v47 = vld [vmem:[%s2829_s28 + $0x178] sm:$0xf]  ;;  %v277_v48 = vld [vmem:[%s2829_s28 + $0x180] sm:$0xf] }
  0x2b   : > { %226 = vst [vmem:[%s2834_s29 + $0x58] sm:$0xf] %v225_v22  ;;  %v279_v49 = vld [vmem:[%s2829_s28 + $0x188] sm:$0xf]  ;;  %v281_v50 = vld [vmem:[%s2829_s28 + $0x190] sm:$0xf] }
  0x2c   : > { %228 = vst [vmem:[%s2834_s29 + $0x5c] sm:$0xf] %v227_v23  ;;  %v283_v51 = vld [vmem:[%s2829_s28 + $0x198] sm:$0xf]  ;;  %v285_v52 = vld [vmem:[%s2829_s28 + $0x1a0] sm:$0xf] }
  0x2d   : > { %230 = vst [vmem:[%s2834_s29 + $0x60] sm:$0xf] %v229_v24  ;;  %v287_v53 = vld [vmem:[%s2829_s28 + $0x1a8] sm:$0xf]  ;;  %v289_v54 = vld [vmem:[%s2829_s28 + $0x1b0] sm:$0xf] }
  0x2e   : > { %232 = vst [vmem:[%s2834_s29 + $0x64] sm:$0xf] %v231_v25  ;;  %v291_v55 = vld [vmem:[%s2829_s28 + $0x1b8] sm:$0xf]  ;;  %v293_v56 = vld [vmem:[%s2829_s28 + $0x1c0] sm:$0xf] }
  0x2f   : > { %234 = vst [vmem:[%s2834_s29 + $0x68] sm:$0xf] %v233_v26  ;;  %v295_v57 = vld [vmem:[%s2829_s28 + $0x1c8] sm:$0xf]  ;;  %v297_v58 = vld [vmem:[%s2829_s28 + $0x1d0] sm:$0xf] }
  0x30   : > { %236 = vst [vmem:[%s2834_s29 + $0x6c] sm:$0xf] %v235_v27  ;;  %v299_v59 = vld [vmem:[%s2829_s28 + $0x1d8] sm:$0xf]  ;;  %v301_v60 = vld [vmem:[%s2829_s28 + $0x1e0] sm:$0xf] }
  0x31   : > { %238 = vst [vmem:[%s2834_s29 + $0x70] sm:$0xf] %v237_v28  ;;  %v303_v61 = vld [vmem:[%s2829_s28 + $0x1e8] sm:$0xf]  ;;  %v305_v62 = vld [vmem:[%s2829_s28 + $0x1f0] sm:$0xf] }
  0x32   : > { %240 = vst [vmem:[%s2834_s29 + $0x74] sm:$0xf] %v239_v29  ;;  %v307_v63 = vld [vmem:[%s2829_s28 + $0x1f8] sm:$0xf]  ;;  %v309_v0 = vld [vmem:[%s2829_s28 + $0x200] sm:$0xf] }
  0x33   : > { %242 = vst [vmem:[%s2834_s29 + $0x78] sm:$0xf] %v241_v30  ;;  %v311_v1 = vld [vmem:[%s2829_s28 + $0x208] sm:$0xf]  ;;  %v313_v2 = vld [vmem:[%s2829_s28 + $0x210] sm:$0xf] }
  0x34   : > { %244 = vst [vmem:[%s2834_s29 + $0x7c] sm:$0xf] %v243_v31  ;;  %v315_v3 = vld [vmem:[%s2829_s28 + $0x218] sm:$0xf]  ;;  %v317_v4 = vld [vmem:[%s2829_s28 + $0x220] sm:$0xf] }
  0x35   : > { %246 = vst [vmem:[%s2834_s29 + $0x80] sm:$0xf] %v245_v32  ;;  %v319_v5 = vld [vmem:[%s2829_s28 + $0x228] sm:$0xf]  ;;  %v321_v6 = vld [vmem:[%s2829_s28 + $0x230] sm:$0xf] }
  0x36   : > { %248 = vst [vmem:[%s2834_s29 + $0x84] sm:$0xf] %v247_v33  ;;  %v323_v7 = vld [vmem:[%s2829_s28 + $0x238] sm:$0xf]  ;;  %v325_v8 = vld [vmem:[%s2829_s28 + $0x240] sm:$0xf] }
  0x37   : > { %250 = vst [vmem:[%s2834_s29 + $0x88] sm:$0xf] %v249_v34  ;;  %v327_v9 = vld [vmem:[%s2829_s28 + $0x248] sm:$0xf]  ;;  %v329_v10 = vld [vmem:[%s2829_s28 + $0x250] sm:$0xf] }
  0x38   : > { %252 = vst [vmem:[%s2834_s29 + $0x8c] sm:$0xf] %v251_v35  ;;  %v331_v11 = vld [vmem:[%s2829_s28 + $0x258] sm:$0xf]  ;;  %v333_v12 = vld [vmem:[%s2829_s28 + $0x260] sm:$0xf] }
  0x39   : > { %254 = vst [vmem:[%s2834_s29 + $0x90] sm:$0xf] %v253_v36  ;;  %v335_v13 = vld [vmem:[%s2829_s28 + $0x268] sm:$0xf]  ;;  %v337_v14 = vld [vmem:[%s2829_s28 + $0x270] sm:$0xf] }
  0x3a   : > { %256 = vst [vmem:[%s2834_s29 + $0x94] sm:$0xf] %v255_v37  ;;  %v339_v15 = vld [vmem:[%s2829_s28 + $0x278] sm:$0xf]  ;;  %v341_v16 = vld [vmem:[%s2829_s28 + $0x280] sm:$0xf] }
  0x3b   : > { %258 = vst [vmem:[%s2834_s29 + $0x98] sm:$0xf] %v257_v38  ;;  %v343_v17 = vld [vmem:[%s2829_s28 + $0x288] sm:$0xf]  ;;  %v345_v18 = vld [vmem:[%s2829_s28 + $0x290] sm:$0xf] }
  0x3c   : > { %260 = vst [vmem:[%s2834_s29 + $0x9c] sm:$0xf] %v259_v39  ;;  %v347_v19 = vld [vmem:[%s2829_s28 + $0x298] sm:$0xf]  ;;  %v349_v20 = vld [vmem:[%s2829_s28 + $0x2a0] sm:$0xf] }
  0x3d   : > { %262 = vst [vmem:[%s2834_s29 + $0xa0] sm:$0xf] %v261_v40  ;;  %v351_v21 = vld [vmem:[%s2829_s28 + $0x2a8] sm:$0xf]  ;;  %v353_v22 = vld [vmem:[%s2829_s28 + $0x2b0] sm:$0xf] }
  0x3e   : > { %264 = vst [vmem:[%s2834_s29 + $0xa4] sm:$0xf] %v263_v41  ;;  %v355_v23 = vld [vmem:[%s2829_s28 + $0x2b8] sm:$0xf]  ;;  %v357_v24 = vld [vmem:[%s2829_s28 + $0x2c0] sm:$0xf] }
  0x3f   : > { %266 = vst [vmem:[%s2834_s29 + $0xa8] sm:$0xf] %v265_v42  ;;  %v359_v25 = vld [vmem:[%s2829_s28 + $0x2c8] sm:$0xf]  ;;  %v361_v26 = vld [vmem:[%s2829_s28 + $0x2d0] sm:$0xf] }
  0x40   : > { %268 = vst [vmem:[%s2834_s29 + $0xac] sm:$0xf] %v267_v43  ;;  %v363_v27 = vld [vmem:[%s2829_s28 + $0x2d8] sm:$0xf]  ;;  %v365_v28 = vld [vmem:[%s2829_s28 + $0x2e0] sm:$0xf] }
  0x41   : > { %270 = vst [vmem:[%s2834_s29 + $0xb0] sm:$0xf] %v269_v44  ;;  %v367_v29 = vld [vmem:[%s2829_s28 + $0x2e8] sm:$0xf]  ;;  %v369_v30 = vld [vmem:[%s2829_s28 + $0x2f0] sm:$0xf] }
  0x42   : > { %272 = vst [vmem:[%s2834_s29 + $0xb4] sm:$0xf] %v271_v45  ;;  %v371_v31 = vld [vmem:[%s2829_s28 + $0x2f8] sm:$0xf]  ;;  %v373_v32 = vld [vmem:[%s2829_s28 + $0x300] sm:$0xf] }
  0x43   : > { %274 = vst [vmem:[%s2834_s29 + $0xb8] sm:$0xf] %v273_v46  ;;  %v375_v33 = vld [vmem:[%s2829_s28 + $0x308] sm:$0xf]  ;;  %v377_v34 = vld [vmem:[%s2829_s28 + $0x310] sm:$0xf] }
  0x44   : > { %276 = vst [vmem:[%s2834_s29 + $0xbc] sm:$0xf] %v275_v47  ;;  %v379_v35 = vld [vmem:[%s2829_s28 + $0x318] sm:$0xf]  ;;  %v381_v36 = vld [vmem:[%s2829_s28 + $0x320] sm:$0xf] }
  0x45   : > { %278 = vst [vmem:[%s2834_s29 + $0xc0] sm:$0xf] %v277_v48  ;;  %v383_v37 = vld [vmem:[%s2829_s28 + $0x328] sm:$0xf]  ;;  %v385_v38 = vld [vmem:[%s2829_s28 + $0x330] sm:$0xf] }
  0x46   : > { %280 = vst [vmem:[%s2834_s29 + $0xc4] sm:$0xf] %v279_v49  ;;  %v387_v39 = vld [vmem:[%s2829_s28 + $0x338] sm:$0xf]  ;;  %v389_v40 = vld [vmem:[%s2829_s28 + $0x340] sm:$0xf] }
  0x47   : > { %282 = vst [vmem:[%s2834_s29 + $0xc8] sm:$0xf] %v281_v50  ;;  %v391_v41 = vld [vmem:[%s2829_s28 + $0x348] sm:$0xf]  ;;  %v393_v42 = vld [vmem:[%s2829_s28 + $0x350] sm:$0xf] }
  0x48   : > { %284 = vst [vmem:[%s2834_s29 + $0xcc] sm:$0xf] %v283_v51  ;;  %v395_v43 = vld [vmem:[%s2829_s28 + $0x358] sm:$0xf]  ;;  %v397_v44 = vld [vmem:[%s2829_s28 + $0x360] sm:$0xf] }
  0x49   : > { %286 = vst [vmem:[%s2834_s29 + $0xd0] sm:$0xf] %v285_v52  ;;  %v399_v45 = vld [vmem:[%s2829_s28 + $0x368] sm:$0xf]  ;;  %v401_v46 = vld [vmem:[%s2829_s28 + $0x370] sm:$0xf] }
  0x4a   : > { %288 = vst [vmem:[%s2834_s29 + $0xd4] sm:$0xf] %v287_v53  ;;  %v403_v47 = vld [vmem:[%s2829_s28 + $0x378] sm:$0xf]  ;;  %v405_v48 = vld [vmem:[%s2829_s28 + $0x380] sm:$0xf] }
  0x4b   : > { %290 = vst [vmem:[%s2834_s29 + $0xd8] sm:$0xf] %v289_v54  ;;  %v407_v49 = vld [vmem:[%s2829_s28 + $0x388] sm:$0xf]  ;;  %v409_v50 = vld [vmem:[%s2829_s28 + $0x390] sm:$0xf] }
  0x4c   : > { %292 = vst [vmem:[%s2834_s29 + $0xdc] sm:$0xf] %v291_v55  ;;  %v411_v51 = vld [vmem:[%s2829_s28 + $0x398] sm:$0xf]  ;;  %v413_v52 = vld [vmem:[%s2829_s28 + $0x3a0] sm:$0xf] }
  0x4d   : > { %294 = vst [vmem:[%s2834_s29 + $0xe0] sm:$0xf] %v293_v56  ;;  %v415_v53 = vld [vmem:[%s2829_s28 + $0x3a8] sm:$0xf]  ;;  %v417_v54 = vld [vmem:[%s2829_s28 + $0x3b0] sm:$0xf] }
  0x4e   : > { %296 = vst [vmem:[%s2834_s29 + $0xe4] sm:$0xf] %v295_v57  ;;  %v419_v55 = vld [vmem:[%s2829_s28 + $0x3b8] sm:$0xf]  ;;  %v421_v56 = vld [vmem:[%s2829_s28 + $0x3c0] sm:$0xf] }
  0x4f   : > { %298 = vst [vmem:[%s2834_s29 + $0xe8] sm:$0xf] %v297_v58  ;;  %v423_v57 = vld [vmem:[%s2829_s28 + $0x3c8] sm:$0xf]  ;;  %v425_v58 = vld [vmem:[%s2829_s28 + $0x3d0] sm:$0xf] }
  0x50   : > { %300 = vst [vmem:[%s2834_s29 + $0xec] sm:$0xf] %v299_v59  ;;  %v427_v59 = vld [vmem:[%s2829_s28 + $0x3d8] sm:$0xf] }
  0x51   : > { %302 = vst [vmem:[%s2834_s29 + $0xf0] sm:$0xf] %v301_v60  ;;  %v429_v60 = vld [vmem:[%s2829_s28 + $0x3e0] sm:$0xf] }
  0x52   : > { %304 = vst [vmem:[%s2834_s29 + $0xf4] sm:$0xf] %v303_v61  ;;  %v431_v61 = vld [vmem:[%s2829_s28 + $0x3e8] sm:$0xf] }
  0x53   : > { %306 = vst [vmem:[%s2834_s29 + $0xf8] sm:$0xf] %v305_v62  ;;  %v433_v62 = vld [vmem:[%s2829_s28 + $0x3f0] sm:$0xf] }
  0x54   : > { %308 = vst [vmem:[%s2834_s29 + $0xfc] sm:$0xf] %v307_v63  ;;  %v435_v63 = vld [vmem:[%s2829_s28 + $0x3f8] sm:$0xf] }
  0x55   : > { %310 = vst [vmem:[%s2834_s29 + $0x100] sm:$0xf] %v309_v0  ;;  %v437_v0 = vld [vmem:[%s2829_s28 + $0x400] sm:$0xf] }
  0x56   : > { %312 = vst [vmem:[%s2834_s29 + $0x104] sm:$0xf] %v311_v1  ;;  %v439_v1 = vld [vmem:[%s2829_s28 + $0x408] sm:$0xf] }
  0x57   : > { %314 = vst [vmem:[%s2834_s29 + $0x108] sm:$0xf] %v313_v2  ;;  %v441_v2 = vld [vmem:[%s2829_s28 + $0x410] sm:$0xf] }
  0x58   : > { %316 = vst [vmem:[%s2834_s29 + $0x10c] sm:$0xf] %v315_v3  ;;  %v443_v3 = vld [vmem:[%s2829_s28 + $0x418] sm:$0xf] }
  0x59   : > { %318 = vst [vmem:[%s2834_s29 + $0x110] sm:$0xf] %v317_v4  ;;  %v445_v4 = vld [vmem:[%s2829_s28 + $0x420] sm:$0xf] }
  0x5a   : > { %320 = vst [vmem:[%s2834_s29 + $0x114] sm:$0xf] %v319_v5  ;;  %v447_v5 = vld [vmem:[%s2829_s28 + $0x428] sm:$0xf] }
  0x5b   : > { %322 = vst [vmem:[%s2834_s29 + $0x118] sm:$0xf] %v321_v6  ;;  %v449_v6 = vld [vmem:[%s2829_s28 + $0x430] sm:$0xf] }
  0x5c   : > { %324 = vst [vmem:[%s2834_s29 + $0x11c] sm:$0xf] %v323_v7  ;;  %v451_v7 = vld [vmem:[%s2829_s28 + $0x438] sm:$0xf] }
  0x5d   : > { %326 = vst [vmem:[%s2834_s29 + $0x120] sm:$0xf] %v325_v8  ;;  %v453_v8 = vld [vmem:[%s2829_s28 + $0x440] sm:$0xf] }
  0x5e   : > { %328 = vst [vmem:[%s2834_s29 + $0x124] sm:$0xf] %v327_v9  ;;  %v455_v9 = vld [vmem:[%s2829_s28 + $0x448] sm:$0xf] }
  0x5f   : > { %330 = vst [vmem:[%s2834_s29 + $0x128] sm:$0xf] %v329_v10  ;;  %v457_v10 = vld [vmem:[%s2829_s28 + $0x450] sm:$0xf] }
  0x60   : > { %332 = vst [vmem:[%s2834_s29 + $0x12c] sm:$0xf] %v331_v11  ;;  %v459_v11 = vld [vmem:[%s2829_s28 + $0x458] sm:$0xf] }
  0x61   : > { %334 = vst [vmem:[%s2834_s29 + $0x130] sm:$0xf] %v333_v12  ;;  %v461_v12 = vld [vmem:[%s2829_s28 + $0x460] sm:$0xf] }
  0x62   : > { %336 = vst [vmem:[%s2834_s29 + $0x134] sm:$0xf] %v335_v13  ;;  %v463_v13 = vld [vmem:[%s2829_s28 + $0x468] sm:$0xf] }
  0x63   : > { %338 = vst [vmem:[%s2834_s29 + $0x138] sm:$0xf] %v337_v14  ;;  %v465_v14 = vld [vmem:[%s2829_s28 + $0x470] sm:$0xf] }
  0x64   : > { %340 = vst [vmem:[%s2834_s29 + $0x13c] sm:$0xf] %v339_v15  ;;  %v467_v15 = vld [vmem:[%s2829_s28 + $0x478] sm:$0xf] }
  0x65   : > { %342 = vst [vmem:[%s2834_s29 + $0x140] sm:$0xf] %v341_v16 }
  0x66   : > { %344 = vst [vmem:[%s2834_s29 + $0x144] sm:$0xf] %v343_v17 }
  0x67   : > { %346 = vst [vmem:[%s2834_s29 + $0x148] sm:$0xf] %v345_v18 }
  0x68   : > { %348 = vst [vmem:[%s2834_s29 + $0x14c] sm:$0xf] %v347_v19 }
  0x69   : > { %350 = vst [vmem:[%s2834_s29 + $0x150] sm:$0xf] %v349_v20 }
  0x6a   : > { %352 = vst [vmem:[%s2834_s29 + $0x154] sm:$0xf] %v351_v21 }
  0x6b   : > { %354 = vst [vmem:[%s2834_s29 + $0x158] sm:$0xf] %v353_v22 }
  0x6c   : > { %356 = vst [vmem:[%s2834_s29 + $0x15c] sm:$0xf] %v355_v23 }
  0x6d   : > { %358 = vst [vmem:[%s2834_s29 + $0x160] sm:$0xf] %v357_v24 }
  0x6e   : > { %360 = vst [vmem:[%s2834_s29 + $0x164] sm:$0xf] %v359_v25 }
  0x6f   : > { %362 = vst [vmem:[%s2834_s29 + $0x168] sm:$0xf] %v361_v26 }
  0x70   : > { %364 = vst [vmem:[%s2834_s29 + $0x16c] sm:$0xf] %v363_v27 }
  0x71   : > { %366 = vst [vmem:[%s2834_s29 + $0x170] sm:$0xf] %v365_v28 }
  0x72   : > { %368 = vst [vmem:[%s2834_s29 + $0x174] sm:$0xf] %v367_v29 }
  0x73   : > { %370 = vst [vmem:[%s2834_s29 + $0x178] sm:$0xf] %v369_v30 }
  0x74   : > { %372 = vst [vmem:[%s2834_s29 + $0x17c] sm:$0xf] %v371_v31 }
  0x75   : > { %374 = vst [vmem:[%s2834_s29 + $0x180] sm:$0xf] %v373_v32 }
  0x76   : > { %376 = vst [vmem:[%s2834_s29 + $0x184] sm:$0xf] %v375_v33 }
  0x77   : > { %378 = vst [vmem:[%s2834_s29 + $0x188] sm:$0xf] %v377_v34 }
  0x78   : > { %380 = vst [vmem:[%s2834_s29 + $0x18c] sm:$0xf] %v379_v35 }
  0x79   : > { %382 = vst [vmem:[%s2834_s29 + $0x190] sm:$0xf] %v381_v36 }
  0x7a   : > { %384 = vst [vmem:[%s2834_s29 + $0x194] sm:$0xf] %v383_v37 }
  0x7b   : > { %386 = vst [vmem:[%s2834_s29 + $0x198] sm:$0xf] %v385_v38 }
  0x7c   : > { %388 = vst [vmem:[%s2834_s29 + $0x19c] sm:$0xf] %v387_v39 }
  0x7d   : > { %390 = vst [vmem:[%s2834_s29 + $0x1a0] sm:$0xf] %v389_v40 }
  0x7e   : > { %392 = vst [vmem:[%s2834_s29 + $0x1a4] sm:$0xf] %v391_v41 }
  0x7f   : > { %394 = vst [vmem:[%s2834_s29 + $0x1a8] sm:$0xf] %v393_v42 }
  0x80   : > { %396 = vst [vmem:[%s2834_s29 + $0x1ac] sm:$0xf] %v395_v43 }
  0x81   : > { %398 = vst [vmem:[%s2834_s29 + $0x1b0] sm:$0xf] %v397_v44 }
  0x82   : > { %400 = vst [vmem:[%s2834_s29 + $0x1b4] sm:$0xf] %v399_v45 }
  0x83   : > { %402 = vst [vmem:[%s2834_s29 + $0x1b8] sm:$0xf] %v401_v46 }
  0x84   : > { %404 = vst [vmem:[%s2834_s29 + $0x1bc] sm:$0xf] %v403_v47 }
  0x85   : > { %406 = vst [vmem:[%s2834_s29 + $0x1c0] sm:$0xf] %v405_v48 }
  0x86   : > { %408 = vst [vmem:[%s2834_s29 + $0x1c4] sm:$0xf] %v407_v49 }
  0x87   : > { %410 = vst [vmem:[%s2834_s29 + $0x1c8] sm:$0xf] %v409_v50 }
  0x88   : > { %412 = vst [vmem:[%s2834_s29 + $0x1cc] sm:$0xf] %v411_v51 }
  0x89   : > { %414 = vst [vmem:[%s2834_s29 + $0x1d0] sm:$0xf] %v413_v52 }
  0x8a   : > { %416 = vst [vmem:[%s2834_s29 + $0x1d4] sm:$0xf] %v415_v53 }
  0x8b   : > { %418 = vst [vmem:[%s2834_s29 + $0x1d8] sm:$0xf] %v417_v54 }
  0x8c   : > { %420 = vst [vmem:[%s2834_s29 + $0x1dc] sm:$0xf] %v419_v55 }
  0x8d   : > { %422 = vst [vmem:[%s2834_s29 + $0x1e0] sm:$0xf] %v421_v56 }
  0x8e   : > { %424 = vst [vmem:[%s2834_s29 + $0x1e4] sm:$0xf] %v423_v57 }
  0x8f   : > { %426 = vst [vmem:[%s2834_s29 + $0x1e8] sm:$0xf] %v425_v58 }
  0x90   : > { %428 = vst [vmem:[%s2834_s29 + $0x1ec] sm:$0xf] %v427_v59 }
  0x91   : > { %430 = vst [vmem:[%s2834_s29 + $0x1f0] sm:$0xf] %v429_v60 }
  0x92   : > { %432 = vst [vmem:[%s2834_s29 + $0x1f4] sm:$0xf] %v431_v61 }
  0x93   : > { %434 = vst [vmem:[%s2834_s29 + $0x1f8] sm:$0xf] %v433_v62 }
  0x94   : > { %436 = vst [vmem:[%s2834_s29 + $0x1fc] sm:$0xf] %v435_v63 }
  0x95   : > { %438 = vst [vmem:[%s2834_s29 + $0x200] sm:$0xf] %v437_v0 }
  0x96   : > { %440 = vst [vmem:[%s2834_s29 + $0x204] sm:$0xf] %v439_v1 }
  0x97   : > { %442 = vst [vmem:[%s2834_s29 + $0x208] sm:$0xf] %v441_v2 }
  0x98   : > { %444 = vst [vmem:[%s2834_s29 + $0x20c] sm:$0xf] %v443_v3 }
  0x99   : > { %446 = vst [vmem:[%s2834_s29 + $0x210] sm:$0xf] %v445_v4 }
  0x9a   : > { %448 = vst [vmem:[%s2834_s29 + $0x214] sm:$0xf] %v447_v5 }
  0x9b   : > { %450 = vst [vmem:[%s2834_s29 + $0x218] sm:$0xf] %v449_v6 }
  0x9c   : > { %452 = vst [vmem:[%s2834_s29 + $0x21c] sm:$0xf] %v451_v7 }
  0x9d   : > { %454 = vst [vmem:[%s2834_s29 + $0x220] sm:$0xf] %v453_v8 }
  0x9e   : > { %456 = vst [vmem:[%s2834_s29 + $0x224] sm:$0xf] %v455_v9 }
  0x9f   : > { %458 = vst [vmem:[%s2834_s29 + $0x228] sm:$0xf] %v457_v10 }
  0xa0   : > { %460 = vst [vmem:[%s2834_s29 + $0x22c] sm:$0xf] %v459_v11 }
  0xa1   : > { %462 = vst [vmem:[%s2834_s29 + $0x230] sm:$0xf] %v461_v12 }
  0xa2   : > { %464 = vst [vmem:[%s2834_s29 + $0x234] sm:$0xf] %v463_v13 }
  0xa3   : > { %466 = vst [vmem:[%s2834_s29 + $0x238] sm:$0xf] %v465_v14 }
  0xa4   : > { %468 = vst [vmem:[%s2834_s29 + $0x23c] sm:$0xf] %v467_v15 }
  0xa5 PF: > { %p2093_p8 = scmp.ge.s32.totalorder %s2759_s16, 1  ;;  %p785_p9 = scmp.lt.s32.totalorder %s2759_s16, 3 }
  0xa7   : > { %p786_p10 = pnand %p2093_p8, %p785_p9 }
  0xa8   : > { %s792_s30 = sand.u32 (!%p786_p10), 1, %s2743_s12   ;;  %p830_p11 = scmp.lt.s32.totalorder (!%p786_p10), %s2751_s14, 1 }
  0xa9   : > { %789 = sbr.rel (%p786_p10) target bundleno = 504 (0x1f8), region = 69 }
  0xaa   : > { %s2679_s4 = smul.u32 (!%p786_p10), 576, %s792_s30 }
  0xac   : > { %s3126_s5 = scalar_lea.vmem (!%p786_p10), [#allocation2], %s2679_s4 }
  0xae   : > { %v2574_v16 = vld [vmem:[%s3126_s5 + $0x38] sm:$0xff]  ;;  %v2573_v18 = vld [vmem:[%s3126_s5 + $0x30] sm:$0xff]  ;;  %v2572_v22 = vld [vmem:[%s3126_s5 + $0x28] sm:$0xff]  ;;  %s3147_s6 = scalar_select %p830_p11, %s2751_s14, 1 }
  0xaf   : > { %v2590_v17 = vld [vmem:[%s3126_s5 + $0xb8] sm:$0xff]  ;;  %2662 = vmatpush.bf16.msra.mxu1 %v2574_v16  ;;  %1638 = vmatpush.bf16.msra.mxu0 %v2574_v16  ;;  %v2589_v19 = vld [vmem:[%s3126_s5 + $0xb0] sm:$0xff]  ;;  %v2588_v23 = vld [vmem:[%s3126_s5 + $0xa8] sm:$0xff]  ;;  %s2528_s12 = sshll.u32 (%p2816_p6), %s2751_s14, 2 }
  0xb0   : > { %1696 = vmatpush.bf16.msra.mxu2 %v2590_v17  ;;  %v2598_v20 = vld [vmem:[%s3126_s5 + $0xf8] sm:$0xff]  ;;  %v2597_v21 = vld [vmem:[%s3126_s5 + $0xf0] sm:$0xff]  ;;  %v2596_v24 = vld [vmem:[%s3126_s5 + $0xe8] sm:$0xff]  ;;  %s832_s9 = scalar_lea.vmem %s3495_s2, %s3147_s6  ;;  %s2094_s6 = sshll.u32 %s792_s30, 5 }
  0xb1   : > { %1725 = vmatpush.bf16.msra.mxu3 %v2598_v20  ;;  %v2571_v25 = vld [vmem:[%s3126_s5 + $0x20] sm:$0xff]  ;;  %v2570_v28 = vld [vmem:[%s3126_s5 + $0x18] sm:$0xff]  ;;  %v2569_v31 = vld [vmem:[%s3126_s5 + $0x10] sm:$0xff]  ;;  %s1926_s26 = scalar_lea.vmem (%p2816_p6), %s3496_s3, %s2528_s12 }
  0xb2   : > { %v2587_v26 = vld [vmem:[%s3126_s5 + $0xa0] sm:$0xff]  ;;  %v2586_v29 = vld [vmem:[%s3126_s5 + $0x98] sm:$0xff]  ;;  %v2585_v32 = vld [vmem:[%s3126_s5 + $0x90] sm:$0xff] }
  0xb3   : > { %2663 = vmatpush.bf16.msra.mxu1 %v2573_v18  ;;  %1639 = vmatpush.bf16.msra.mxu0 %v2573_v18  ;;  %v2595_v27 = vld [vmem:[%s3126_s5 + $0xe0] sm:$0xff]  ;;  %v2594_v30 = vld [vmem:[%s3126_s5 + $0xd8] sm:$0xff]  ;;  %v2593_v33 = vld [vmem:[%s3126_s5 + $0xd0] sm:$0xff] }
  0xb4   : > { %1697 = vmatpush.bf16.msra.mxu2 %v2589_v19  ;;  %v2568_v34 = vld [vmem:[%s3126_s5 + $0x8] sm:$0xff]  ;;  %v2169_v36 = vld [vmem:[%s3493_s0 + $0x90] sm:$0xf]  ;;  %v2567_v37 = vld [vmem:[%s3126_s5] sm:$0xff] }
  0xb5   : > { %1726 = vmatpush.bf16.msra.mxu3 %v2597_v21  ;;  %v2584_v35 = vld [vmem:[%s3126_s5 + $0x88] sm:$0xff]  ;;  %v2553_v38 = vld [vmem:[%s3493_s0 + $0xb0] sm:$0xf0]  ;;  %v2582_v40 = vld [vmem:[%s3126_s5 + $0x78] sm:$0xff] }
  0xb6   : > { %v2592_v39 = vld [vmem:[%s3126_s5 + $0xc8] sm:$0xff]  ;;  %v2097_v41 = vld [vmem:[%s3493_s0] sm:$0xf]  ;;  %v2535_v42 = vld [vmem:[%s3493_s0 + $0x20] sm:$0xf0]  ;;  %v2170_v48 = vor.u32 %v2553_v38, %v2169_v36 }
  0xb7   : > { %2664 = vmatpush.bf16.msra.mxu1 %v2572_v22  ;;  %1640 = vmatpush.bf16.msra.mxu0 %v2572_v22  ;;  %v2583_v43 = vld [vmem:[%s3126_s5 + $0x80] sm:$0xff]  ;;  %v2105_v44 = vld [vmem:[%s3493_s0 + $0x8] sm:$0xf]  ;;  %v2536_v45 = vld [vmem:[%s3493_s0 + $0x28] sm:$0xf0]  ;;  %v2098_v49 = vor.u32 %v2535_v42, %v2097_v41 }
  0xb8   : > { %1698 = vmatpush.bf16.msra.mxu2 %v2588_v23  ;;  %v2606_v46 = vld [vmem:[%s3126_s5 + $0x138] sm:$0xff]  ;;  %v2106_v50 = vor.u32 %v2536_v45, %v2105_v44  ;;  %v2591_v51 = vld [vmem:[%s3126_s5 + $0xc0] sm:$0xff]  ;;  %v2532_v52 = vld [vmem:[%s3493_s0 + $0xc] sm:$0xf] }
  0xb9   : > { %1727 = vmatpush.bf16.msra.mxu3 %v2596_v24  ;;  %v2622_v47 = vld [vmem:[%s3126_s5 + $0x1b8] sm:$0xff]  ;;  %v2107_v53 = vld [vmem:[%s3493_s0 + $0x2c] sm:$0xf0]  ;;  %v2580_v59 = vld [vmem:[%s3126_s5 + $0x68] sm:$0xff] }
  0xba   : > { %v2581_v54 = vld [vmem:[%s3126_s5 + $0x70] sm:$0xff]  ;;  %v2630_v55 = vld [vmem:[%s3126_s5 + $0x1f8] sm:$0xff]  ;;  %v2110_v58 = vor.u32 %v2532_v52, %v2107_v53  ;;  %v2604_v61 = vld [vmem:[%s3126_s5 + $0x128] sm:$0xff] }
  0xbb   : > { %2665 = vmatpush.bf16.msra.mxu1 %v2571_v25  ;;  %1641 = vmatpush.bf16.msra.mxu0 %v2571_v25  ;;  %v2605_v56 = vld [vmem:[%s3126_s5 + $0x130] sm:$0xff]  ;;  %v2620_v62 = vld [vmem:[%s3126_s5 + $0x1a8] sm:$0xff]  ;;  %v2579_v63 = vld [vmem:[%s3126_s5 + $0x60] sm:$0xff] }
  0xbc   : > { %1699 = vmatpush.bf16.msra.mxu2 %v2587_v26  ;;  %v2621_v57 = vld [vmem:[%s3126_s5 + $0x1b0] sm:$0xff]  ;;  %v2628_v0 = vld [vmem:[%s3126_s5 + $0x1e8] sm:$0xff]  ;;  %v2603_v1 = vld [vmem:[%s3126_s5 + $0x120] sm:$0xff] }
  0xbd   : > { %1728 = vmatpush.bf16.msra.mxu3 %v2595_v27  ;;  %v2629_v60 = vld [vmem:[%s3126_s5 + $0x1f0] sm:$0xff]  ;;  %v2619_v2 = vld [vmem:[%s3126_s5 + $0x1a0] sm:$0xff]  ;;  %v2205_v3 = vld [vmem:[%s3493_s0 + $0xd8] sm:$0xf] }
  0xbe   : > { %v2562_v4 = vld [vmem:[%s3493_s0 + $0xf8] sm:$0xf0]  ;;  %v2133_v5 = vld [vmem:[%s3493_s0 + $0x48] sm:$0xf]  ;;  %v2544_v6 = vld [vmem:[%s3493_s0 + $0x68] sm:$0xf0] }
  0xbf   : > { %2666 = vmatpush.bf16.msra.mxu1 %v2570_v28  ;;  %1642 = vmatpush.bf16.msra.mxu0 %v2570_v28  ;;  %v2578_v7 = vld [vmem:[%s3126_s5 + $0x58] sm:$0xff]  ;;  %v2141_v8 = vld [vmem:[%s3493_s0 + $0x50] sm:$0xf]  ;;  %v2545_v9 = vld [vmem:[%s3493_s0 + $0x70] sm:$0xf0]  ;;  %v2206_v11 = vor.u32 %v2562_v4, %v2205_v3  ;;  %v2134_v12 = vor.u32 %v2544_v6, %v2133_v5 }
  0xc0   : > { %1700 = vmatpush.bf16.msra.mxu2 %v2586_v29  ;;  %v2602_v10 = vld [vmem:[%s3126_s5 + $0x118] sm:$0xff]  ;;  %v2142_v13 = vor.u32 %v2545_v9, %v2141_v8  ;;  %v2541_v14 = vld [vmem:[%s3493_s0 + $0x54] sm:$0xf]  ;;  %v2576_v20 = vld [vmem:[%s3126_s5 + $0x48] sm:$0xff] }
  0xc1   : > { %1729 = vmatpush.bf16.msra.mxu3 %v2594_v30  ;;  %v2143_v15 = vld [vmem:[%s3493_s0 + $0x74] sm:$0xf0]  ;;  %v2577_v16 = vld [vmem:[%s3126_s5 + $0x50] sm:$0xff]  ;;  %v2627_v21 = vld [vmem:[%s3126_s5 + $0x1e0] sm:$0xff] }
  0xc2   : > { %v2601_v17 = vld [vmem:[%s3126_s5 + $0x110] sm:$0xff]  ;;  %v2146_v18 = vor.u32 %v2541_v14, %v2143_v15  ;;  %v2618_v19 = vld [vmem:[%s3126_s5 + $0x198] sm:$0xff]  ;;  %v2600_v22 = vld [vmem:[%s3126_s5 + $0x108] sm:$0xff] }
  0xc3   : > { %2667 = vmatpush.bf16.msra.mxu1 %v2569_v31  ;;  %1643 = vmatpush.bf16.msra.mxu0 %v2569_v31  ;;  %v2617_v23 = vld [vmem:[%s3126_s5 + $0x190] sm:$0xff]  ;;  %v2626_v24 = vld [vmem:[%s3126_s5 + $0x1d8] sm:$0xff]  ;;  %v2575_v25 = vld [vmem:[%s3126_s5 + $0x40] sm:$0xff] }
  0xc4   : > { %1701 = vmatpush.bf16.msra.mxu2 %v2585_v32  ;;  %v2614_v26 = vld [vmem:[%s3126_s5 + $0x178] sm:$0xff]  ;;  %v2599_v27 = vld [vmem:[%s3126_s5 + $0x100] sm:$0xff]  ;;  %v2099_v30 = vld [vmem:[%s3493_s0 + $0x24] sm:$0xf0] }
  0xc5   : > { %1730 = vmatpush.bf16.msra.mxu3 %v2593_v33  ;;  %v2531_v28 = vld [vmem:[%s3493_s0 + $0x4] sm:$0xf]  ;;  %v2638_v29 = vld [vmem:[%s3126_s5 + $0x238] sm:$0xff]  ;;  %v2113_v31 = vld [vmem:[%s3493_s0 + $0x10] sm:$0xf] }
  0xc6   : > { %v2537_v32 = vld [vmem:[%s3493_s0 + $0x30] sm:$0xf0]  ;;  %v2177_v33 = vld [vmem:[%s3493_s0 + $0x98] sm:$0xf]  ;;  %v2102_v36 = vor.u32 %v2531_v28, %v2099_v30  ;;  %v2612_v42 = vld [vmem:[%s3126_s5 + $0x168] sm:$0xff] }
  0xc7   : > { %2668 = vmatpush.bf16.msra.mxu1 %v2568_v34  ;;  %1644 = vmatpush.bf16.msra.mxu0 %v2568_v34  ;;  %v2554_v34 = vld [vmem:[%s3493_s0 + $0xb8] sm:$0xf0]  ;;  %v2637_v41 = vld [vmem:[%s3126_s5 + $0x230] sm:$0xff]  ;;  %v2615_v45 = vld [vmem:[%s3126_s5 + $0x180] sm:$0xff] }
  0xc8   : > { %1702 = vmatpush.bf16.msra.mxu2 %v2584_v35  ;;  %v2613_v35 = vld [vmem:[%s3126_s5 + $0x170] sm:$0xff]  ;;  %v2178_v38 = vor.u32 %v2554_v34, %v2177_v33  ;;  %v2540_v52 = vld [vmem:[%s3493_s0 + $0x4c] sm:$0xf]  ;;  %v2634_v3 = vld [vmem:[%s3126_s5 + $0x218] sm:$0xff] }
  0xc9   : > { %1731 = vmatpush.bf16.msra.mxu3 %v2592_v39  ;;  %v2550_v39 = vld [vmem:[%s3493_s0 + $0x9c] sm:$0xf]  ;;  %v2135_v53 = vld [vmem:[%s3493_s0 + $0x6c] sm:$0xf0]  ;;  %v2607_v4 = vld [vmem:[%s3126_s5 + $0x140] sm:$0xff] }
  0xca   : > { %v2633_v5 = vld [vmem:[%s3126_s5 + $0x210] sm:$0xff]  ;;  %v2171_v8 = vld [vmem:[%s3493_s0 + $0xb4] sm:$0xf0]  ;;  %v2185_v9 = vld [vmem:[%s3493_s0 + $0xa0] sm:$0xf] }
  0xcb   : > { %2669 = vmatpush.bf16.msra.mxu1 %v2567_v37  ;;  %1645 = vmatpush.bf16.msra.mxu0 %v2567_v37  ;;  %v2114_v37 = vor.u32 %v2537_v32, %v2113_v31  ;;  %v2549_v6 = vld [vmem:[%s3493_s0 + $0x94] sm:$0xf]  ;;  %v2159_v30 = vld [vmem:[%s3493_s0 + $0x84] sm:$0xf0]  ;;  %v2115_v33 = vld [vmem:[%s3493_s0 + $0x34] sm:$0xf0] }
  0xcc   : > { %1703 = vmatpush.bf16.msra.mxu2 %v2583_v43  ;;  %v2616_v43 = vld [vmem:[%s3126_s5 + $0x188] sm:$0xff]  ;;  %v2533_v32 = vld [vmem:[%s3493_s0 + $0x14] sm:$0xf]  ;;  %v2129_v34 = vld [vmem:[%s3493_s0 + $0x20] sm:$0xf] }
  0xcd   : > { %1732 = vmatpush.bf16.msra.mxu3 %v2591_v51  ;;  %v2610_v51 = vld [vmem:[%s3126_s5 + $0x158] sm:$0xff] }
  0xce   : > { %1656 = vmatmul.bf16.vlgmr.msra.gmra.mxu1 %v2170_v48  ;;  %1646 = vmatmul.bf16.vlgmr.msra.gmra.mxu0 %v2098_v49  ;;  %v2611_v48 = vld [vmem:[%s3126_s5 + $0x160] sm:$0xff]  ;;  %v2624_v49 = vld [vmem:[%s3126_s5 + $0x1c8] sm:$0xff] }
  0xcf   : > { %1667 = vmatpush.bf16.msrb.mxu1 %v2582_v40  ;;  %1754 = vmatpush.bf16.msrb.mxu0 %v2606_v46  ;;  %v2179_v40 = vld [vmem:[%s3493_s0 + $0xbc] sm:$0xf0]  ;;  %v2625_v46 = vld [vmem:[%s3126_s5 + $0x1d0] sm:$0xff] }
  0xd0   : > { %1812 = vmatpush.bf16.msrb.mxu2 %v2622_v47  ;;  %1733 = vmatmul.bf16.vlgmr.msra.gmra.mxu3 %v2110_v58  ;;  %v2182_v44 = vor.u32 %v2550_v39, %v2179_v40  ;;  %v2636_v47 = vld [vmem:[%s3126_s5 + $0x228] sm:$0xff]  ;;  %v2609_v58 = vld [vmem:[%s3126_s5 + $0x150] sm:$0xff] }
  0xd1   : > { %1704 = vmatmul.bf16.vlgmr.msra.gmra.mxu2 %v2106_v50  ;;  %1841 = vmatpush.bf16.msrb.mxu3 %v2630_v55  ;;  %v2635_v50 = vld [vmem:[%s3126_s5 + $0x220] sm:$0xff]  ;;  %v2546_v55 = vld [vmem:[%s3493_s0 + $0x78] sm:$0xf0] }
  0xd3   : > { %1668 = vmatpush.bf16.msrb.mxu1 %v2581_v54  ;;  %1755 = vmatpush.bf16.msrb.mxu0 %v2605_v56  ;;  %v2149_v54 = vld [vmem:[%s3493_s0 + $0x58] sm:$0xf]  ;;  %v2213_v56 = vld [vmem:[%s3493_s0 + $0xe0] sm:$0xf] }
  0xd4   : > { %1813 = vmatpush.bf16.msrb.mxu2 %v2621_v57  ;;  %v2563_v57 = vld [vmem:[%s3493_s0 + $0x100] sm:$0xf0] }
  0xd5   : > { %1842 = vmatpush.bf16.msrb.mxu3 %v2629_v60  ;;  %v2150_v60 = vor.u32 %v2546_v55, %v2149_v54  ;;  %v2231_v54 = vld [vmem:[%s3493_s0 + $0x114] sm:$0xf0] }
  0xd7   : > { %1669 = vmatpush.bf16.msrb.mxu1 %v2580_v59  ;;  %1756 = vmatpush.bf16.msrb.mxu0 %v2604_v61  ;;  %v2138_v59 = vor.u32 %v2540_v52, %v2135_v53  ;;  %v2214_v61 = vor.u32 %v2563_v57, %v2213_v56  ;;  %v2561_v53 = vld [vmem:[%s3493_s0 + $0xf4] sm:$0xf]  ;;  %v2551_v56 = vld [vmem:[%s3493_s0 + $0xa4] sm:$0xf]  ;;  %v2187_v57 = vld [vmem:[%s3493_s0 + $0xc4] sm:$0xf0] }
  0xd8   : > { %1814 = vmatpush.bf16.msrb.mxu2 %v2620_v62  ;;  %v2559_v62 = vld [vmem:[%s3493_s0 + $0xe4] sm:$0xf]  ;;  %v2234_v55 = vor.u32 %v2561_v53, %v2231_v54 }
  0xd9   : > { %1843 = vmatpush.bf16.msrb.mxu3 %v2628_v0 }
  0xdb   : > { %1670 = vmatpush.bf16.msrb.mxu1 %v2579_v63  ;;  %1757 = vmatpush.bf16.msrb.mxu0 %v2603_v1  ;;  %v2215_v63 = vld [vmem:[%s3493_s0 + $0x104] sm:$0xf0] }
  0xdc   : > { %1815 = vmatpush.bf16.msrb.mxu2 %v2619_v2  ;;  %v2218_v0 = vor.u32 %v2559_v62, %v2215_v63  ;;  %v2608_v1 = vld [vmem:[%s3126_s5 + $0x148] sm:$0xff]  ;;  %v2623_v2 = vld [vmem:[%s3126_s5 + $0x1c0] sm:$0xff]  ;;  %v2190_v62 = vor.u32 %v2551_v56, %v2187_v57 }
  0xdd   : > { %1844 = vmatpush.bf16.msrb.mxu3 %v2627_v21  ;;  %v2207_v21 = vld [vmem:[%s3493_s0 + $0xfc] sm:$0xf0] }
  0xde   : > { %1661 = vmatmul.bf16.gmra.mxu1 %v2206_v11  ;;  %1651 = vmatmul.bf16.gmra.mxu0 %v2134_v12  ;;  %v2121_v11 = vld [vmem:[%s3493_s0 + $0x18] sm:$0xf]  ;;  %v2538_v12 = vld [vmem:[%s3493_s0 + $0x38] sm:$0xf0] }
  0xdf   : > { %1671 = vmatpush.bf16.msrb.mxu1 %v2578_v7  ;;  %1758 = vmatpush.bf16.msrb.mxu0 %v2602_v10  ;;  %v2632_v7 = vld [vmem:[%s3126_s5 + $0x208] sm:$0xff]  ;;  %v2555_v10 = vld [vmem:[%s3493_s0 + $0xc0] sm:$0xf0]  ;;  %v2122_v15 = vor.u32 %v2538_v12, %v2121_v11 }
  0xe0   : > { %1816 = vmatpush.bf16.msrb.mxu2 %v2618_v19  ;;  %1738 = vmatmul.bf16.gmra.mxu3 %v2146_v18  ;;  %v2186_v14 = vor.u32 %v2555_v10, %v2185_v9  ;;  %v2631_v19 = vld [vmem:[%s3126_s5 + $0x200] sm:$0xff] }
  0xe1   : > { %1709 = vmatmul.bf16.gmra.mxu2 %v2142_v13  ;;  %1845 = vmatpush.bf16.msrb.mxu3 %v2626_v24  ;;  %v2174_v13 = vor.u32 %v2549_v6, %v2171_v8  ;;  %v2157_v24 = vld [vmem:[%s3493_s0 + $0x60] sm:$0xf]  ;;  %v2223_v8 = vld [vmem:[%s3493_s0 + $0x10c] sm:$0xf0] }
  0xe3   : > { %1672 = vmatpush.bf16.msrb.mxu1 %v2577_v16  ;;  %1759 = vmatpush.bf16.msrb.mxu0 %v2601_v17  ;;  %v2534_v16 = vld [vmem:[%s3493_s0 + $0x1c] sm:$0xf]  ;;  %v2123_v17 = vld [vmem:[%s3493_s0 + $0x3c] sm:$0xf0] }
  0xe4   : > { %1817 = vmatpush.bf16.msrb.mxu2 %v2617_v23  ;;  %v2126_v18 = vor.u32 %v2534_v16, %v2123_v17  ;;  %v2564_v23 = vld [vmem:[%s3493_s0 + $0x108] sm:$0xf0] }
  0xe5   : > { %1846 = vmatpush.bf16.msrb.mxu3 %v2625_v46  ;;  %v2165_v46 = vld [vmem:[%s3493_s0 + $0x68] sm:$0xf] }
  0xe7   : > { %1673 = vmatpush.bf16.msrb.mxu1 %v2576_v20  ;;  %1760 = vmatpush.bf16.msrb.mxu0 %v2600_v22  ;;  %v2558_v20 = vld [vmem:[%s3493_s0 + $0xdc] sm:$0xf]  ;;  %v2221_v22 = vld [vmem:[%s3493_s0 + $0xe8] sm:$0xf] }
  0xe8   : > { %1818 = vmatpush.bf16.msrb.mxu2 %v2616_v43 }
  0xe9   : > { %1847 = vmatpush.bf16.msrb.mxu3 %v2624_v49  ;;  %v2565_v49 = vld [vmem:[%s3493_s0 + $0x110] sm:$0xf0] }
  0xeb   : > { %1674 = vmatpush.bf16.msrb.mxu1 %v2575_v25  ;;  %1761 = vmatpush.bf16.msrb.mxu0 %v2599_v27  ;;  %v2547_v25 = vld [vmem:[%s3493_s0 + $0x80] sm:$0xf0]  ;;  %v2222_v27 = vor.u32 %v2564_v23, %v2221_v22 }
  0xec   : > { %1819 = vmatpush.bf16.msrb.mxu2 %v2615_v45  ;;  %v2158_v28 = vor.u32 %v2547_v25, %v2157_v24  ;;  %v2151_v45 = vld [vmem:[%s3493_s0 + $0x7c] sm:$0xf0] }
  0xed   : > { %1848 = vmatpush.bf16.msrb.mxu3 %v2623_v2 }
  0xee   : > { %1675 = vmatmul.bf16.vlgmr.msrb.gmra.mxu1 %v2102_v36  ;;  %1762 = vmatmul.bf16.vlgmr.msrb.gmra.mxu0 %v2114_v37  ;;  %v2193_v36 = vld [vmem:[%s3493_s0 + $0xa8] sm:$0xf]  ;;  %v2556_v37 = vld [vmem:[%s3493_s0 + $0xc8] sm:$0xf0] }
  0xef   : > { %1783 = vmatpush.bf16.msra.mxu1 %v2614_v26  ;;  %1870 = vmatpush.bf16.msra.mxu0 %v2638_v29  ;;  %v2210_v26 = vor.u32 %v2558_v20, %v2207_v21  ;;  %v2194_v40 = vor.u32 %v2556_v37, %v2193_v36 }
  0xf0   : > { %1743 = vmatmul.bf16.gmra.mxu3 %v2182_v44  ;;  %2670 = vmatpush.bf16.msra.mxu2 %v2638_v29  ;;  %v2543_v29 = vld [vmem:[%s3493_s0 + $0x64] sm:$0xf]  ;;  %v2542_v44 = vld [vmem:[%s3493_s0 + $0x5c] sm:$0xf] }
  0xf1   : > { %1714 = vmatmul.bf16.gmra.mxu2 %v2178_v38  ;;  %v2162_v31 = vor.u32 %v2543_v29, %v2159_v30  ;;  %v2118_v38 = vor.u32 %v2533_v32, %v2115_v33 }
  0xf3   : > { %1784 = vmatpush.bf16.msra.mxu1 %v2613_v35  ;;  %1871 = vmatpush.bf16.msra.mxu0 %v2637_v41  ;;  %v2539_v35 = vld [vmem:[%s3493_s0 + $0x40] sm:$0xf0] }
  0xf4   : > { %2671 = vmatpush.bf16.msra.mxu2 %v2637_v41  ;;  %v2130_v39 = vor.u32 %v2539_v35, %v2129_v34  ;;  %v2552_v41 = vld [vmem:[%s3493_s0 + $0xac] sm:$0xf] }
  0xf7   : > { %1785 = vmatpush.bf16.msra.mxu1 %v2612_v42  ;;  %1872 = vmatpush.bf16.msra.mxu0 %v2636_v47  ;;  %v2195_v42 = vld [vmem:[%s3493_s0 + $0xcc] sm:$0xf0] }
  0xf8   : > { %2672 = vmatpush.bf16.msra.mxu2 %v2636_v47  ;;  %v2198_v43 = vor.u32 %v2552_v41, %v2195_v42  ;;  %v2548_v47 = vld [vmem:[%s3493_s0 + $0x88] sm:$0xf0] }
  0xfb   : > { %1786 = vmatpush.bf16.msra.mxu1 %v2611_v48  ;;  %1873 = vmatpush.bf16.msra.mxu0 %v2635_v50  ;;  %v2229_v48 = vld [vmem:[%s3493_s0 + $0xf0] sm:$0xf] }
  0xfc   : > { %2673 = vmatpush.bf16.msra.mxu2 %v2635_v50  ;;  %v2154_v50 = vor.u32 %v2542_v44, %v2151_v45  ;;  %v2230_v52 = vor.u32 %v2565_v49, %v2229_v48 }
  0xfe   : > { %1680 = vmatmul.bf16.gmra.mxu1 %v2138_v59  ;;  %1767 = vmatmul.bf16.gmra.mxu0 %v2150_v60  ;;  %v2557_v59 = vld [vmem:[%s3493_s0 + $0xd0] sm:$0xf0]  ;;  %v2237_v60 = vld [vmem:[%s3493_s0 + $0xf8] sm:$0xf] }
  0xff   : > { %1787 = vmatpush.bf16.msra.mxu1 %v2610_v51  ;;  %1874 = vmatpush.bf16.msra.mxu0 %v2634_v3  ;;  %v2166_v51 = vor.u32 %v2548_v47, %v2165_v46 }
 0x100   : > { %1748 = vmatmul.bf16.gmra.mxu3 %v2218_v0  ;;  %2674 = vmatpush.bf16.msra.mxu2 %v2634_v3 }
 0x101   : > { %1719 = vmatmul.bf16.gmra.mxu2 %v2214_v61  ;;  %v2566_v61 = vld [vmem:[%s3493_s0 + $0x118] sm:$0xf0] }
 0x102   : > { %v2238_v2 = vor.u32 %v2566_v61, %v2237_v60 }
 0x103   : > { %1788 = vmatpush.bf16.msra.mxu1 %v2609_v58  ;;  %1875 = vmatpush.bf16.msra.mxu0 %v2633_v5  ;;  %v2201_v58 = vld [vmem:[%s3493_s0 + $0xb0] sm:$0xf] }
 0x104   : > { %2675 = vmatpush.bf16.msra.mxu2 %v2633_v5  ;;  %v2202_v63 = vor.u32 %v2557_v59, %v2201_v58 }
 0x107   : > { %1789 = vmatpush.bf16.msra.mxu1 %v2608_v1  ;;  %1876 = vmatpush.bf16.msra.mxu0 %v2632_v7 }
 0x108   : > { %2676 = vmatpush.bf16.msra.mxu2 %v2632_v7  ;;  %v2560_v7 = vld [vmem:[%s3493_s0 + $0xec] sm:$0xf] }
 0x109   : > { %v2226_v9 = vor.u32 %v2560_v7, %v2223_v8 }
 0x10b   : > { %1790 = vmatpush.bf16.msra.mxu1 %v2607_v4  ;;  %1877 = vmatpush.bf16.msra.mxu0 %v2631_v19 }
 0x10c   : > { %2677 = vmatpush.bf16.msra.mxu2 %v2631_v19 }
 0x10e   : > { %1685 = vmatmul.bf16.gmra.mxu1 %v2174_v13  ;;  %1772 = vmatmul.bf16.gmra.mxu0 %v2186_v14 }
 0x110   : > { %1849 = vmatmul.bf16.vlgmr.msrb.gmra.mxu3 %v2126_v18  ;;  %v2720_v18 = vld [vmem:[%s832_s9] ss:$0 sm:$0xff]  ;;  %s3451_s9 = scalar_lea.vmem [#allocation3], %s2094_s6 }
 0x111   : > { %1820 = vmatmul.bf16.vlgmr.msrb.gmra.mxu2 %v2122_v15 }
 0x11e   : > { %1690 = vmatmul.bf16.gmra.mxu1 %v2210_v26  ;;  %1777 = vmatmul.bf16.gmra.mxu0 %v2222_v27 }
 0x120   : > { %1854 = vmatmul.bf16.gmra.mxu3 %v2162_v31 }
 0x121   : > { %1825 = vmatmul.bf16.gmra.mxu2 %v2158_v28 }
 0x12e   : > { %1791 = vmatmul.bf16.vlgmr.msra.gmra.mxu1 %v2118_v38  ;;  %1878 = vmatmul.bf16.vlgmr.msra.gmra.mxu0 %v2130_v39 }
 0x130   : > { %1859 = vmatmul.bf16.gmra.mxu3 %v2198_v43 }
 0x131   : > { %1830 = vmatmul.bf16.gmra.mxu2 %v2194_v40 }
 0x13e   : > { %1796 = vmatmul.bf16.gmra.mxu1 %v2154_v50  ;;  %1883 = vmatmul.bf16.gmra.mxu0 %v2166_v51 }
 0x140   : > { %1864 = vmatmul.bf16.gmra.mxu3 %v2234_v55 }
 0x141   : > { %1835 = vmatmul.bf16.gmra.mxu2 %v2230_v52 }
 0x14b   : > { %v1657_v0 = vpop.f32.mrf.mxu1  ;;  %v1647_v1 = vpop.f32.mrf.mxu0 }
 0x14c   : > { %v1648_v19 = vadd.f32 %v2720_v18, %v1647_v1  ;;  %v1658_v50 = vadd.f32 %v2720_v18, %v1657_v0 }
 0x14e   : > { %1801 = vmatmul.bf16.gmra.mxu1 %v2190_v62  ;;  %1888 = vmatmul.bf16.gmra.mxu0 %v2202_v63 }
 0x151   : > { %1893 = vmatmul.bf16.vlgmr.msra.gmra.mxu2 %v2238_v2 }
 0x153   : > { %v1659_v4 = vpop.f32.mrf.mxu1  ;;  %v1649_v5 = vpop.f32.mrf.mxu0 }
 0x154   : > { %v1705_v3 = vpop.f32.mrf.mxu2  ;;  %v1734_v6 = vpop.f32.mrf.mxu3  ;;  %v1650_v27 = vadd.f32 %v2720_v18, %v1649_v5  ;;  %v1660_v58 = vadd.f32 %v2720_v18, %v1659_v4 }
 0x15b   : > { %v1662_v11 = vpop.f32.mrf.mxu1  ;;  %v1652_v12 = vpop.f32.mrf.mxu0 }
 0x15c   : > { %v1707_v10 = vpop.f32.mrf.mxu2  ;;  %v3424_v13 = vpop.f32.mrf.mxu3  ;;  %v1653_v35 = vadd.f32 %v2720_v18, %v1652_v12 }
 0x15e   : > { %1806 = vmatmul.bf16.gmra.mxu1 %v2226_v9 }
 0x163   : > { %v1664_v15 = vpop.f32.mrf.mxu1  ;;  %v1654_v16 = vpop.f32.mrf.mxu0 }
 0x164   : > { %v1710_v14 = vpop.f32.mrf.mxu2  ;;  %v1739_v17 = vpop.f32.mrf.mxu3  ;;  %v1655_v42 = vadd.f32 %v2720_v18, %v1654_v16  ;;  %v1665_v12 = vadd.f32 %v2720_v18, %v1664_v15 }
 0x16b   : > { %v1676_v21 = vpop.f32.mrf.mxu1  ;;  %v1763_v22 = vpop.f32.mrf.mxu0 }
 0x16c   : > { %v1712_v20 = vpop.f32.mrf.mxu2  ;;  %v1677_v23 = vadd.f32 %v1676_v21, %v1648_v19  ;;  %v3431_v25 = vpop.f32.mrf.mxu3 }
 0x16e   : > { %v1706_v24 = vadd.f32 %v1705_v3, %v1677_v23  ;;  %v1663_v3 = vadd.f32 %v2720_v18, %v1662_v11 }
 0x170   : > { %v1735_v26 = vadd.f32 %v1734_v6, %v1706_v24 }
 0x172   : > { %v1764_v28 = vadd.f32 %v1763_v22, %v1735_v26 }
 0x173   : > { %v1678_v30 = vpop.f32.mrf.mxu1  ;;  %v1765_v31 = vpop.f32.mrf.mxu0 }
 0x174   : > { %v1715_v29 = vpop.f32.mrf.mxu2  ;;  %v1679_v32 = vadd.f32 %v1678_v30, %v1650_v27  ;;  %v1744_v34 = vpop.f32.mrf.mxu3 }
 0x176   : > { %v1708_v33 = vadd.f32 %v1707_v10, %v1679_v32 }
 0x178   : > { %v1737_v24 = vadd.f32 %v3424_v13, %v1708_v33 }
 0x17a   : > { %v1766_v27 = vadd.f32 %v1765_v31, %v1737_v24 }
 0x17b   : > { %v1681_v37 = vpop.f32.mrf.mxu1  ;;  %v1768_v38 = vpop.f32.mrf.mxu0 }
 0x17c   : > { %v1717_v36 = vpop.f32.mrf.mxu2  ;;  %v1682_v39 = vadd.f32 %v1681_v37, %v1653_v35  ;;  %v3435_v45 = vpop.f32.mrf.mxu3 }
 0x17e   : > { %v1711_v40 = vadd.f32 %v1710_v14, %v1682_v39 }
 0x180   : > { %v1740_v41 = vadd.f32 %v1739_v17, %v1711_v40 }
 0x182   : > { %v3433_v43 = vadd.f32 %v1768_v38, %v1740_v41 }
 0x183   : > { %v1683_v46 = vpop.f32.mrf.mxu1  ;;  %v1770_v47 = vpop.f32.mrf.mxu0 }
 0x184   : > { %v1720_v44 = vpop.f32.mrf.mxu2  ;;  %v1684_v48 = vadd.f32 %v1683_v46, %v1655_v42  ;;  %v1749_v55 = vpop.f32.mrf.mxu3 }
 0x186   : > { %v1713_v49 = vadd.f32 %v1712_v20, %v1684_v48 }
 0x188   : > { %v1742_v13 = vadd.f32 %v3431_v25, %v1713_v49 }
 0x18b   : > { %v1686_v52 = vpop.f32.mrf.mxu1  ;;  %v1773_v53 = vpop.f32.mrf.mxu0 }
 0x18c   : > { %v1722_v51 = vpop.f32.mrf.mxu2  ;;  %v1687_v54 = vadd.f32 %v1686_v52, %v1658_v50  ;;  %v3441_v2 = vpop.f32.mrf.mxu3 }
 0x18e   : > { %v1716_v56 = vadd.f32 %v1715_v29, %v1687_v54 }
 0x190   : > { %v1745_v57 = vadd.f32 %v1744_v34, %v1716_v56 }
 0x192   : > { %v3437_v59 = vadd.f32 %v1773_v53, %v1745_v57 }
 0x193   : > { %v1688_v61 = vpop.f32.mrf.mxu1  ;;  %v3439_v62 = vpop.f32.mrf.mxu0 }
 0x194   : > { %v1821_v60 = vpop.f32.mrf.mxu2  ;;  %v1689_v63 = vadd.f32 %v1688_v61, %v1660_v58  ;;  %v1850_v10 = vpop.f32.mrf.mxu3 }
 0x196   : > { %v1718_v1 = vadd.f32 %v1717_v36, %v1689_v63 }
 0x19b   : > { %v1691_v5 = vpop.f32.mrf.mxu1  ;;  %v1778_v6 = vpop.f32.mrf.mxu0 }
 0x19c   : > { %v1823_v0 = vpop.f32.mrf.mxu2  ;;  %v1692_v7 = vadd.f32 %v1691_v5, %v1663_v3  ;;  %v1852_v21 = vpop.f32.mrf.mxu3 }
 0x19e   : > { %v1721_v8 = vadd.f32 %v1720_v44, %v1692_v7  ;;  %v1771_v44 = vadd.f32 %v1770_v47, %v1742_v13 }
 0x1a0   : > { %v1750_v9 = vadd.f32 %v1749_v55, %v1721_v8 }
 0x1a2   : > { %v3443_v4 = vadd.f32 %v1778_v6, %v1750_v9 }
 0x1a3   : > { %v1693_v16 = vpop.f32.mrf.mxu1  ;;  %v3445_v17 = vpop.f32.mrf.mxu0 }
 0x1a4   : > { %v1826_v14 = vpop.f32.mrf.mxu2  ;;  %v1694_v19 = vadd.f32 %v1693_v16, %v1665_v12  ;;  %v1855_v32 = vpop.f32.mrf.mxu3 }
 0x1a6   : > { %v1723_v20 = vadd.f32 %v1722_v51, %v1694_v19 }
 0x1ab   : > { %v1792_v22 = vpop.f32.mrf.mxu1  ;;  %v1879_v11 = vpop.f32.mrf.mxu0 }
 0x1ac   : > { %v1828_v23 = vpop.f32.mrf.mxu2  ;;  %v1793_v26 = vadd.f32 %v1792_v22, %v1764_v28  ;;  %v1857_v31 = vpop.f32.mrf.mxu3 }
 0x1ae   : > { %v1822_v29 = vadd.f32 %v1821_v60, %v1793_v26 }
 0x1b0   : > { %v1851_v34 = vadd.f32 %v1850_v10, %v1822_v29 }
 0x1b2   : > { %v1880_v38 = vadd.f32 %v1879_v11, %v1851_v34 }
 0x1b3   : > { %v1794_v30 = vpop.f32.mrf.mxu1  ;;  %v1881_v15 = vpop.f32.mrf.mxu0 }
 0x1b4   : > { %v1795_v18 = vadd.f32 %v1794_v30, %v1766_v27  ;;  %v1831_v36 = vpop.f32.mrf.mxu2  ;;  %v1860_v55 = vpop.f32.mrf.mxu3 }
 0x1b6   : > { %v1824_v35 = vadd.f32 %v1823_v0, %v1795_v18 }
 0x1b8   : > { %v1853_v37 = vadd.f32 %v1852_v21, %v1824_v35 }
 0x1ba   : > { %v1882_v39 = vadd.f32 %v1881_v15, %v1853_v37 }
 0x1bb   : > { %v1797_v40 = vpop.f32.mrf.mxu1  ;;  %v1884_v41 = vpop.f32.mrf.mxu0 }
 0x1bc   : > { %v2642_v42 = vpack.c.bf16 %v1882_v39, %v1880_v38  ;;  %v1798_v28 = vadd.f32 %v1797_v40, %v3433_v43  ;;  %v1833_v33 = vpop.f32.mrf.mxu2  ;;  %v1747_v43 = vadd.f32 %v3435_v45, %v1718_v1  ;;  %v1862_v3 = vpop.f32.mrf.mxu3  ;;  %v1752_v1 = vadd.f32 %v3441_v2, %v1723_v20 }
 0x1be   : > { %2643 = vst [vmem:[%s3451_s9] sm:$0xff] %v2642_v42   ;;  %v1827_v46 = vadd.f32 %v1826_v14, %v1798_v28  ;;  %v1776_v61 = vadd.f32 %v3439_v62, %v1747_v43  ;;  %v1781_v21 = vadd.f32 %v3445_v17, %v1752_v1 }
 0x1c0   : > { %v1856_v52 = vadd.f32 %v1855_v32, %v1827_v46 }
 0x1c2   : > { %v1885_v56 = vadd.f32 %v1884_v41, %v1856_v52 }
 0x1c3   : > { %v1799_v48 = vpop.f32.mrf.mxu1  ;;  %v1886_v50 = vpop.f32.mrf.mxu0 }
 0x1c4   : > { %v1800_v51 = vadd.f32 %v1799_v48, %v1771_v44  ;;  %v1836_v49 = vpop.f32.mrf.mxu2  ;;  %v1865_v45 = vpop.f32.mrf.mxu3 }
 0x1c5   : > { %v1943_v2 = vld [vmem:[%s3451_s9] sm:$0xf] (%p2816_p6) }
 0x1c6   : > { %v1829_v53 = vadd.f32 %v1828_v23, %v1800_v51  ;;  %1944 = vst [vmem:[%s1926_s26] sm:$0xf] (%p2816_p6), %v1943_v2 }
 0x1c8   : > { %v1858_v54 = vadd.f32 %v1857_v31, %v1829_v53 }
 0x1ca   : > { %v1887_v25 = vadd.f32 %v1886_v50, %v1858_v54 }
 0x1cb   : > { %v1802_v57 = vpop.f32.mrf.mxu1  ;;  %v1889_v60 = vpop.f32.mrf.mxu0 }
 0x1cc   : > { %v2647_v58 = vpack.c.bf16 %v1887_v25, %v1885_v56  ;;  %v1803_v47 = vadd.f32 %v1802_v57, %v3437_v59  ;;  %v1838_v6 = vpop.f32.mrf.mxu2  ;;  %v1867_v27 = vpop.f32.mrf.mxu3 }
 0x1ce   : > { %2659 = vst [vmem:[%s3451_s9 + $0x8] sm:$0xff] %v2647_v58   ;;  %v1832_v63 = vadd.f32 %v1831_v36, %v1803_v47 }
 0x1d0   : > { %v1861_v7 = vadd.f32 %v1860_v55, %v1832_v63 }
 0x1d2   : > { %v1890_v12 = vadd.f32 %v1889_v60, %v1861_v7 }
 0x1d3   : > { %v1804_v0 = vpop.f32.mrf.mxu1  ;;  %v1891_v9 = vpop.f32.mrf.mxu0 }
 0x1d4   : > { %v1805_v5 = vadd.f32 %v1804_v0, %v1776_v61  ;;  %v1894_v62 = vpop.f32.mrf.mxu2 }
 0x1d5   : > { %v1947_v17 = vld [vmem:[%s3451_s9 + $0x8] sm:$0xf] (%p2816_p6)  ;;  %v1949_v20 = vld [vmem:[%s3451_s9 + $0xc] sm:$0xf] (%p2816_p6) }
 0x1d6   : > { %v1834_v8 = vadd.f32 %v1833_v33, %v1805_v5  ;;  %1948 = vst [vmem:[%s1926_s26 + $0x10] sm:$0xf] (%p2816_p6), %v1947_v17 }
 0x1d7   : > { %1950 = vst [vmem:[%s1926_s26 + $0x18] sm:$0xf] (%p2816_p6), %v1949_v20 }
 0x1d8   : > { %v1863_v10 = vadd.f32 %v1862_v3, %v1834_v8 }
 0x1da   : > { %v1892_v14 = vadd.f32 %v1891_v9, %v1863_v10 }
 0x1db   : > { %v1807_v16 = vpop.f32.mrf.mxu1 }
 0x1dc   : > { %v2652_v19 = vpack.c.bf16 %v1892_v14, %v1890_v12  ;;  %v1808_v59 = vadd.f32 %v1807_v16, %v3443_v4  ;;  %v1896_v30 = vpop.f32.mrf.mxu2  ;;  %v1945_v4 = vld [vmem:[%s3451_s9 + $0x4] sm:$0xf] (%p2816_p6) }
 0x1dd   : > { %1946 = vst [vmem:[%s1926_s26 + $0x8] sm:$0xf] (%p2816_p6), %v1945_v4 }
 0x1de   : > { %2660 = vst [vmem:[%s3451_s9 + $0x10] sm:$0xff] %v2652_v19   ;;  %v1837_v22 = vadd.f32 %v1836_v49, %v1808_v59 }
 0x1e0   : > { %v1866_v24 = vadd.f32 %v1865_v45, %v1837_v22 }
 0x1e2   : > { %v1895_v15 = vadd.f32 %v1894_v62, %v1866_v24 }
 0x1e3   : > { %v1809_v11 = vpop.f32.mrf.mxu1 }
 0x1e4   : > { %v1810_v23 = vadd.f32 %v1809_v11, %v1781_v21 }
 0x1e5   : > { %v1951_v34 = vld [vmem:[%s3451_s9 + $0x10] sm:$0xf] (%p2816_p6)  ;;  %v1953_v35 = vld [vmem:[%s3451_s9 + $0x14] sm:$0xf] (%p2816_p6) }
 0x1e6   : > { %v1839_v26 = vadd.f32 %v1838_v6, %v1810_v23  ;;  %1952 = vst [vmem:[%s1926_s26 + $0x20] sm:$0xf] (%p2816_p6), %v1951_v34 }
 0x1e7   : > { %1954 = vst [vmem:[%s1926_s26 + $0x28] sm:$0xf] (%p2816_p6), %v1953_v35 }
 0x1e8   : > { %v1868_v29 = vadd.f32 %v1867_v27, %v1839_v26 }
 0x1ea   : > { %v1897_v18 = vadd.f32 %v1896_v30, %v1868_v29  ;;  %1921 = sbr.rel (!%p2816_p6) target bundleno = 504 (0x1f8), region = 77 }
 0x1ec   : > { %v2657_v32 = vpack.c.bf16 %v1897_v18, %v1895_v15 }
 0x1ee   : > { %2661 = vst [vmem:[%s3451_s9 + $0x18] sm:$0xff] %v2657_v32  }
 0x1f5   : > { %v1955_v36 = vld [vmem:[%s3451_s9 + $0x18] sm:$0xf]  ;;  %v1957_v37 = vld [vmem:[%s3451_s9 + $0x1c] sm:$0xf] }
 0x1f6   : > { %1956 = vst [vmem:[%s1926_s26 + $0x30] sm:$0xf] %v1955_v36 }
 0x1f7   : > { %1958 = vst [vmem:[%s1926_s26 + $0x38] sm:$0xf] %v1957_v37 }
 0x1f8 PF: > { %s13_s16 = sadd.s32 1, %s2759_s16   ;;  %s3498_s12 = smov %s2747_s13 }
 0x1f9   : > { %p10_p12 = scmp.ge.s32.totalorder %s13_s16, 4   ;;  %s3499_s13 = smov %s2821_s22 }
 0x1fa   : > { %s3500_s14 = smov %s2755_s15  ;;  %s3501_s15 = smov %s3503_s17 }
 0x1fb   :  { %12 = sbr.rel (!%p10_p12) target bundleno = 3 (0x3), region = 155 }

// kernel: cnn_forward.12
= control target key start
LH: loop header
LB: loop body
LE: loop exit
PB: predicated region body
PF: predicated region fallthrough
CT: control target
= control target key end

     0   :  { %s259_s6 = smov 0   ;;  %s276_s0 = inlined_call_operand.vmem [shape: bf16[2,4,2,512], index: 0, kind: input, shape index: {}]   ;;  %s277_s1 = inlined_call_operand.vmem [shape: bf16[2,2,2,256], index: 1, kind: output, shape index: {}]  }
   0x1 LB: > { %s215_s7 = sadd.s32 4294967295, %s247_s6   ;;  %p219_p0 = scmp.ge.s32.totalorder %s247_s6, 1  ;;  %s247_s6 = sphi %s259_s6, %s11_s6  }
   0x2   : > { %p86_p1 = scmp.lt.s32.totalorder %s247_s6, 3 }
   0x4   : > { %p87_p2 = pnand %p219_p0, %p86_p1 }
   0x5   : > { %p104_p3 = scmp.lt.s32.totalorder (!%p87_p2), %s215_s7, 1 }
   0x6   : > { %90 = sbr.rel (%p87_p2) target bundleno = 40 (0x28), region = 24 }
   0xb   : > { %s279_s7 = smov (!%p104_p3, %s215_s7), 1  ;;  %vm151_vm0 = vcmask 1040384  }
   0xc   : > { %s220_s8 = sshll.u32 %s279_s7, 4  ;;  %s221_s12 = sshll.u32 %s279_s7, 2 }
   0xd   : > { %s107_s11 = scalar_lea.vmem %s276_s0, %s220_s8  ;;  %s111_s15 = scalar_lea.vmem %s277_s1, %s221_s12 }
   0xe   : > { %v225_v0 = vld [vmem:[%s107_s11] sm:$0xff]   ;;  %v232_v1 = vld [vmem:[%s107_s11 + $0x8] sm:$0xff]  }
   0xf   : > { %v226_v2 = vunpack.c.l.bf16 %v225_v0  ;;  %v227_v3 = vunpack.c.h.bf16 %v225_v0  ;;  %v230_v4 = vunpack.c.l.bf16 %v232_v1  ;;  %v231_v5 = vunpack.c.h.bf16 %v232_v1 }
  0x11   : > { %v120_v6 = vmax.f32 %v226_v2, %v227_v3  ;;  %v121_v7 = vmax.f32 %v230_v4, %v231_v5 }
  0x13   : > { %v124_v8 = vrot.slane %v120_v6, 4  ;;  %v125_v9 = vrot.slane %v121_v7, 4 }
  0x15   : > { %v128_v10 = vmax.f32 %v120_v6, %v124_v8  ;;  %v129_v11 = vmax.f32 %v121_v7, %v125_v9 }
  0x17   : > { %v130_v12 = vmax.f32 %v128_v10, 0.0  ;;  %v131_v13 = vmax.f32 %v129_v11, 0.0 }
  0x19   : > { %134 = vst [vmem:[#allocation1] ss:$4 sm:$0xff] %v130_v12 }
  0x1a   : > { %138 = vst [vmem:[#allocation1 + $0x20] ss:$4 sm:$0xff] %v131_v13 }
  0x20   : > { %v135_v14 = vld.sshfl [vmem:[#allocation1] sm:$0xff pattern:$0x73625140]  ;;  %v136_v15 = vld.sshfl [vmem:[#allocation1 + $0x8] sm:$0xff pattern:$0x73625140] }
  0x21   : > { %v145_v16 = vpack.c.bf16 %v136_v15, %v135_v14  ;;  %v139_v17 = vld.sshfl [vmem:[#allocation1 + $0x20] sm:$0xff pattern:$0x73625140]  ;;  %v140_v18 = vld.sshfl [vmem:[#allocation1 + $0x28] sm:$0xff pattern:$0x73625140] }
  0x22   : > { %v146_v19 = vpack.c.bf16 %v140_v18, %v139_v17 }
  0x23   : > { %v149_v20 = vrot.slane %v145_v16, 3 }
  0x24   : > { %v150_v21 = vrot.slane %v146_v19, 3 }
  0x25   : > { %v154_v22 = vsel %vm151_vm0, %v145_v16, %v149_v20 }
  0x26   : > { %160 = vst [vmem:[%s111_s15] sm:$0x3] %v154_v22  ;;  %v157_v23 = vsel %vm151_vm0, %v146_v19, %v150_v21 }
  0x27   : > { %161 = vst [vmem:[%s111_s15 + $0x2] sm:$0x3] %v157_v23 }
  0x28 PF: > { %s11_s6 = sadd.s32 1, %s247_s6  }
  0x29   : > { %p8_p4 = scmp.ge.s32.totalorder %s11_s6, 4  }
  0x2b   :  { %10 = sbr.rel (!%p8_p4) target bundleno = 1 (0x1), region = 55 }

// kernel: cnn_forward.13
= control target key start
LH: loop header
LB: loop body
LE: loop exit
PB: predicated region body
PF: predicated region fallthrough
CT: control target
= control target key end

     0   :  { %s1374_s1 = inlined_call_operand.vmem [shape: bf16[1024,128], index: 1, kind: input, shape index: {}]   ;;  %s1375_s2 = inlined_call_operand.vmem [shape: f32[1,128], index: 2, kind: input, shape index: {}]   ;;  %s1376_s0 = inlined_call_operand.vmem [shape: bf16[16,1024], index: 0, kind: input, shape index: {}]   ;;  %s1377_s3 = inlined_call_operand.vmem [shape: f32[16,128], index: 3, kind: output, shape index: {}]  }
   0x1   :  { %v1039_v0 = vld [vmem:[%s1374_s1 + $0x38] sm:$0xff]  ;;  %v1038_v4 = vld [vmem:[%s1374_s1 + $0x30] sm:$0xff]  ;;  %v1037_v8 = vld [vmem:[%s1374_s1 + $0x28] sm:$0xff] }
   0x2   :  { %v1047_v1 = vld [vmem:[%s1374_s1 + $0x78] sm:$0xff]  ;;  %578 = vmatpush.bf16.msra.mxu0 %v1039_v0  ;;  %v1046_v5 = vld [vmem:[%s1374_s1 + $0x70] sm:$0xff]  ;;  %v1045_v9 = vld [vmem:[%s1374_s1 + $0x68] sm:$0xff] }
   0x3   :  { %v1055_v2 = vld [vmem:[%s1374_s1 + $0xb8] sm:$0xff]  ;;  %592 = vmatpush.bf16.msra.mxu1 %v1047_v1  ;;  %v1054_v6 = vld [vmem:[%s1374_s1 + $0xb0] sm:$0xff]  ;;  %v1053_v10 = vld [vmem:[%s1374_s1 + $0xa8] sm:$0xff] }
   0x4   :  { %v1063_v3 = vld [vmem:[%s1374_s1 + $0xf8] sm:$0xff]  ;;  %606 = vmatpush.bf16.msra.mxu2 %v1055_v2  ;;  %v1062_v7 = vld [vmem:[%s1374_s1 + $0xf0] sm:$0xff]  ;;  %v1061_v11 = vld [vmem:[%s1374_s1 + $0xe8] sm:$0xff] }
   0x5   :  { %620 = vmatpush.bf16.msra.mxu3 %v1063_v3  ;;  %v1036_v12 = vld [vmem:[%s1374_s1 + $0x20] sm:$0xff]  ;;  %v1035_v16 = vld [vmem:[%s1374_s1 + $0x18] sm:$0xff]  ;;  %v1034_v20 = vld [vmem:[%s1374_s1 + $0x10] sm:$0xff] }
   0x6   :  { %579 = vmatpush.bf16.msra.mxu0 %v1038_v4  ;;  %v1044_v13 = vld [vmem:[%s1374_s1 + $0x60] sm:$0xff]  ;;  %v1043_v17 = vld [vmem:[%s1374_s1 + $0x58] sm:$0xff]  ;;  %v1042_v21 = vld [vmem:[%s1374_s1 + $0x50] sm:$0xff] }
   0x7   :  { %593 = vmatpush.bf16.msra.mxu1 %v1046_v5  ;;  %v1052_v14 = vld [vmem:[%s1374_s1 + $0xa0] sm:$0xff]  ;;  %v1051_v18 = vld [vmem:[%s1374_s1 + $0x98] sm:$0xff]  ;;  %v1050_v22 = vld [vmem:[%s1374_s1 + $0x90] sm:$0xff] }
   0x8   :  { %607 = vmatpush.bf16.msra.mxu2 %v1054_v6  ;;  %v1060_v15 = vld [vmem:[%s1374_s1 + $0xe0] sm:$0xff]  ;;  %v1059_v19 = vld [vmem:[%s1374_s1 + $0xd8] sm:$0xff]  ;;  %v1058_v23 = vld [vmem:[%s1374_s1 + $0xd0] sm:$0xff] }
   0x9   :  { %621 = vmatpush.bf16.msra.mxu3 %v1062_v7  ;;  %v1033_v24 = vld [vmem:[%s1374_s1 + $0x8] sm:$0xff]  ;;  %v1032_v28 = vld [vmem:[%s1374_s1] sm:$0xff]  ;;  %v1071_v32 = vld [vmem:[%s1374_s1 + $0x138] sm:$0xff] }
   0xa   :  { %580 = vmatpush.bf16.msra.mxu0 %v1037_v8  ;;  %v1041_v25 = vld [vmem:[%s1374_s1 + $0x48] sm:$0xff]  ;;  %v1040_v29 = vld [vmem:[%s1374_s1 + $0x40] sm:$0xff]  ;;  %v1079_v33 = vld [vmem:[%s1374_s1 + $0x178] sm:$0xff] }
   0xb   :  { %594 = vmatpush.bf16.msra.mxu1 %v1045_v9  ;;  %v1049_v26 = vld [vmem:[%s1374_s1 + $0x88] sm:$0xff]  ;;  %v1048_v30 = vld [vmem:[%s1374_s1 + $0x80] sm:$0xff]  ;;  %v1087_v42 = vld [vmem:[%s1374_s1 + $0x1b8] sm:$0xff] }
   0xc   :  { %608 = vmatpush.bf16.msra.mxu2 %v1053_v10  ;;  %v1057_v27 = vld [vmem:[%s1374_s1 + $0xc8] sm:$0xff]  ;;  %v1056_v31 = vld [vmem:[%s1374_s1 + $0xc0] sm:$0xff]  ;;  %v1095_v43 = vld [vmem:[%s1374_s1 + $0x1f8] sm:$0xff] }
   0xd   :  { %622 = vmatpush.bf16.msra.mxu3 %v1061_v11  ;;  %v744_v34 = vld [vmem:[%s1376_s0 + $0x8] sm:$0xf]  ;;  %v736_v36 = vld [vmem:[%s1376_s0] sm:$0xf]  ;;  %v1025_v38 = vld [vmem:[%s1376_s0 + $0xc] sm:$0xf] }
   0xe   :  { %581 = vmatpush.bf16.msra.mxu0 %v1036_v12  ;;  %v1029_v35 = vld [vmem:[%s1376_s0 + $0x24] sm:$0xf0]  ;;  %v1028_v37 = vld [vmem:[%s1376_s0 + $0x1c] sm:$0xf0]  ;;  %v746_v39 = vld [vmem:[%s1376_s0 + $0x28] sm:$0xf0] }
   0xf   :  { %595 = vmatpush.bf16.msra.mxu1 %v1044_v13  ;;  %v1024_v40 = vld [vmem:[%s1376_s0 + $0x4] sm:$0xf]  ;;  %v745_v44 = vor.u32 %v1029_v35, %v744_v34  ;;  %v737_v45 = vor.u32 %v1028_v37, %v736_v36  ;;  %v749_v46 = vor.u32 %v1025_v38, %v746_v39  ;;  %v1070_v48 = vld [vmem:[%s1374_s1 + $0x130] sm:$0xff]  ;;  %v1069_v52 = vld [vmem:[%s1374_s1 + $0x128] sm:$0xff] }
  0x10   :  { %609 = vmatpush.bf16.msra.mxu2 %v1052_v14  ;;  %v738_v41 = vld [vmem:[%s1376_s0 + $0x20] sm:$0xf0]  ;;  %v1078_v49 = vld [vmem:[%s1374_s1 + $0x170] sm:$0xff]  ;;  %v1077_v53 = vld [vmem:[%s1374_s1 + $0x168] sm:$0xff] }
  0x11   :  { %623 = vmatpush.bf16.msra.mxu3 %v1060_v15  ;;  %v741_v47 = vor.u32 %v1024_v40, %v738_v41  ;;  %v1086_v50 = vld [vmem:[%s1374_s1 + $0x1b0] sm:$0xff]  ;;  %v1085_v54 = vld [vmem:[%s1374_s1 + $0x1a8] sm:$0xff]  ;;  %v1068_v56 = vld [vmem:[%s1374_s1 + $0x120] sm:$0xff] }
  0x12   :  { %582 = vmatpush.bf16.msra.mxu0 %v1035_v16  ;;  %v1094_v51 = vld [vmem:[%s1374_s1 + $0x1f0] sm:$0xff]  ;;  %v1093_v55 = vld [vmem:[%s1374_s1 + $0x1e8] sm:$0xff]  ;;  %v1076_v57 = vld [vmem:[%s1374_s1 + $0x160] sm:$0xff] }
  0x13   :  { %596 = vmatpush.bf16.msra.mxu1 %v1043_v17  ;;  %v1084_v58 = vld [vmem:[%s1374_s1 + $0x1a0] sm:$0xff]  ;;  %v1067_v60 = vld [vmem:[%s1374_s1 + $0x118] sm:$0xff]  ;;  %v1066_v0 = vld [vmem:[%s1374_s1 + $0x110] sm:$0xff] }
  0x14   :  { %610 = vmatpush.bf16.msra.mxu2 %v1051_v18  ;;  %v1092_v59 = vld [vmem:[%s1374_s1 + $0x1e0] sm:$0xff]  ;;  %v1075_v61 = vld [vmem:[%s1374_s1 + $0x158] sm:$0xff]  ;;  %v1074_v1 = vld [vmem:[%s1374_s1 + $0x150] sm:$0xff] }
  0x15   :  { %624 = vmatpush.bf16.msra.mxu3 %v1059_v19  ;;  %v1083_v62 = vld [vmem:[%s1374_s1 + $0x198] sm:$0xff]  ;;  %v1082_v2 = vld [vmem:[%s1374_s1 + $0x190] sm:$0xff]  ;;  %v1065_v4 = vld [vmem:[%s1374_s1 + $0x108] sm:$0xff] }
  0x16   :  { %583 = vmatpush.bf16.msra.mxu0 %v1034_v20  ;;  %v1091_v63 = vld [vmem:[%s1374_s1 + $0x1d8] sm:$0xff]  ;;  %v1090_v3 = vld [vmem:[%s1374_s1 + $0x1d0] sm:$0xff]  ;;  %v1073_v5 = vld [vmem:[%s1374_s1 + $0x148] sm:$0xff] }
  0x17   :  { %597 = vmatpush.bf16.msra.mxu1 %v1042_v21  ;;  %v1081_v6 = vld [vmem:[%s1374_s1 + $0x188] sm:$0xff]  ;;  %v1064_v8 = vld [vmem:[%s1374_s1 + $0x100] sm:$0xff]  ;;  %v752_v12 = vld [vmem:[%s1376_s0 + $0x10] sm:$0xf] }
  0x18   :  { %611 = vmatpush.bf16.msra.mxu2 %v1050_v22  ;;  %v1089_v7 = vld [vmem:[%s1374_s1 + $0x1c8] sm:$0xff]  ;;  %v1072_v9 = vld [vmem:[%s1374_s1 + $0x140] sm:$0xff]  ;;  %v1030_v13 = vld [vmem:[%s1376_s0 + $0x2c] sm:$0xf0] }
  0x19   :  { %625 = vmatpush.bf16.msra.mxu3 %v1058_v23  ;;  %v1080_v10 = vld [vmem:[%s1374_s1 + $0x180] sm:$0xff]  ;;  %v1026_v14 = vld [vmem:[%s1376_s0 + $0x14] sm:$0xf]  ;;  %v760_v16 = vld [vmem:[%s1376_s0 + $0x18] sm:$0xf]  ;;  %v753_v20 = vor.u32 %v1030_v13, %v752_v12 }
  0x1a   :  { %584 = vmatpush.bf16.msra.mxu0 %v1033_v24  ;;  %v1088_v11 = vld [vmem:[%s1374_s1 + $0x1c0] sm:$0xff]  ;;  %v754_v15 = vld [vmem:[%s1376_s0 + $0x30] sm:$0xf0]  ;;  %v1031_v17 = vld [vmem:[%s1376_s0 + $0x34] sm:$0xf0] }
  0x1b   :  { %598 = vmatpush.bf16.msra.mxu1 %v1041_v25  ;;  %v1027_v18 = vld [vmem:[%s1376_s0 + $0x1c] sm:$0xf]  ;;  %v757_v21 = vor.u32 %v1026_v14, %v754_v15  ;;  %v761_v22 = vor.u32 %v1031_v17, %v760_v16  ;;  %v1096_v25 = vld [vmem:[%s1375_s2] ss:$0 sm:$0xff] }
  0x1c   :  { %612 = vmatpush.bf16.msra.mxu2 %v1049_v26  ;;  %v762_v19 = vld [vmem:[%s1376_s0 + $0x38] sm:$0xf0] }
  0x1d   :  { %626 = vmatpush.bf16.msra.mxu3 %v1057_v27  ;;  %v765_v23 = vor.u32 %v1027_v18, %v762_v19 }
  0x1e   :  { %585 = vmatpush.bf16.msra.mxu0 %v1032_v28 }
  0x1f   :  { %599 = vmatpush.bf16.msra.mxu1 %v1040_v29 }
  0x20   :  { %613 = vmatpush.bf16.msra.mxu2 %v1048_v30 }
  0x21   :  { %627 = vmatpush.bf16.msra.mxu3 %v1056_v31  ;;  %586 = vmatmul.bf16.vlgmr.msra.gmra.mxu0 %v737_v45 }
  0x22   :  { %634 = vmatpush.bf16.msrb.mxu0 %v1071_v32  ;;  %600 = vmatmul.bf16.vlgmr.msra.gmra.mxu1 %v741_v47 }
  0x23   :  { %648 = vmatpush.bf16.msrb.mxu1 %v1079_v33  ;;  %614 = vmatmul.bf16.vlgmr.msra.gmra.mxu2 %v745_v44 }
  0x24   :  { %662 = vmatpush.bf16.msrb.mxu2 %v1087_v42  ;;  %628 = vmatmul.bf16.vlgmr.msra.gmra.mxu3 %v749_v46 }
  0x25   :  { %676 = vmatpush.bf16.msrb.mxu3 %v1095_v43 }
  0x26   :  { %635 = vmatpush.bf16.msrb.mxu0 %v1070_v48 }
  0x27   :  { %649 = vmatpush.bf16.msrb.mxu1 %v1078_v49 }
  0x28   :  { %663 = vmatpush.bf16.msrb.mxu2 %v1086_v50 }
  0x29   :  { %677 = vmatpush.bf16.msrb.mxu3 %v1094_v51 }
  0x2a   :  { %636 = vmatpush.bf16.msrb.mxu0 %v1069_v52 }
  0x2b   :  { %650 = vmatpush.bf16.msrb.mxu1 %v1077_v53 }
  0x2c   :  { %664 = vmatpush.bf16.msrb.mxu2 %v1085_v54 }
  0x2d   :  { %678 = vmatpush.bf16.msrb.mxu3 %v1093_v55 }
  0x2e   :  { %637 = vmatpush.bf16.msrb.mxu0 %v1068_v56 }
  0x2f   :  { %651 = vmatpush.bf16.msrb.mxu1 %v1076_v57 }
  0x30   :  { %665 = vmatpush.bf16.msrb.mxu2 %v1084_v58 }
  0x31   :  { %679 = vmatpush.bf16.msrb.mxu3 %v1092_v59 }
  0x32   :  { %638 = vmatpush.bf16.msrb.mxu0 %v1067_v60 }
  0x33   :  { %652 = vmatpush.bf16.msrb.mxu1 %v1075_v61 }
  0x34   :  { %666 = vmatpush.bf16.msrb.mxu2 %v1083_v62 }
  0x35   :  { %680 = vmatpush.bf16.msrb.mxu3 %v1091_v63 }
  0x36   :  { %639 = vmatpush.bf16.msrb.mxu0 %v1066_v0 }
  0x37   :  { %653 = vmatpush.bf16.msrb.mxu1 %v1074_v1 }
  0x38   :  { %667 = vmatpush.bf16.msrb.mxu2 %v1082_v2 }
  0x39   :  { %681 = vmatpush.bf16.msrb.mxu3 %v1090_v3 }
  0x3a   :  { %640 = vmatpush.bf16.msrb.mxu0 %v1065_v4 }
  0x3b   :  { %654 = vmatpush.bf16.msrb.mxu1 %v1073_v5 }
  0x3c   :  { %668 = vmatpush.bf16.msrb.mxu2 %v1081_v6 }
  0x3d   :  { %682 = vmatpush.bf16.msrb.mxu3 %v1089_v7 }
  0x3e   :  { %641 = vmatpush.bf16.msrb.mxu0 %v1064_v8 }
  0x3f   :  { %655 = vmatpush.bf16.msrb.mxu1 %v1072_v9 }
  0x40   :  { %669 = vmatpush.bf16.msrb.mxu2 %v1080_v10 }
  0x41   :  { %683 = vmatpush.bf16.msrb.mxu3 %v1088_v11  ;;  %642 = vmatmul.bf16.vlgmr.msrb.gmra.mxu0 %v753_v20 }
  0x42   :  { %656 = vmatmul.bf16.vlgmr.msrb.gmra.mxu1 %v757_v21 }
  0x43   :  { %670 = vmatmul.bf16.vlgmr.msrb.gmra.mxu2 %v761_v22 }
  0x44   :  { %684 = vmatmul.bf16.vlgmr.msrb.gmra.mxu3 %v765_v23 }
  0x9e   :  { %v587_v24 = vpop.f32.mrf.mxu0 }
  0x9f   :  { %v601_v26 = vpop.f32.mrf.mxu1  ;;  %v588_v27 = vadd.f32 %v1096_v25, %v587_v24 }
  0xa1   :  { %v602_v30 = vadd.f32 %v601_v26, %v588_v27 }
  0xa6   :  { %v615_v28 = vpop.f32.mrf.mxu2  ;;  %v589_v31 = vpop.f32.mrf.mxu0 }
  0xa7   :  { %v629_v29 = vpop.f32.mrf.mxu3  ;;  %v603_v32 = vpop.f32.mrf.mxu1  ;;  %v616_v33 = vadd.f32 %v615_v28, %v602_v30  ;;  %v590_v34 = vadd.f32 %v1096_v25, %v589_v31 }
  0xa9   :  { %v630_v37 = vadd.f32 %v629_v29, %v616_v33  ;;  %v604_v38 = vadd.f32 %v603_v32, %v590_v34 }
  0xae   :  { %v617_v35 = vpop.f32.mrf.mxu2 }
  0xaf   :  { %v631_v36 = vpop.f32.mrf.mxu3  ;;  %v618_v42 = vadd.f32 %v617_v35, %v604_v38 }
  0xb1   :  { %v632_v46 = vadd.f32 %v631_v36, %v618_v42 }
  0xbe   :  { %v643_v39 = vpop.f32.mrf.mxu0 }
  0xbf   :  { %v644_v40 = vadd.f32 %v643_v39, %v630_v37  ;;  %v657_v41 = vpop.f32.mrf.mxu1 }
  0xc1   :  { %v658_v43 = vadd.f32 %v657_v41, %v644_v40 }
  0xc6   :  { %v671_v44 = vpop.f32.mrf.mxu2  ;;  %v645_v48 = vpop.f32.mrf.mxu0 }
  0xc7   :  { %v685_v45 = vpop.f32.mrf.mxu3  ;;  %v672_v47 = vadd.f32 %v671_v44, %v658_v43  ;;  %v646_v50 = vadd.f32 %v645_v48, %v632_v46  ;;  %v659_v52 = vpop.f32.mrf.mxu1 }
  0xc9   :  { %v686_v49 = vadd.f32 %v685_v45, %v672_v47  ;;  %v660_v53 = vadd.f32 %v659_v52, %v646_v50 }
  0xcb   :  { %v1022_v51 = vmul.f32 -1.442695, %v686_v49 }
  0xcd   :  { %1097 = vpow2.f32 %v1022_v51 }
  0xce   :  { %v673_v54 = vpop.f32.mrf.mxu2 }
  0xcf   :  { %v674_v55 = vadd.f32 %v673_v54, %v660_v53  ;;  %v687_v56 = vpop.f32.mrf.mxu3 }
  0xd1   :  { %v688_v57 = vadd.f32 %v687_v56, %v674_v55 }
  0xd3   :  { %v1098_v58 = vpop.eup %1097  ;;  %v1023_v59 = vmul.f32 -1.442695, %v688_v57 }
  0xd4   :  { %v696_v60 = vadd.f32 1.0, %v1098_v58 }
  0xd5   :  { %1099 = vpow2.f32 %v1023_v59 }
  0xd6   :  { %1101 = vrcp.f32 %v696_v60  ;;  %v709_v2 = vand.u32 2147483648, %v696_v60  ;;  %v707_v4 = vand.u32 2147483647, %v696_v60  ;;  %vm703_vm1 = vweird.f32 %v696_v60 }
  0xd8   :  { %v710_v7 = vor.u32 1.1754944e-38, %v709_v2  ;;  %vm708_vm3 = vcmp.eq.f32.partialorder %v707_v4, 8.507059e+37 }
  0xdb   :  { %v1100_v61 = vpop.eup %1099 }
  0xdc   :  { %v1102_v62 = vpop.eup %1101  ;;  %v697_v63 = vadd.f32 1.0, %v1100_v61 }
  0xdd   :  { %v699_v0 = vmul.f32 %v1102_v62, %v696_v60  ;;  %vm704_vm0 = vweird.f32 %v1102_v62 }
  0xde   :  { %1103 = vrcp.f32 %v697_v63  ;;  %vm705_vm2 = vmor %vm703_vm1, %vm704_vm0  ;;  %v724_v12 = vand.u32 2147483648, %v697_v63  ;;  %v722_v14 = vand.u32 2147483647, %v697_v63  ;;  %vm718_vm5 = vweird.f32 %v697_v63 }
  0xdf   :  { %v700_v1 = vsub.f32 1.0, %v699_v0 }
  0xe0   :  { %v725_v16 = vor.u32 1.1754944e-38, %v724_v12  ;;  %vm723_vm7 = vcmp.eq.f32.partialorder %v722_v14, 8.507059e+37 }
  0xe1   :  { %v701_v3 = vmul.f32 %v1102_v62, %v700_v1 }
  0xe3   :  { %v702_v5 = vadd.f32 %v1102_v62, %v701_v3 }
  0xe4   :  { %v1104_v6 = vpop.eup %1103 }
  0xe5   :  { %v706_v8 = vsel %vm705_vm2, %v1102_v62, %v702_v5  ;;  %v714_v9 = vmul.f32 %v1104_v6, %v697_v63  ;;  %vm719_vm4 = vweird.f32 %v1104_v6 }
  0xe6   :  { %v711_v10 = vsel %vm708_vm3, %v710_v7, %v706_v8  ;;  %vm720_vm6 = vmor %vm718_vm5, %vm719_vm4 }
  0xe7   :  { %728 = vst [vmem:[%s1377_s3] sm:$0xff] %v711_v10  ;;  %v715_v11 = vsub.f32 1.0, %v714_v9 }
  0xe9   :  { %v716_v13 = vmul.f32 %v1104_v6, %v715_v11 }
  0xeb   :  { %v717_v15 = vadd.f32 %v1104_v6, %v716_v13 }
  0xed   :  { %v721_v17 = vsel %vm720_vm6, %v1104_v6, %v717_v15 }
  0xee   :  { %v726_v18 = vsel %vm723_vm7, %v725_v16, %v721_v17 }
  0xef   :  { %729 = vst [vmem:[%s1377_s3 + $0x8] sm:$0xff] %v726_v18 }

</bundles_post_ra>
